<compile_context>
chip_gen: v6e
topology: v6e:2x2x1
jax: 0.10.0
libtpu: 0.0.40
codegen_flags: <defaults>
</compile_context>

<pallas_src>
import functools

import numpy as np
import jax
import jax.numpy as jnp
from jax.experimental import pallas as pl
from jax.experimental.pallas import tpu as pltpu

# Static geometry implied by the module (Linear(hidden*7*7, out) => 28x28 inputs).
_H1, _WP1, _M1, _HW1, _LPAD = 28, 30, 872, 840, 960          # block 1: 28x28, padded width 30
_H2, _WP2, _M2, _HW2, _L2, _MP2 = 14, 16, 240, 224, 288, 222  # block 2: 14x14, padded width 16


def _pool_constants():
    """0/1 selection matrices & validity masks (numpy; constant-folded under jit)."""
    # pool-1: pick column 2*ho*30 + 2*wo of the block-1 map and drop it at the *padded*
    # block-2 position (ho+1)*16 + (wo+1)  -> pooling + zero re-padding in one matmul.
    sel1 = np.zeros((_HW1, _L2), np.float32)
    for ho in range(_H2):
        for wo in range(_H2):
            sel1[2 * ho * _WP1 + 2 * wo, (ho + 1) * _WP2 + (wo + 1)] = 1.0
    # pool-2 / flatten: maps torch flat index ho*7+wo to pooled-2 flat column 2*ho*16+2*wo.
    s2 = np.zeros((7 * 7, _MP2), np.float32)
    for ho in range(7):
        for wo in range(7):
            s2[ho * 7 + wo, 2 * ho * _WP2 + 2 * wo] = 1.0
    mask1 = ((np.arange(_M1) % _WP1) < _H1).astype(np.float32).reshape(1, _M1)
    mask2 = ((np.arange(_M2) % _WP2) < _H2).astype(np.float32).reshape(1, _M2)
    return sel1, s2, mask1, mask2


def _cnn_kernel(x_ref, w1a_ref, b1a_ref, w1b_ref, b1b_ref,
                w2a_ref, b2a_ref, w2b_ref, b2b_ref,
                sel1_ref, mask1_ref, mask2_ref, wsel_ref, bc_ref,
                out_ref, padbuf, *, cin, hidden):
    f32, bf16 = jnp.float32, jnp.bfloat16

    def conv3x3_relu(src, w_ref, b_ref, c_in, wp, m):
        """3x3 conv (pad=1) + bias + ReLU on a zero-padded, width-`wp` flat layout.

        src[:, r*wp + s] = padded input at (r, s).  Output column j <-> (j // wp, j % wp);
        columns with (j % wp) >= wp-2 are junk and are masked / ignored by the caller.
        """
        acc = jnp.zeros((hidden, m), f32)
        for k in range(9):                        # unrolled: 9 shifted in-VMEM views (im2col)
            off = (k // 3) * wp + (k % 3)
            s = src[:, off:off + m]               # (c_in, m), lane-dense
            wk = w_ref[k]                         # (hidden, c_in) bf16
            if c_in == 1:                         # K=1 tap: cheaper as a VPU broadcast FMA
                acc = acc + wk.astype(f32) * s
            else:                                 # MXU: bf16 inputs, f32 accumulate
                acc = acc + jnp.dot(wk, s.astype(bf16), preferred_element_type=f32)
        return jnp.maximum(acc + b_ref[...], 0.0)  # fused bias (Cout,1) + ReLU epilogue

    # ---------------- block 1 : 28x28 spatial, padded width 30 ----------------
    x = x_ref[0]                                                # (cin, 960) padded flat image
    y = conv3x3_relu(x, w1a_ref, b1a_ref, cin, _WP1, _M1)       # (hidden, 872)
    y = y * mask1_ref[...]                                      # zero the junk columns
    padbuf[...] = jnp.zeros(padbuf.shape, f32)                  # re-pad with 1-px zero border
    padbuf[:, _WP1 + 1:_WP1 + 1 + _HW1] = y[:, 0:_HW1]
    y = conv3x3_relu(padbuf[...], w1b_ref, b1b_ref, hidden, _WP1, _M1)
    # 2x2 max-pool: max of 4 shifted views, then compact + re-pad via a 0/1 matmul.
    m1 = jnp.maximum(jnp.maximum(y[:, 0:_HW1], y[:, 1:_HW1 + 1]),
                     jnp.maximum(y[:, _WP1:_WP1 + _HW1], y[:, _WP1 + 1:_WP1 + 1 + _HW1]))
    p3 = jnp.dot(m1.astype(bf16), sel1_ref[...], preferred_element_type=f32)  # (hidden, 288)

    # ---------------- block 2 : 14x14 spatial, padded width 16 ----------------
    y = conv3x3_relu(p3, w2a_ref, b2a_ref, hidden, _WP2, _M2)   # (hidden, 240)
    y = y * mask2_ref[...]
    padbuf[:, 0:_L2] = jnp.zeros((hidden, _L2), f32)
    padbuf[:, _WP2 + 1:_WP2 + 1 + _HW2] = y[:, 0:_HW2]
    y = conv3x3_relu(padbuf[:, 0:_L2], w2b_ref, b2b_ref, hidden, _WP2, _M2)
    m2 = jnp.maximum(jnp.maximum(y[:, 0:_MP2], y[:, 1:_MP2 + 1]),
                     jnp.maximum(y[:, _WP2:_WP2 + _MP2], y[:, _WP2 + 1:_WP2 + 1 + _MP2]))

    # ---- classifier: pool-2 selection + torch Flatten folded into the scattered weight ----
    acc = bc_ref[...]                                           # (1, out)
    for c in range(hidden):                                     # small, unrolled mat-vecs
        acc = acc + jnp.dot(m2[c:c + 1, :], wsel_ref[c], preferred_element_type=f32)
    out_ref[0] = acc


def model_cnn_forward(x_nchw, params):
    """Pallas equivalent of model_CNN.forward for NCHW float input (28x28 spatial)."""
    B, cin, H, W = x_nchw.shape
    assert (H, W) == (28, 28), "Linear(hidden*7*7, out) implies 28x28 inputs"
    hidden = params["w1a"].shape[0]
    out_dim = params["wc"].shape[0]

    sel1_np, s2_np, mask1_np, mask2_np = _pool_constants()

    # ---- trace-time weight re-layout (tiny, constant-folded by jit) ----
    def taps(w):   # torch (Cout, Cin, 3, 3) -> (9, Cout, Cin) bf16 for the MXU
        co, ci = w.shape[0], w.shape[1]
        return jnp.transpose(w, (2, 3, 0, 1)).reshape(9, co, ci).astype(jnp.bfloat16)

    def colb(b):   # bias as (Cout, 1) column, added in-register in the conv epilogue
        return b.reshape(-1, 1).astype(jnp.float32)

    # classifier weight scattered into the pooled-2 flat layout:
    #   wsel[c, 2*ho*16 + 2*wo, o] = Wc[o, c*49 + ho*7 + wo]
    w3 = params["wc"].reshape(out_dim, hidden, 49).transpose(1, 2, 0)      # (hidden, 49, out)
    wsel = jnp.einsum("cqo,qj->cjo", w3.astype(jnp.float32), jnp.asarray(s2_np))
    bc = params["bc"].reshape(1, out_dim).astype(jnp.float32)

    # zero-pad the image once (1-px conv border + row slack for the shifted flat views)
    xpad = jnp.pad(x_nchw.astype(jnp.float32), ((0, 0), (0, 0), (1, 3), (1, 1)))
    xflat = xpad.reshape(B, cin, _LPAD)                                    # (B, cin, 960)

    sel1 = jnp.asarray(sel1_np).astype(jnp.bfloat16)
    mask1 = jnp.asarray(mask1_np)
    mask2 = jnp.asarray(mask2_np)

    kernel = functools.partial(_cnn_kernel, cin=cin, hidden=hidden)

    def whole(shape):  # resident, constant-index inputs (weights / masks / selections)
        return pl.BlockSpec(shape, lambda b: (0,) * len(shape))

    out = pl.pallas_call(
        kernel,
        out_shape=jax.ShapeDtypeStruct((B, 1, out_dim), jnp.float32),
        grid=(B,),                                  # one image per grid step
        in_specs=[
            pl.BlockSpec((1, cin, _LPAD), lambda b: (b, 0, 0)),
            whole((9, hidden, cin)), whole((hidden, 1)),
            whole((9, hidden, hidden)), whole((hidden, 1)),
            whole((9, hidden, hidden)), whole((hidden, 1)),
            whole((9, hidden, hidden)), whole((hidden, 1)),
            whole((_HW1, _L2)), whole((1, _M1)), whole((1, _M2)),
            whole((hidden, _MP2, out_dim)), whole((1, out_dim)),
        ],
        out_specs=pl.BlockSpec((1, 1, out_dim), lambda b: (b, 0, 0)),
        scratch_shapes=[pltpu.VMEM((hidden, _LPAD), jnp.float32)],
        compiler_params=pltpu.CompilerParams(
            dimension_semantics=("parallel",)),      # batch grid shards across v7x's 2 TCs
    )(xflat,
      taps(params["w1a"]), colb(params["b1a"]),
      taps(params["w1b"]), colb(params["b1b"]),
      taps(params["w2a"]), colb(params["b2a"]),
      taps(params["w2b"]), colb(params["b2b"]),
      sel1, mask1, mask2, wsel, bc)
    return out[:, 0, :]


def reference_forward(x, params):
    """Pure-JAX (XLA) reference of model_CNN.forward, for a numeric cross-check."""
    def conv(x, w, b):
        y = jax.lax.conv_general_dilated(
            x, w, window_strides=(1, 1), padding=((1, 1), (1, 1)),
            dimension_numbers=("NCHW", "OIHW", "NCHW"),
            precision=jax.lax.Precision.HIGHEST)
        return jax.nn.relu(y + b.reshape(1, -1, 1, 1))

    def pool(x):
        return jax.lax.reduce_window(x, -jnp.inf, jax.lax.max,
                                     (1, 1, 2, 2), (1, 1, 2, 2), "VALID")

    x = pool(conv(conv(x, params["w1a"], params["b1a"]), params["w1b"], params["b1b"]))
    x = pool(conv(conv(x, params["w2a"], params["b2a"]), params["w2b"], params["b2b"]))
    flat = x.reshape(x.shape[0], -1)                  # (B, hidden*7*7), torch (c, h, w) order
    return jnp.dot(flat, params["wc"].T,
                   precision=jax.lax.Precision.HIGHEST) + params["bc"]


def init_params(key, in_channels, hidden_units, output):
    """PyTorch-layout parameters: conv (Cout, Cin, 3, 3), fc (out, hidden*7*7)."""
    ks = jax.random.split(key, 10)

    def conv_w(k, cin, cout):
        return 0.05 * jax.random.normal(k, (cout, cin, 3, 3), jnp.float32)

    def bias(k, n):
        return 0.01 * jax.random.normal(k, (n,), jnp.float32)

    return {
        "w1a": conv_w(ks[0], in_channels, hidden_units), "b1a": bias(ks[1], hidden_units),
        "w1b": conv_w(ks[2], hidden_units, hidden_units), "b1b": bias(ks[3], hidden_units),
        "w2a": conv_w(ks[4], hidden_units, hidden_units), "b2a": bias(ks[5], hidden_units),
        "w2b": conv_w(ks[6], hidden_units, hidden_units), "b2b": bias(ks[7], hidden_units),
        "wc": 0.05 * jax.random.normal(ks[8], (output, hidden_units * 7 * 7), jnp.float32),
        "bc": bias(ks[9], output),
    }


if __name__ == "__main__":
    key = jax.random.PRNGKey(0)
    k_param, k_x = jax.random.split(key)

    B, C_IN, HIDDEN, OUT = 2, 1, 8, 10
    H = W = 28                       # Linear(hidden*7*7, out) implies 28x28 inputs

    params = init_params(k_param, C_IN, HIDDEN, OUT)
    x = jax.random.normal(k_x, (B, C_IN, H, W), jnp.float32)   # NCHW like PyTorch

    fwd = jax.jit(model_cnn_forward)
    logits = fwd(x, params)
    jax.block_until_ready(logits)

    assert logits.shape == (B, OUT), logits.shape
    assert logits.dtype == jnp.float32

    # numeric cross-check vs a pure-JAX reference (bf16 MXU inputs -> loose tolerance)
    ref = jax.jit(reference_forward)(x, params)
    jax.block_until_ready(ref)
    err = float(jnp.max(jnp.abs(logits - ref)))
    tol = 5e-2 * (1.0 + float(jnp.max(jnp.abs(ref))))
    assert err <= tol, f"kernel/reference mismatch: max|diff|={err:.4g} tol={tol:.4g}"

    print("KERNEL_OK")
</pallas_src>

<mosaic_0001>
module attributes {stable_mosaic.version = 11 : i64} {
  func.func @_cnn_kernel(%arg0: i32, %arg1: memref<1x1x960xf32, #tpu.memory_space<vmem>>, %arg2: memref<9x8x1xbf16, #tpu.memory_space<vmem>>, %arg3: memref<8x1xf32, #tpu.memory_space<vmem>>, %arg4: memref<9x8x8xbf16, #tpu.memory_space<vmem>>, %arg5: memref<8x1xf32, #tpu.memory_space<vmem>>, %arg6: memref<9x8x8xbf16, #tpu.memory_space<vmem>>, %arg7: memref<8x1xf32, #tpu.memory_space<vmem>>, %arg8: memref<9x8x8xbf16, #tpu.memory_space<vmem>>, %arg9: memref<8x1xf32, #tpu.memory_space<vmem>>, %arg10: memref<840x288xbf16, #tpu.memory_space<vmem>>, %arg11: memref<1x872xf32, #tpu.memory_space<vmem>>, %arg12: memref<1x240xf32, #tpu.memory_space<vmem>>, %arg13: memref<8x222x10xf32, #tpu.memory_space<vmem>>, %arg14: memref<1x10xf32, #tpu.memory_space<vmem>>, %arg15: memref<1x1x10xf32, #tpu.memory_space<vmem>>, %arg16: memref<8x960xf32, #tpu.memory_space<vmem>>) attributes {dimension_semantics = [#tpu.dimension_semantics<parallel>], iteration_bounds = array<i64: 2>, scalar_prefetch = 0 : i64, scratch_operands = 1 : i64, tpu.core_type = #tpu.core_type<tc>, window_params = [{transform_indices = @transform_0, window_bounds = array<i64: 1, 1, 960>}, {pipeline_mode = #tpu.pipeline_mode<synchronous>, transform_indices = @transform_1, window_bounds = array<i64: 9, 8, 1>}, {pipeline_mode = #tpu.pipeline_mode<synchronous>, transform_indices = @transform_2, window_bounds = array<i64: 8, 1>}, {pipeline_mode = #tpu.pipeline_mode<synchronous>, transform_indices = @transform_3, window_bounds = array<i64: 9, 8, 8>}, {pipeline_mode = #tpu.pipeline_mode<synchronous>, transform_indices = @transform_4, window_bounds = array<i64: 8, 1>}, {pipeline_mode = #tpu.pipeline_mode<synchronous>, transform_indices = @transform_5, window_bounds = array<i64: 9, 8, 8>}, {pipeline_mode = #tpu.pipeline_mode<synchronous>, transform_indices = @transform_6, window_bounds = array<i64: 8, 1>}, {pipeline_mode = #tpu.pipeline_mode<synchronous>, transform_indices = @transform_7, window_bounds = array<i64: 9, 8, 8>}, {pipeline_mode = #tpu.pipeline_mode<synchronous>, transform_indices = @transform_8, window_bounds = array<i64: 8, 1>}, {pipeline_mode = #tpu.pipeline_mode<synchronous>, transform_indices = @transform_9, window_bounds = array<i64: 840, 288>}, {pipeline_mode = #tpu.pipeline_mode<synchronous>, transform_indices = @transform_10, window_bounds = array<i64: 1, 872>}, {pipeline_mode = #tpu.pipeline_mode<synchronous>, transform_indices = @transform_11, window_bounds = array<i64: 1, 240>}, {pipeline_mode = #tpu.pipeline_mode<synchronous>, transform_indices = @transform_12, window_bounds = array<i64: 8, 222, 10>}, {pipeline_mode = #tpu.pipeline_mode<synchronous>, transform_indices = @transform_13, window_bounds = array<i64: 1, 10>}, {transform_indices = @transform_14, window_bounds = array<i64: 1, 1, 10>}]} {
    %c0 = arith.constant 0 : index
    %c0_0 = arith.constant 0 : index
    %c0_1 = arith.constant 0 : index
    %0 = vector.load %arg1[%c0, %c0_0, %c0_1] : memref<1x1x960xf32, #tpu.memory_space<vmem>>, vector<1x1x960xf32>
    %1 = vector.shape_cast %0 : vector<1x1x960xf32> to vector<1x960xf32>
    %cst = arith.constant 0.000000e+00 : f32
    %2 = vector.broadcast %cst : f32 to vector<8x872xf32>
    %3 = vector.extract_strided_slice %1 {offsets = [0, 0], sizes = [1, 872], strides = [1, 1]} : vector<1x960xf32> to vector<1x872xf32>
    %c0_2 = arith.constant 0 : index
    %c0_3 = arith.constant 0 : index
    %c0_4 = arith.constant 0 : index
    %4 = vector.load %arg2[%c0_2, %c0_3, %c0_4] : memref<9x8x1xbf16, #tpu.memory_space<vmem>>, vector<1x8x1xbf16>
    %5 = vector.shape_cast %4 : vector<1x8x1xbf16> to vector<8x1xbf16>
    %6 = arith.extf %5 : vector<8x1xbf16> to vector<8x1xf32>
    %7 = vector.broadcast %6 : vector<8x1xf32> to vector<8x872xf32>
    %8 = vector.broadcast %3 : vector<1x872xf32> to vector<8x872xf32>
    %9 = arith.mulf %7, %8 : vector<8x872xf32>
    %10 = arith.addf %2, %9 : vector<8x872xf32>
    %11 = vector.extract_strided_slice %1 {offsets = [0, 1], sizes = [1, 872], strides = [1, 1]} : vector<1x960xf32> to vector<1x872xf32>
    %c1 = arith.constant 1 : index
    %c0_5 = arith.constant 0 : index
    %c0_6 = arith.constant 0 : index
    %12 = vector.load %arg2[%c1, %c0_5, %c0_6] : memref<9x8x1xbf16, #tpu.memory_space<vmem>>, vector<1x8x1xbf16>
    %13 = vector.shape_cast %12 : vector<1x8x1xbf16> to vector<8x1xbf16>
    %14 = arith.extf %13 : vector<8x1xbf16> to vector<8x1xf32>
    %15 = vector.broadcast %14 : vector<8x1xf32> to vector<8x872xf32>
    %16 = vector.broadcast %11 : vector<1x872xf32> to vector<8x872xf32>
    %17 = arith.mulf %15, %16 : vector<8x872xf32>
    %18 = arith.addf %10, %17 : vector<8x872xf32>
    %19 = vector.extract_strided_slice %1 {offsets = [0, 2], sizes = [1, 872], strides = [1, 1]} : vector<1x960xf32> to vector<1x872xf32>
    %c2 = arith.constant 2 : index
    %c0_7 = arith.constant 0 : index
    %c0_8 = arith.constant 0 : index
    %20 = vector.load %arg2[%c2, %c0_7, %c0_8] : memref<9x8x1xbf16, #tpu.memory_space<vmem>>, vector<1x8x1xbf16>
    %21 = vector.shape_cast %20 : vector<1x8x1xbf16> to vector<8x1xbf16>
    %22 = arith.extf %21 : vector<8x1xbf16> to vector<8x1xf32>
    %23 = vector.broadcast %22 : vector<8x1xf32> to vector<8x872xf32>
    %24 = vector.broadcast %19 : vector<1x872xf32> to vector<8x872xf32>
    %25 = arith.mulf %23, %24 : vector<8x872xf32>
    %26 = arith.addf %18, %25 : vector<8x872xf32>
    %27 = vector.extract_strided_slice %1 {offsets = [0, 30], sizes = [1, 872], strides = [1, 1]} : vector<1x960xf32> to vector<1x872xf32>
    %c3 = arith.constant 3 : index
    %c0_9 = arith.constant 0 : index
    %c0_10 = arith.constant 0 : index
    %28 = vector.load %arg2[%c3, %c0_9, %c0_10] : memref<9x8x1xbf16, #tpu.memory_space<vmem>>, vector<1x8x1xbf16>
    %29 = vector.shape_cast %28 : vector<1x8x1xbf16> to vector<8x1xbf16>
    %30 = arith.extf %29 : vector<8x1xbf16> to vector<8x1xf32>
    %31 = vector.broadcast %30 : vector<8x1xf32> to vector<8x872xf32>
    %32 = vector.broadcast %27 : vector<1x872xf32> to vector<8x872xf32>
    %33 = arith.mulf %31, %32 : vector<8x872xf32>
    %34 = arith.addf %26, %33 : vector<8x872xf32>
    %35 = vector.extract_strided_slice %1 {offsets = [0, 31], sizes = [1, 872], strides = [1, 1]} : vector<1x960xf32> to vector<1x872xf32>
    %c4 = arith.constant 4 : index
    %c0_11 = arith.constant 0 : index
    %c0_12 = arith.constant 0 : index
    %36 = vector.load %arg2[%c4, %c0_11, %c0_12] : memref<9x8x1xbf16, #tpu.memory_space<vmem>>, vector<1x8x1xbf16>
    %37 = vector.shape_cast %36 : vector<1x8x1xbf16> to vector<8x1xbf16>
    %38 = arith.extf %37 : vector<8x1xbf16> to vector<8x1xf32>
    %39 = vector.broadcast %38 : vector<8x1xf32> to vector<8x872xf32>
    %40 = vector.broadcast %35 : vector<1x872xf32> to vector<8x872xf32>
    %41 = arith.mulf %39, %40 : vector<8x872xf32>
    %42 = arith.addf %34, %41 : vector<8x872xf32>
    %43 = vector.extract_strided_slice %1 {offsets = [0, 32], sizes = [1, 872], strides = [1, 1]} : vector<1x960xf32> to vector<1x872xf32>
    %c5 = arith.constant 5 : index
    %c0_13 = arith.constant 0 : index
    %c0_14 = arith.constant 0 : index
    %44 = vector.load %arg2[%c5, %c0_13, %c0_14] : memref<9x8x1xbf16, #tpu.memory_space<vmem>>, vector<1x8x1xbf16>
    %45 = vector.shape_cast %44 : vector<1x8x1xbf16> to vector<8x1xbf16>
    %46 = arith.extf %45 : vector<8x1xbf16> to vector<8x1xf32>
    %47 = vector.broadcast %46 : vector<8x1xf32> to vector<8x872xf32>
    %48 = vector.broadcast %43 : vector<1x872xf32> to vector<8x872xf32>
    %49 = arith.mulf %47, %48 : vector<8x872xf32>
    %50 = arith.addf %42, %49 : vector<8x872xf32>
    %51 = vector.extract_strided_slice %1 {offsets = [0, 60], sizes = [1, 872], strides = [1, 1]} : vector<1x960xf32> to vector<1x872xf32>
    %c6 = arith.constant 6 : index
    %c0_15 = arith.constant 0 : index
    %c0_16 = arith.constant 0 : index
    %52 = vector.load %arg2[%c6, %c0_15, %c0_16] : memref<9x8x1xbf16, #tpu.memory_space<vmem>>, vector<1x8x1xbf16>
    %53 = vector.shape_cast %52 : vector<1x8x1xbf16> to vector<8x1xbf16>
    %54 = arith.extf %53 : vector<8x1xbf16> to vector<8x1xf32>
    %55 = vector.broadcast %54 : vector<8x1xf32> to vector<8x872xf32>
    %56 = vector.broadcast %51 : vector<1x872xf32> to vector<8x872xf32>
    %57 = arith.mulf %55, %56 : vector<8x872xf32>
    %58 = arith.addf %50, %57 : vector<8x872xf32>
    %59 = vector.extract_strided_slice %1 {offsets = [0, 61], sizes = [1, 872], strides = [1, 1]} : vector<1x960xf32> to vector<1x872xf32>
    %c7 = arith.constant 7 : index
    %c0_17 = arith.constant 0 : index
    %c0_18 = arith.constant 0 : index
    %60 = vector.load %arg2[%c7, %c0_17, %c0_18] : memref<9x8x1xbf16, #tpu.memory_space<vmem>>, vector<1x8x1xbf16>
    %61 = vector.shape_cast %60 : vector<1x8x1xbf16> to vector<8x1xbf16>
    %62 = arith.extf %61 : vector<8x1xbf16> to vector<8x1xf32>
    %63 = vector.broadcast %62 : vector<8x1xf32> to vector<8x872xf32>
    %64 = vector.broadcast %59 : vector<1x872xf32> to vector<8x872xf32>
    %65 = arith.mulf %63, %64 : vector<8x872xf32>
    %66 = arith.addf %58, %65 : vector<8x872xf32>
    %67 = vector.extract_strided_slice %1 {offsets = [0, 62], sizes = [1, 872], strides = [1, 1]} : vector<1x960xf32> to vector<1x872xf32>
    %c8 = arith.constant 8 : index
    %c0_19 = arith.constant 0 : index
    %c0_20 = arith.constant 0 : index
    %68 = vector.load %arg2[%c8, %c0_19, %c0_20] : memref<9x8x1xbf16, #tpu.memory_space<vmem>>, vector<1x8x1xbf16>
    %69 = vector.shape_cast %68 : vector<1x8x1xbf16> to vector<8x1xbf16>
    %70 = arith.extf %69 : vector<8x1xbf16> to vector<8x1xf32>
    %71 = vector.broadcast %70 : vector<8x1xf32> to vector<8x872xf32>
    %72 = vector.broadcast %67 : vector<1x872xf32> to vector<8x872xf32>
    %73 = arith.mulf %71, %72 : vector<8x872xf32>
    %74 = arith.addf %66, %73 : vector<8x872xf32>
    %c0_21 = arith.constant 0 : index
    %c0_22 = arith.constant 0 : index
    %75 = vector.load %arg3[%c0_21, %c0_22] : memref<8x1xf32, #tpu.memory_space<vmem>>, vector<8x1xf32>
    %76 = vector.broadcast %75 : vector<8x1xf32> to vector<8x872xf32>
    %77 = arith.addf %74, %76 : vector<8x872xf32>
    %cst_23 = arith.constant 0.000000e+00 : f32
    %78 = vector.broadcast %cst_23 : f32 to vector<8x872xf32>
    %79 = arith.maximumf %77, %78 : vector<8x872xf32>
    %c0_24 = arith.constant 0 : index
    %c0_25 = arith.constant 0 : index
    %80 = vector.load %arg11[%c0_24, %c0_25] : memref<1x872xf32, #tpu.memory_space<vmem>>, vector<1x872xf32>
    %81 = vector.broadcast %80 : vector<1x872xf32> to vector<8x872xf32>
    %82 = arith.mulf %79, %81 : vector<8x872xf32>
    %cst_26 = arith.constant 0.000000e+00 : f32
    %83 = vector.broadcast %cst_26 : f32 to vector<8x960xf32>
    %c0_27 = arith.constant 0 : index
    %c0_28 = arith.constant 0 : index
    %84 = vector.load %arg16[%c0_27, %c0_28] : memref<8x960xf32, #tpu.memory_space<vmem>>, vector<8x960xf32>
    tpu.vector_store %arg16[%c0_27, %c0_28], %83 {strides = array<i32>} : memref<8x960xf32, #tpu.memory_space<vmem>>, vector<8x960xf32>,
    %85 = vector.extract_strided_slice %82 {offsets = [0, 0], sizes = [8, 840], strides = [1, 1]} : vector<8x872xf32> to vector<8x840xf32>
    %c0_29 = arith.constant 0 : index
    %c31 = arith.constant 31 : index
    %86 = vector.load %arg16[%c0_29, %c31] : memref<8x960xf32, #tpu.memory_space<vmem>>, vector<8x840xf32>
    tpu.vector_store %arg16[%c0_29, %c31], %85 {strides = array<i32>} : memref<8x960xf32, #tpu.memory_space<vmem>>, vector<8x840xf32>,
    %c0_30 = arith.constant 0 : index
    %c0_31 = arith.constant 0 : index
    %87 = vector.load %arg16[%c0_30, %c0_31] : memref<8x960xf32, #tpu.memory_space<vmem>>, vector<8x960xf32>
    %cst_32 = arith.constant 0.000000e+00 : f32
    %88 = vector.broadcast %cst_32 : f32 to vector<8x872xf32>
    %89 = vector.extract_strided_slice %87 {offsets = [0, 0], sizes = [8, 872], strides = [1, 1]} : vector<8x960xf32> to vector<8x872xf32>
    %c0_33 = arith.constant 0 : index
    %c0_34 = arith.constant 0 : index
    %c0_35 = arith.constant 0 : index
    %90 = vector.load %arg4[%c0_33, %c0_34, %c0_35] : memref<9x8x8xbf16, #tpu.memory_space<vmem>>, vector<1x8x8xbf16>
    %91 = vector.shape_cast %90 : vector<1x8x8xbf16> to vector<8x8xbf16>
    %92 = arith.truncf %89 : vector<8x872xf32> to vector<8x872xbf16>
    %cst_36 = arith.constant dense<0.000000e+00> : vector<8x872xf32>
    %93 = tpu.matmul %91, %92, %cst_36 {dimension_numbers = #tpu.dot_dimension_numbers<[1], [0], [0], [1], [0, 0, 1, 1], [], []>} : vector<8x8xbf16>, vector<8x872xbf16>, vector<8x872xf32> -> vector<8x872xf32>
    %94 = arith.addf %88, %93 : vector<8x872xf32>
    %95 = vector.extract_strided_slice %87 {offsets = [0, 1], sizes = [8, 872], strides = [1, 1]} : vector<8x960xf32> to vector<8x872xf32>
    %c1_37 = arith.constant 1 : index
    %c0_38 = arith.constant 0 : index
    %c0_39 = arith.constant 0 : index
    %96 = vector.load %arg4[%c1_37, %c0_38, %c0_39] : memref<9x8x8xbf16, #tpu.memory_space<vmem>>, vector<1x8x8xbf16>
    %97 = vector.shape_cast %96 : vector<1x8x8xbf16> to vector<8x8xbf16>
    %98 = arith.truncf %95 : vector<8x872xf32> to vector<8x872xbf16>
    %cst_40 = arith.constant dense<0.000000e+00> : vector<8x872xf32>
    %99 = tpu.matmul %97, %98, %cst_40 {dimension_numbers = #tpu.dot_dimension_numbers<[1], [0], [0], [1], [0, 0, 1, 1], [], []>} : vector<8x8xbf16>, vector<8x872xbf16>, vector<8x872xf32> -> vector<8x872xf32>
    %100 = arith.addf %94, %99 : vector<8x872xf32>
    %101 = vector.extract_strided_slice %87 {offsets = [0, 2], sizes = [8, 872], strides = [1, 1]} : vector<8x960xf32> to vector<8x872xf32>
    %c2_41 = arith.constant 2 : index
    %c0_42 = arith.constant 0 : index
    %c0_43 = arith.constant 0 : index
    %102 = vector.load %arg4[%c2_41, %c0_42, %c0_43] : memref<9x8x8xbf16, #tpu.memory_space<vmem>>, vector<1x8x8xbf16>
    %103 = vector.shape_cast %102 : vector<1x8x8xbf16> to vector<8x8xbf16>
    %104 = arith.truncf %101 : vector<8x872xf32> to vector<8x872xbf16>
    %cst_44 = arith.constant dense<0.000000e+00> : vector<8x872xf32>
    %105 = tpu.matmul %103, %104, %cst_44 {dimension_numbers = #tpu.dot_dimension_numbers<[1], [0], [0], [1], [0, 0, 1, 1], [], []>} : vector<8x8xbf16>, vector<8x872xbf16>, vector<8x872xf32> -> vector<8x872xf32>
    %106 = arith.addf %100, %105 : vector<8x872xf32>
    %107 = vector.extract_strided_slice %87 {offsets = [0, 30], sizes = [8, 872], strides = [1, 1]} : vector<8x960xf32> to vector<8x872xf32>
    %c3_45 = arith.constant 3 : index
    %c0_46 = arith.constant 0 : index
    %c0_47 = arith.constant 0 : index
    %108 = vector.load %arg4[%c3_45, %c0_46, %c0_47] : memref<9x8x8xbf16, #tpu.memory_space<vmem>>, vector<1x8x8xbf16>
    %109 = vector.shape_cast %108 : vector<1x8x8xbf16> to vector<8x8xbf16>
    %110 = arith.truncf %107 : vector<8x872xf32> to vector<8x872xbf16>
    %cst_48 = arith.constant dense<0.000000e+00> : vector<8x872xf32>
    %111 = tpu.matmul %109, %110, %cst_48 {dimension_numbers = #tpu.dot_dimension_numbers<[1], [0], [0], [1], [0, 0, 1, 1], [], []>} : vector<8x8xbf16>, vector<8x872xbf16>, vector<8x872xf32> -> vector<8x872xf32>
    %112 = arith.addf %106, %111 : vector<8x872xf32>
    %113 = vector.extract_strided_slice %87 {offsets = [0, 31], sizes = [8, 872], strides = [1, 1]} : vector<8x960xf32> to vector<8x872xf32>
    %c4_49 = arith.constant 4 : index
    %c0_50 = arith.constant 0 : index
    %c0_51 = arith.constant 0 : index
    %114 = vector.load %arg4[%c4_49, %c0_50, %c0_51] : memref<9x8x8xbf16, #tpu.memory_space<vmem>>, vector<1x8x8xbf16>
    %115 = vector.shape_cast %114 : vector<1x8x8xbf16> to vector<8x8xbf16>
    %116 = arith.truncf %113 : vector<8x872xf32> to vector<8x872xbf16>
    %cst_52 = arith.constant dense<0.000000e+00> : vector<8x872xf32>
    %117 = tpu.matmul %115, %116, %cst_52 {dimension_numbers = #tpu.dot_dimension_numbers<[1], [0], [0], [1], [0, 0, 1, 1], [], []>} : vector<8x8xbf16>, vector<8x872xbf16>, vector<8x872xf32> -> vector<8x872xf32>
    %118 = arith.addf %112, %117 : vector<8x872xf32>
    %119 = vector.extract_strided_slice %87 {offsets = [0, 32], sizes = [8, 872], strides = [1, 1]} : vector<8x960xf32> to vector<8x872xf32>
    %c5_53 = arith.constant 5 : index
    %c0_54 = arith.constant 0 : index
    %c0_55 = arith.constant 0 : index
    %120 = vector.load %arg4[%c5_53, %c0_54, %c0_55] : memref<9x8x8xbf16, #tpu.memory_space<vmem>>, vector<1x8x8xbf16>
    %121 = vector.shape_cast %120 : vector<1x8x8xbf16> to vector<8x8xbf16>
    %122 = arith.truncf %119 : vector<8x872xf32> to vector<8x872xbf16>
    %cst_56 = arith.constant dense<0.000000e+00> : vector<8x872xf32>
    %123 = tpu.matmul %121, %122, %cst_56 {dimension_numbers = #tpu.dot_dimension_numbers<[1], [0], [0], [1], [0, 0, 1, 1], [], []>} : vector<8x8xbf16>, vector<8x872xbf16>, vector<8x872xf32> -> vector<8x872xf32>
    %124 = arith.addf %118, %123 : vector<8x872xf32>
    %125 = vector.extract_strided_slice %87 {offsets = [0, 60], sizes = [8, 872], strides = [1, 1]} : vector<8x960xf32> to vector<8x872xf32>
    %c6_57 = arith.constant 6 : index
    %c0_58 = arith.constant 0 : index
    %c0_59 = arith.constant 0 : index
    %126 = vector.load %arg4[%c6_57, %c0_58, %c0_59] : memref<9x8x8xbf16, #tpu.memory_space<vmem>>, vector<1x8x8xbf16>
    %127 = vector.shape_cast %126 : vector<1x8x8xbf16> to vector<8x8xbf16>
    %128 = arith.truncf %125 : vector<8x872xf32> to vector<8x872xbf16>
    %cst_60 = arith.constant dense<0.000000e+00> : vector<8x872xf32>
    %129 = tpu.matmul %127, %128, %cst_60 {dimension_numbers = #tpu.dot_dimension_numbers<[1], [0], [0], [1], [0, 0, 1, 1], [], []>} : vector<8x8xbf16>, vector<8x872xbf16>, vector<8x872xf32> -> vector<8x872xf32>
    %130 = arith.addf %124, %129 : vector<8x872xf32>
    %131 = vector.extract_strided_slice %87 {offsets = [0, 61], sizes = [8, 872], strides = [1, 1]} : vector<8x960xf32> to vector<8x872xf32>
    %c7_61 = arith.constant 7 : index
    %c0_62 = arith.constant 0 : index
    %c0_63 = arith.constant 0 : index
    %132 = vector.load %arg4[%c7_61, %c0_62, %c0_63] : memref<9x8x8xbf16, #tpu.memory_space<vmem>>, vector<1x8x8xbf16>
    %133 = vector.shape_cast %132 : vector<1x8x8xbf16> to vector<8x8xbf16>
    %134 = arith.truncf %131 : vector<8x872xf32> to vector<8x872xbf16>
    %cst_64 = arith.constant dense<0.000000e+00> : vector<8x872xf32>
    %135 = tpu.matmul %133, %134, %cst_64 {dimension_numbers = #tpu.dot_dimension_numbers<[1], [0], [0], [1], [0, 0, 1, 1], [], []>} : vector<8x8xbf16>, vector<8x872xbf16>, vector<8x872xf32> -> vector<8x872xf32>
    %136 = arith.addf %130, %135 : vector<8x872xf32>
    %137 = vector.extract_strided_slice %87 {offsets = [0, 62], sizes = [8, 872], strides = [1, 1]} : vector<8x960xf32> to vector<8x872xf32>
    %c8_65 = arith.constant 8 : index
    %c0_66 = arith.constant 0 : index
    %c0_67 = arith.constant 0 : index
    %138 = vector.load %arg4[%c8_65, %c0_66, %c0_67] : memref<9x8x8xbf16, #tpu.memory_space<vmem>>, vector<1x8x8xbf16>
    %139 = vector.shape_cast %138 : vector<1x8x8xbf16> to vector<8x8xbf16>
    %140 = arith.truncf %137 : vector<8x872xf32> to vector<8x872xbf16>
    %cst_68 = arith.constant dense<0.000000e+00> : vector<8x872xf32>
    %141 = tpu.matmul %139, %140, %cst_68 {dimension_numbers = #tpu.dot_dimension_numbers<[1], [0], [0], [1], [0, 0, 1, 1], [], []>} : vector<8x8xbf16>, vector<8x872xbf16>, vector<8x872xf32> -> vector<8x872xf32>
    %142 = arith.addf %136, %141 : vector<8x872xf32>
    %c0_69 = arith.constant 0 : index
    %c0_70 = arith.constant 0 : index
    %143 = vector.load %arg5[%c0_69, %c0_70] : memref<8x1xf32, #tpu.memory_space<vmem>>, vector<8x1xf32>
    %144 = vector.broadcast %143 : vector<8x1xf32> to vector<8x872xf32>
    %145 = arith.addf %142, %144 : vector<8x872xf32>
    %cst_71 = arith.constant 0.000000e+00 : f32
    %146 = vector.broadcast %cst_71 : f32 to vector<8x872xf32>
    %147 = arith.maximumf %145, %146 : vector<8x872xf32>
    %148 = vector.extract_strided_slice %147 {offsets = [0, 0], sizes = [8, 840], strides = [1, 1]} : vector<8x872xf32> to vector<8x840xf32>
    %149 = vector.extract_strided_slice %147 {offsets = [0, 1], sizes = [8, 840], strides = [1, 1]} : vector<8x872xf32> to vector<8x840xf32>
    %150 = arith.maximumf %148, %149 : vector<8x840xf32>
    %151 = vector.extract_strided_slice %147 {offsets = [0, 30], sizes = [8, 840], strides = [1, 1]} : vector<8x872xf32> to vector<8x840xf32>
    %152 = vector.extract_strided_slice %147 {offsets = [0, 31], sizes = [8, 840], strides = [1, 1]} : vector<8x872xf32> to vector<8x840xf32>
    %153 = arith.maximumf %151, %152 : vector<8x840xf32>
    %154 = arith.maximumf %150, %153 : vector<8x840xf32>
    %155 = arith.truncf %154 : vector<8x840xf32> to vector<8x840xbf16>
    %c0_72 = arith.constant 0 : index
    %c0_73 = arith.constant 0 : index
    %156 = vector.load %arg10[%c0_72, %c0_73] : memref<840x288xbf16, #tpu.memory_space<vmem>>, vector<840x288xbf16>
    %cst_74 = arith.constant dense<0.000000e+00> : vector<8x288xf32>
    %157 = tpu.matmul %155, %156, %cst_74 {dimension_numbers = #tpu.dot_dimension_numbers<[1], [0], [0], [1], [0, 0, 1, 1], [], []>} : vector<8x840xbf16>, vector<840x288xbf16>, vector<8x288xf32> -> vector<8x288xf32>
    %cst_75 = arith.constant 0.000000e+00 : f32
    %158 = vector.broadcast %cst_75 : f32 to vector<8x240xf32>
    %159 = vector.extract_strided_slice %157 {offsets = [0, 0], sizes = [8, 240], strides = [1, 1]} : vector<8x288xf32> to vector<8x240xf32>
    %c0_76 = arith.constant 0 : index
    %c0_77 = arith.constant 0 : index
    %c0_78 = arith.constant 0 : index
    %160 = vector.load %arg6[%c0_76, %c0_77, %c0_78] : memref<9x8x8xbf16, #tpu.memory_space<vmem>>, vector<1x8x8xbf16>
    %161 = vector.shape_cast %160 : vector<1x8x8xbf16> to vector<8x8xbf16>
    %162 = arith.truncf %159 : vector<8x240xf32> to vector<8x240xbf16>
    %cst_79 = arith.constant dense<0.000000e+00> : vector<8x240xf32>
    %163 = tpu.matmul %161, %162, %cst_79 {dimension_numbers = #tpu.dot_dimension_numbers<[1], [0], [0], [1], [0, 0, 1, 1], [], []>} : vector<8x8xbf16>, vector<8x240xbf16>, vector<8x240xf32> -> vector<8x240xf32>
    %164 = arith.addf %158, %163 : vector<8x240xf32>
    %165 = vector.extract_strided_slice %157 {offsets = [0, 1], sizes = [8, 240], strides = [1, 1]} : vector<8x288xf32> to vector<8x240xf32>
    %c1_80 = arith.constant 1 : index
    %c0_81 = arith.constant 0 : index
    %c0_82 = arith.constant 0 : index
    %166 = vector.load %arg6[%c1_80, %c0_81, %c0_82] : memref<9x8x8xbf16, #tpu.memory_space<vmem>>, vector<1x8x8xbf16>
    %167 = vector.shape_cast %166 : vector<1x8x8xbf16> to vector<8x8xbf16>
    %168 = arith.truncf %165 : vector<8x240xf32> to vector<8x240xbf16>
    %cst_83 = arith.constant dense<0.000000e+00> : vector<8x240xf32>
    %169 = tpu.matmul %167, %168, %cst_83 {dimension_numbers = #tpu.dot_dimension_numbers<[1], [0], [0], [1], [0, 0, 1, 1], [], []>} : vector<8x8xbf16>, vector<8x240xbf16>, vector<8x240xf32> -> vector<8x240xf32>
    %170 = arith.addf %164, %169 : vector<8x240xf32>
    %171 = vector.extract_strided_slice %157 {offsets = [0, 2], sizes = [8, 240], strides = [1, 1]} : vector<8x288xf32> to vector<8x240xf32>
    %c2_84 = arith.constant 2 : index
    %c0_85 = arith.constant 0 : index
    %c0_86 = arith.constant 0 : index
    %172 = vector.load %arg6[%c2_84, %c0_85, %c0_86] : memref<9x8x8xbf16, #tpu.memory_space<vmem>>, vector<1x8x8xbf16>
    %173 = vector.shape_cast %172 : vector<1x8x8xbf16> to vector<8x8xbf16>
    %174 = arith.truncf %171 : vector<8x240xf32> to vector<8x240xbf16>
    %cst_87 = arith.constant dense<0.000000e+00> : vector<8x240xf32>
    %175 = tpu.matmul %173, %174, %cst_87 {dimension_numbers = #tpu.dot_dimension_numbers<[1], [0], [0], [1], [0, 0, 1, 1], [], []>} : vector<8x8xbf16>, vector<8x240xbf16>, vector<8x240xf32> -> vector<8x240xf32>
    %176 = arith.addf %170, %175 : vector<8x240xf32>
    %177 = vector.extract_strided_slice %157 {offsets = [0, 16], sizes = [8, 240], strides = [1, 1]} : vector<8x288xf32> to vector<8x240xf32>
    %c3_88 = arith.constant 3 : index
    %c0_89 = arith.constant 0 : index
    %c0_90 = arith.constant 0 : index
    %178 = vector.load %arg6[%c3_88, %c0_89, %c0_90] : memref<9x8x8xbf16, #tpu.memory_space<vmem>>, vector<1x8x8xbf16>
    %179 = vector.shape_cast %178 : vector<1x8x8xbf16> to vector<8x8xbf16>
    %180 = arith.truncf %177 : vector<8x240xf32> to vector<8x240xbf16>
    %cst_91 = arith.constant dense<0.000000e+00> : vector<8x240xf32>
    %181 = tpu.matmul %179, %180, %cst_91 {dimension_numbers = #tpu.dot_dimension_numbers<[1], [0], [0], [1], [0, 0, 1, 1], [], []>} : vector<8x8xbf16>, vector<8x240xbf16>, vector<8x240xf32> -> vector<8x240xf32>
    %182 = arith.addf %176, %181 : vector<8x240xf32>
    %183 = vector.extract_strided_slice %157 {offsets = [0, 17], sizes = [8, 240], strides = [1, 1]} : vector<8x288xf32> to vector<8x240xf32>
    %c4_92 = arith.constant 4 : index
    %c0_93 = arith.constant 0 : index
    %c0_94 = arith.constant 0 : index
    %184 = vector.load %arg6[%c4_92, %c0_93, %c0_94] : memref<9x8x8xbf16, #tpu.memory_space<vmem>>, vector<1x8x8xbf16>
    %185 = vector.shape_cast %184 : vector<1x8x8xbf16> to vector<8x8xbf16>
    %186 = arith.truncf %183 : vector<8x240xf32> to vector<8x240xbf16>
    %cst_95 = arith.constant dense<0.000000e+00> : vector<8x240xf32>
    %187 = tpu.matmul %185, %186, %cst_95 {dimension_numbers = #tpu.dot_dimension_numbers<[1], [0], [0], [1], [0, 0, 1, 1], [], []>} : vector<8x8xbf16>, vector<8x240xbf16>, vector<8x240xf32> -> vector<8x240xf32>
    %188 = arith.addf %182, %187 : vector<8x240xf32>
    %189 = vector.extract_strided_slice %157 {offsets = [0, 18], sizes = [8, 240], strides = [1, 1]} : vector<8x288xf32> to vector<8x240xf32>
    %c5_96 = arith.constant 5 : index
    %c0_97 = arith.constant 0 : index
    %c0_98 = arith.constant 0 : index
    %190 = vector.load %arg6[%c5_96, %c0_97, %c0_98] : memref<9x8x8xbf16, #tpu.memory_space<vmem>>, vector<1x8x8xbf16>
    %191 = vector.shape_cast %190 : vector<1x8x8xbf16> to vector<8x8xbf16>
    %192 = arith.truncf %189 : vector<8x240xf32> to vector<8x240xbf16>
    %cst_99 = arith.constant dense<0.000000e+00> : vector<8x240xf32>
    %193 = tpu.matmul %191, %192, %cst_99 {dimension_numbers = #tpu.dot_dimension_numbers<[1], [0], [0], [1], [0, 0, 1, 1], [], []>} : vector<8x8xbf16>, vector<8x240xbf16>, vector<8x240xf32> -> vector<8x240xf32>
    %194 = arith.addf %188, %193 : vector<8x240xf32>
    %195 = vector.extract_strided_slice %157 {offsets = [0, 32], sizes = [8, 240], strides = [1, 1]} : vector<8x288xf32> to vector<8x240xf32>
    %c6_100 = arith.constant 6 : index
    %c0_101 = arith.constant 0 : index
    %c0_102 = arith.constant 0 : index
    %196 = vector.load %arg6[%c6_100, %c0_101, %c0_102] : memref<9x8x8xbf16, #tpu.memory_space<vmem>>, vector<1x8x8xbf16>
    %197 = vector.shape_cast %196 : vector<1x8x8xbf16> to vector<8x8xbf16>
    %198 = arith.truncf %195 : vector<8x240xf32> to vector<8x240xbf16>
    %cst_103 = arith.constant dense<0.000000e+00> : vector<8x240xf32>
    %199 = tpu.matmul %197, %198, %cst_103 {dimension_numbers = #tpu.dot_dimension_numbers<[1], [0], [0], [1], [0, 0, 1, 1], [], []>} : vector<8x8xbf16>, vector<8x240xbf16>, vector<8x240xf32> -> vector<8x240xf32>
    %200 = arith.addf %194, %199 : vector<8x240xf32>
    %201 = vector.extract_strided_slice %157 {offsets = [0, 33], sizes = [8, 240], strides = [1, 1]} : vector<8x288xf32> to vector<8x240xf32>
    %c7_104 = arith.constant 7 : index
    %c0_105 = arith.constant 0 : index
    %c0_106 = arith.constant 0 : index
    %202 = vector.load %arg6[%c7_104, %c0_105, %c0_106] : memref<9x8x8xbf16, #tpu.memory_space<vmem>>, vector<1x8x8xbf16>
    %203 = vector.shape_cast %202 : vector<1x8x8xbf16> to vector<8x8xbf16>
    %204 = arith.truncf %201 : vector<8x240xf32> to vector<8x240xbf16>
    %cst_107 = arith.constant dense<0.000000e+00> : vector<8x240xf32>
    %205 = tpu.matmul %203, %204, %cst_107 {dimension_numbers = #tpu.dot_dimension_numbers<[1], [0], [0], [1], [0, 0, 1, 1], [], []>} : vector<8x8xbf16>, vector<8x240xbf16>, vector<8x240xf32> -> vector<8x240xf32>
    %206 = arith.addf %200, %205 : vector<8x240xf32>
    %207 = vector.extract_strided_slice %157 {offsets = [0, 34], sizes = [8, 240], strides = [1, 1]} : vector<8x288xf32> to vector<8x240xf32>
    %c8_108 = arith.constant 8 : index
    %c0_109 = arith.constant 0 : index
    %c0_110 = arith.constant 0 : index
    %208 = vector.load %arg6[%c8_108, %c0_109, %c0_110] : memref<9x8x8xbf16, #tpu.memory_space<vmem>>, vector<1x8x8xbf16>
    %209 = vector.shape_cast %208 : vector<1x8x8xbf16> to vector<8x8xbf16>
    %210 = arith.truncf %207 : vector<8x240xf32> to vector<8x240xbf16>
    %cst_111 = arith.constant dense<0.000000e+00> : vector<8x240xf32>
    %211 = tpu.matmul %209, %210, %cst_111 {dimension_numbers = #tpu.dot_dimension_numbers<[1], [0], [0], [1], [0, 0, 1, 1], [], []>} : vector<8x8xbf16>, vector<8x240xbf16>, vector<8x240xf32> -> vector<8x240xf32>
    %212 = arith.addf %206, %211 : vector<8x240xf32>
    %c0_112 = arith.constant 0 : index
    %c0_113 = arith.constant 0 : index
    %213 = vector.load %arg7[%c0_112, %c0_113] : memref<8x1xf32, #tpu.memory_space<vmem>>, vector<8x1xf32>
    %214 = vector.broadcast %213 : vector<8x1xf32> to vector<8x240xf32>
    %215 = arith.addf %212, %214 : vector<8x240xf32>
    %cst_114 = arith.constant 0.000000e+00 : f32
    %216 = vector.broadcast %cst_114 : f32 to vector<8x240xf32>
    %217 = arith.maximumf %215, %216 : vector<8x240xf32>
    %c0_115 = arith.constant 0 : index
    %c0_116 = arith.constant 0 : index
    %218 = vector.load %arg12[%c0_115, %c0_116] : memref<1x240xf32, #tpu.memory_space<vmem>>, vector<1x240xf32>
    %219 = vector.broadcast %218 : vector<1x240xf32> to vector<8x240xf32>
    %220 = arith.mulf %217, %219 : vector<8x240xf32>
    %cst_117 = arith.constant 0.000000e+00 : f32
    %221 = vector.broadcast %cst_117 : f32 to vector<8x288xf32>
    %c0_118 = arith.constant 0 : index
    %c0_119 = arith.constant 0 : index
    %222 = vector.load %arg16[%c0_118, %c0_119] : memref<8x960xf32, #tpu.memory_space<vmem>>, vector<8x288xf32>
    tpu.vector_store %arg16[%c0_118, %c0_119], %221 {strides = array<i32>} : memref<8x960xf32, #tpu.memory_space<vmem>>, vector<8x288xf32>,
    %223 = vector.extract_strided_slice %220 {offsets = [0, 0], sizes = [8, 224], strides = [1, 1]} : vector<8x240xf32> to vector<8x224xf32>
    %c0_120 = arith.constant 0 : index
    %c17 = arith.constant 17 : index
    %224 = vector.load %arg16[%c0_120, %c17] : memref<8x960xf32, #tpu.memory_space<vmem>>, vector<8x224xf32>
    tpu.vector_store %arg16[%c0_120, %c17], %223 {strides = array<i32>} : memref<8x960xf32, #tpu.memory_space<vmem>>, vector<8x224xf32>,
    %c0_121 = arith.constant 0 : index
    %c0_122 = arith.constant 0 : index
    %225 = vector.load %arg16[%c0_121, %c0_122] : memref<8x960xf32, #tpu.memory_space<vmem>>, vector<8x288xf32>
    %cst_123 = arith.constant 0.000000e+00 : f32
    %226 = vector.broadcast %cst_123 : f32 to vector<8x240xf32>
    %227 = vector.extract_strided_slice %225 {offsets = [0, 0], sizes = [8, 240], strides = [1, 1]} : vector<8x288xf32> to vector<8x240xf32>
    %c0_124 = arith.constant 0 : index
    %c0_125 = arith.constant 0 : index
    %c0_126 = arith.constant 0 : index
    %228 = vector.load %arg8[%c0_124, %c0_125, %c0_126] : memref<9x8x8xbf16, #tpu.memory_space<vmem>>, vector<1x8x8xbf16>
    %229 = vector.shape_cast %228 : vector<1x8x8xbf16> to vector<8x8xbf16>
    %230 = arith.truncf %227 : vector<8x240xf32> to vector<8x240xbf16>
    %cst_127 = arith.constant dense<0.000000e+00> : vector<8x240xf32>
    %231 = tpu.matmul %229, %230, %cst_127 {dimension_numbers = #tpu.dot_dimension_numbers<[1], [0], [0], [1], [0, 0, 1, 1], [], []>} : vector<8x8xbf16>, vector<8x240xbf16>, vector<8x240xf32> -> vector<8x240xf32>
    %232 = arith.addf %226, %231 : vector<8x240xf32>
    %233 = vector.extract_strided_slice %225 {offsets = [0, 1], sizes = [8, 240], strides = [1, 1]} : vector<8x288xf32> to vector<8x240xf32>
    %c1_128 = arith.constant 1 : index
    %c0_129 = arith.constant 0 : index
    %c0_130 = arith.constant 0 : index
    %234 = vector.load %arg8[%c1_128, %c0_129, %c0_130] : memref<9x8x8xbf16, #tpu.memory_space<vmem>>, vector<1x8x8xbf16>
    %235 = vector.shape_cast %234 : vector<1x8x8xbf16> to vector<8x8xbf16>
    %236 = arith.truncf %233 : vector<8x240xf32> to vector<8x240xbf16>
    %cst_131 = arith.constant dense<0.000000e+00> : vector<8x240xf32>
    %237 = tpu.matmul %235, %236, %cst_131 {dimension_numbers = #tpu.dot_dimension_numbers<[1], [0], [0], [1], [0, 0, 1, 1], [], []>} : vector<8x8xbf16>, vector<8x240xbf16>, vector<8x240xf32> -> vector<8x240xf32>
    %238 = arith.addf %232, %237 : vector<8x240xf32>
    %239 = vector.extract_strided_slice %225 {offsets = [0, 2], sizes = [8, 240], strides = [1, 1]} : vector<8x288xf32> to vector<8x240xf32>
    %c2_132 = arith.constant 2 : index
    %c0_133 = arith.constant 0 : index
    %c0_134 = arith.constant 0 : index
    %240 = vector.load %arg8[%c2_132, %c0_133, %c0_134] : memref<9x8x8xbf16, #tpu.memory_space<vmem>>, vector<1x8x8xbf16>
    %241 = vector.shape_cast %240 : vector<1x8x8xbf16> to vector<8x8xbf16>
    %242 = arith.truncf %239 : vector<8x240xf32> to vector<8x240xbf16>
    %cst_135 = arith.constant dense<0.000000e+00> : vector<8x240xf32>
    %243 = tpu.matmul %241, %242, %cst_135 {dimension_numbers = #tpu.dot_dimension_numbers<[1], [0], [0], [1], [0, 0, 1, 1], [], []>} : vector<8x8xbf16>, vector<8x240xbf16>, vector<8x240xf32> -> vector<8x240xf32>
    %244 = arith.addf %238, %243 : vector<8x240xf32>
    %245 = vector.extract_strided_slice %225 {offsets = [0, 16], sizes = [8, 240], strides = [1, 1]} : vector<8x288xf32> to vector<8x240xf32>
    %c3_136 = arith.constant 3 : index
    %c0_137 = arith.constant 0 : index
    %c0_138 = arith.constant 0 : index
    %246 = vector.load %arg8[%c3_136, %c0_137, %c0_138] : memref<9x8x8xbf16, #tpu.memory_space<vmem>>, vector<1x8x8xbf16>
    %247 = vector.shape_cast %246 : vector<1x8x8xbf16> to vector<8x8xbf16>
    %248 = arith.truncf %245 : vector<8x240xf32> to vector<8x240xbf16>
    %cst_139 = arith.constant dense<0.000000e+00> : vector<8x240xf32>
    %249 = tpu.matmul %247, %248, %cst_139 {dimension_numbers = #tpu.dot_dimension_numbers<[1], [0], [0], [1], [0, 0, 1, 1], [], []>} : vector<8x8xbf16>, vector<8x240xbf16>, vector<8x240xf32> -> vector<8x240xf32>
    %250 = arith.addf %244, %249 : vector<8x240xf32>
    %251 = vector.extract_strided_slice %225 {offsets = [0, 17], sizes = [8, 240], strides = [1, 1]} : vector<8x288xf32> to vector<8x240xf32>
    %c4_140 = arith.constant 4 : index
    %c0_141 = arith.constant 0 : index
    %c0_142 = arith.constant 0 : index
    %252 = vector.load %arg8[%c4_140, %c0_141, %c0_142] : memref<9x8x8xbf16, #tpu.memory_space<vmem>>, vector<1x8x8xbf16>
    %253 = vector.shape_cast %252 : vector<1x8x8xbf16> to vector<8x8xbf16>
    %254 = arith.truncf %251 : vector<8x240xf32> to vector<8x240xbf16>
    %cst_143 = arith.constant dense<0.000000e+00> : vector<8x240xf32>
    %255 = tpu.matmul %253, %254, %cst_143 {dimension_numbers = #tpu.dot_dimension_numbers<[1], [0], [0], [1], [0, 0, 1, 1], [], []>} : vector<8x8xbf16>, vector<8x240xbf16>, vector<8x240xf32> -> vector<8x240xf32>
    %256 = arith.addf %250, %255 : vector<8x240xf32>
    %257 = vector.extract_strided_slice %225 {offsets = [0, 18], sizes = [8, 240], strides = [1, 1]} : vector<8x288xf32> to vector<8x240xf32>
    %c5_144 = arith.constant 5 : index
    %c0_145 = arith.constant 0 : index
    %c0_146 = arith.constant 0 : index
    %258 = vector.load %arg8[%c5_144, %c0_145, %c0_146] : memref<9x8x8xbf16, #tpu.memory_space<vmem>>, vector<1x8x8xbf16>
    %259 = vector.shape_cast %258 : vector<1x8x8xbf16> to vector<8x8xbf16>
    %260 = arith.truncf %257 : vector<8x240xf32> to vector<8x240xbf16>
    %cst_147 = arith.constant dense<0.000000e+00> : vector<8x240xf32>
    %261 = tpu.matmul %259, %260, %cst_147 {dimension_numbers = #tpu.dot_dimension_numbers<[1], [0], [0], [1], [0, 0, 1, 1], [], []>} : vector<8x8xbf16>, vector<8x240xbf16>, vector<8x240xf32> -> vector<8x240xf32>
    %262 = arith.addf %256, %261 : vector<8x240xf32>
    %263 = vector.extract_strided_slice %225 {offsets = [0, 32], sizes = [8, 240], strides = [1, 1]} : vector<8x288xf32> to vector<8x240xf32>
    %c6_148 = arith.constant 6 : index
    %c0_149 = arith.constant 0 : index
    %c0_150 = arith.constant 0 : index
    %264 = vector.load %arg8[%c6_148, %c0_149, %c0_150] : memref<9x8x8xbf16, #tpu.memory_space<vmem>>, vector<1x8x8xbf16>
    %265 = vector.shape_cast %264 : vector<1x8x8xbf16> to vector<8x8xbf16>
    %266 = arith.truncf %263 : vector<8x240xf32> to vector<8x240xbf16>
    %cst_151 = arith.constant dense<0.000000e+00> : vector<8x240xf32>
    %267 = tpu.matmul %265, %266, %cst_151 {dimension_numbers = #tpu.dot_dimension_numbers<[1], [0], [0], [1], [0, 0, 1, 1], [], []>} : vector<8x8xbf16>, vector<8x240xbf16>, vector<8x240xf32> -> vector<8x240xf32>
    %268 = arith.addf %262, %267 : vector<8x240xf32>
    %269 = vector.extract_strided_slice %225 {offsets = [0, 33], sizes = [8, 240], strides = [1, 1]} : vector<8x288xf32> to vector<8x240xf32>
    %c7_152 = arith.constant 7 : index
    %c0_153 = arith.constant 0 : index
    %c0_154 = arith.constant 0 : index
    %270 = vector.load %arg8[%c7_152, %c0_153, %c0_154] : memref<9x8x8xbf16, #tpu.memory_space<vmem>>, vector<1x8x8xbf16>
    %271 = vector.shape_cast %270 : vector<1x8x8xbf16> to vector<8x8xbf16>
    %272 = arith.truncf %269 : vector<8x240xf32> to vector<8x240xbf16>
    %cst_155 = arith.constant dense<0.000000e+00> : vector<8x240xf32>
    %273 = tpu.matmul %271, %272, %cst_155 {dimension_numbers = #tpu.dot_dimension_numbers<[1], [0], [0], [1], [0, 0, 1, 1], [], []>} : vector<8x8xbf16>, vector<8x240xbf16>, vector<8x240xf32> -> vector<8x240xf32>
    %274 = arith.addf %268, %273 : vector<8x240xf32>
    %275 = vector.extract_strided_slice %225 {offsets = [0, 34], sizes = [8, 240], strides = [1, 1]} : vector<8x288xf32> to vector<8x240xf32>
    %c8_156 = arith.constant 8 : index
    %c0_157 = arith.constant 0 : index
    %c0_158 = arith.constant 0 : index
    %276 = vector.load %arg8[%c8_156, %c0_157, %c0_158] : memref<9x8x8xbf16, #tpu.memory_space<vmem>>, vector<1x8x8xbf16>
    %277 = vector.shape_cast %276 : vector<1x8x8xbf16> to vector<8x8xbf16>
    %278 = arith.truncf %275 : vector<8x240xf32> to vector<8x240xbf16>
    %cst_159 = arith.constant dense<0.000000e+00> : vector<8x240xf32>
    %279 = tpu.matmul %277, %278, %cst_159 {dimension_numbers = #tpu.dot_dimension_numbers<[1], [0], [0], [1], [0, 0, 1, 1], [], []>} : vector<8x8xbf16>, vector<8x240xbf16>, vector<8x240xf32> -> vector<8x240xf32>
    %280 = arith.addf %274, %279 : vector<8x240xf32>
    %c0_160 = arith.constant 0 : index
    %c0_161 = arith.constant 0 : index
    %281 = vector.load %arg9[%c0_160, %c0_161] : memref<8x1xf32, #tpu.memory_space<vmem>>, vector<8x1xf32>
    %282 = vector.broadcast %281 : vector<8x1xf32> to vector<8x240xf32>
    %283 = arith.addf %280, %282 : vector<8x240xf32>
    %cst_162 = arith.constant 0.000000e+00 : f32
    %284 = vector.broadcast %cst_162 : f32 to vector<8x240xf32>
    %285 = arith.maximumf %283, %284 : vector<8x240xf32>
    %286 = vector.extract_strided_slice %285 {offsets = [0, 0], sizes = [8, 222], strides = [1, 1]} : vector<8x240xf32> to vector<8x222xf32>
    %287 = vector.extract_strided_slice %285 {offsets = [0, 1], sizes = [8, 222], strides = [1, 1]} : vector<8x240xf32> to vector<8x222xf32>
    %288 = arith.maximumf %286, %287 : vector<8x222xf32>
    %289 = vector.extract_strided_slice %285 {offsets = [0, 16], sizes = [8, 222], strides = [1, 1]} : vector<8x240xf32> to vector<8x222xf32>
    %290 = vector.extract_strided_slice %285 {offsets = [0, 17], sizes = [8, 222], strides = [1, 1]} : vector<8x240xf32> to vector<8x222xf32>
    %291 = arith.maximumf %289, %290 : vector<8x222xf32>
    %292 = arith.maximumf %288, %291 : vector<8x222xf32>
    %c0_163 = arith.constant 0 : index
    %c0_164 = arith.constant 0 : index
    %293 = vector.load %arg14[%c0_163, %c0_164] : memref<1x10xf32, #tpu.memory_space<vmem>>, vector<1x10xf32>
    %294 = vector.extract_strided_slice %292 {offsets = [0, 0], sizes = [1, 222], strides = [1, 1]} : vector<8x222xf32> to vector<1x222xf32>
    %c0_165 = arith.constant 0 : index
    %c0_166 = arith.constant 0 : index
    %c0_167 = arith.constant 0 : index
    %295 = vector.load %arg13[%c0_165, %c0_166, %c0_167] : memref<8x222x10xf32, #tpu.memory_space<vmem>>, vector<1x222x10xf32>
    %296 = vector.shape_cast %295 : vector<1x222x10xf32> to vector<222x10xf32>
    %cst_168 = arith.constant dense<0.000000e+00> : vector<1x10xf32>
    %297 = tpu.matmul %294, %296, %cst_168 {dimension_numbers = #tpu.dot_dimension_numbers<[1], [0], [0], [1], [0, 0, 1, 1], [], []>} : vector<1x222xf32>, vector<222x10xf32>, vector<1x10xf32> -> vector<1x10xf32>
    %298 = arith.addf %293, %297 : vector<1x10xf32>
    %299 = vector.extract_strided_slice %292 {offsets = [1, 0], sizes = [1, 222], strides = [1, 1]} : vector<8x222xf32> to vector<1x222xf32>
    %c1_169 = arith.constant 1 : index
    %c0_170 = arith.constant 0 : index
    %c0_171 = arith.constant 0 : index
    %300 = vector.load %arg13[%c1_169, %c0_170, %c0_171] : memref<8x222x10xf32, #tpu.memory_space<vmem>>, vector<1x222x10xf32>
    %301 = vector.shape_cast %300 : vector<1x222x10xf32> to vector<222x10xf32>
    %cst_172 = arith.constant dense<0.000000e+00> : vector<1x10xf32>
    %302 = tpu.matmul %299, %301, %cst_172 {dimension_numbers = #tpu.dot_dimension_numbers<[1], [0], [0], [1], [0, 0, 1, 1], [], []>} : vector<1x222xf32>, vector<222x10xf32>, vector<1x10xf32> -> vector<1x10xf32>
    %303 = arith.addf %298, %302 : vector<1x10xf32>
    %304 = vector.extract_strided_slice %292 {offsets = [2, 0], sizes = [1, 222], strides = [1, 1]} : vector<8x222xf32> to vector<1x222xf32>
    %c2_173 = arith.constant 2 : index
    %c0_174 = arith.constant 0 : index
    %c0_175 = arith.constant 0 : index
    %305 = vector.load %arg13[%c2_173, %c0_174, %c0_175] : memref<8x222x10xf32, #tpu.memory_space<vmem>>, vector<1x222x10xf32>
    %306 = vector.shape_cast %305 : vector<1x222x10xf32> to vector<222x10xf32>
    %cst_176 = arith.constant dense<0.000000e+00> : vector<1x10xf32>
    %307 = tpu.matmul %304, %306, %cst_176 {dimension_numbers = #tpu.dot_dimension_numbers<[1], [0], [0], [1], [0, 0, 1, 1], [], []>} : vector<1x222xf32>, vector<222x10xf32>, vector<1x10xf32> -> vector<1x10xf32>
    %308 = arith.addf %303, %307 : vector<1x10xf32>
    %309 = vector.extract_strided_slice %292 {offsets = [3, 0], sizes = [1, 222], strides = [1, 1]} : vector<8x222xf32> to vector<1x222xf32>
    %c3_177 = arith.constant 3 : index
    %c0_178 = arith.constant 0 : index
    %c0_179 = arith.constant 0 : index
    %310 = vector.load %arg13[%c3_177, %c0_178, %c0_179] : memref<8x222x10xf32, #tpu.memory_space<vmem>>, vector<1x222x10xf32>
    %311 = vector.shape_cast %310 : vector<1x222x10xf32> to vector<222x10xf32>
    %cst_180 = arith.constant dense<0.000000e+00> : vector<1x10xf32>
    %312 = tpu.matmul %309, %311, %cst_180 {dimension_numbers = #tpu.dot_dimension_numbers<[1], [0], [0], [1], [0, 0, 1, 1], [], []>} : vector<1x222xf32>, vector<222x10xf32>, vector<1x10xf32> -> vector<1x10xf32>
    %313 = arith.addf %308, %312 : vector<1x10xf32>
    %314 = vector.extract_strided_slice %292 {offsets = [4, 0], sizes = [1, 222], strides = [1, 1]} : vector<8x222xf32> to vector<1x222xf32>
    %c4_181 = arith.constant 4 : index
    %c0_182 = arith.constant 0 : index
    %c0_183 = arith.constant 0 : index
    %315 = vector.load %arg13[%c4_181, %c0_182, %c0_183] : memref<8x222x10xf32, #tpu.memory_space<vmem>>, vector<1x222x10xf32>
    %316 = vector.shape_cast %315 : vector<1x222x10xf32> to vector<222x10xf32>
    %cst_184 = arith.constant dense<0.000000e+00> : vector<1x10xf32>
    %317 = tpu.matmul %314, %316, %cst_184 {dimension_numbers = #tpu.dot_dimension_numbers<[1], [0], [0], [1], [0, 0, 1, 1], [], []>} : vector<1x222xf32>, vector<222x10xf32>, vector<1x10xf32> -> vector<1x10xf32>
    %318 = arith.addf %313, %317 : vector<1x10xf32>
    %319 = vector.extract_strided_slice %292 {offsets = [5, 0], sizes = [1, 222], strides = [1, 1]} : vector<8x222xf32> to vector<1x222xf32>
    %c5_185 = arith.constant 5 : index
    %c0_186 = arith.constant 0 : index
    %c0_187 = arith.constant 0 : index
    %320 = vector.load %arg13[%c5_185, %c0_186, %c0_187] : memref<8x222x10xf32, #tpu.memory_space<vmem>>, vector<1x222x10xf32>
    %321 = vector.shape_cast %320 : vector<1x222x10xf32> to vector<222x10xf32>
    %cst_188 = arith.constant dense<0.000000e+00> : vector<1x10xf32>
    %322 = tpu.matmul %319, %321, %cst_188 {dimension_numbers = #tpu.dot_dimension_numbers<[1], [0], [0], [1], [0, 0, 1, 1], [], []>} : vector<1x222xf32>, vector<222x10xf32>, vector<1x10xf32> -> vector<1x10xf32>
    %323 = arith.addf %318, %322 : vector<1x10xf32>
    %324 = vector.extract_strided_slice %292 {offsets = [6, 0], sizes = [1, 222], strides = [1, 1]} : vector<8x222xf32> to vector<1x222xf32>
    %c6_189 = arith.constant 6 : index
    %c0_190 = arith.constant 0 : index
    %c0_191 = arith.constant 0 : index
    %325 = vector.load %arg13[%c6_189, %c0_190, %c0_191] : memref<8x222x10xf32, #tpu.memory_space<vmem>>, vector<1x222x10xf32>
    %326 = vector.shape_cast %325 : vector<1x222x10xf32> to vector<222x10xf32>
    %cst_192 = arith.constant dense<0.000000e+00> : vector<1x10xf32>
    %327 = tpu.matmul %324, %326, %cst_192 {dimension_numbers = #tpu.dot_dimension_numbers<[1], [0], [0], [1], [0, 0, 1, 1], [], []>} : vector<1x222xf32>, vector<222x10xf32>, vector<1x10xf32> -> vector<1x10xf32>
    %328 = arith.addf %323, %327 : vector<1x10xf32>
    %329 = vector.extract_strided_slice %292 {offsets = [7, 0], sizes = [1, 222], strides = [1, 1]} : vector<8x222xf32> to vector<1x222xf32>
    %c7_193 = arith.constant 7 : index
    %c0_194 = arith.constant 0 : index
    %c0_195 = arith.constant 0 : index
    %330 = vector.load %arg13[%c7_193, %c0_194, %c0_195] : memref<8x222x10xf32, #tpu.memory_space<vmem>>, vector<1x222x10xf32>
    %331 = vector.shape_cast %330 : vector<1x222x10xf32> to vector<222x10xf32>
    %cst_196 = arith.constant dense<0.000000e+00> : vector<1x10xf32>
    %332 = tpu.matmul %329, %331, %cst_196 {dimension_numbers = #tpu.dot_dimension_numbers<[1], [0], [0], [1], [0, 0, 1, 1], [], []>} : vector<1x222xf32>, vector<222x10xf32>, vector<1x10xf32> -> vector<1x10xf32>
    %333 = arith.addf %328, %332 : vector<1x10xf32>
    %c0_197 = arith.constant 0 : index
    %c0_198 = arith.constant 0 : index
    %c0_199 = arith.constant 0 : index
    %334 = vector.load %arg15[%c0_197, %c0_198, %c0_199] : memref<1x1x10xf32, #tpu.memory_space<vmem>>, vector<1x1x10xf32>
    %335 = vector.shape_cast %334 : vector<1x1x10xf32> to vector<1x10xf32>
    %336 = vector.shape_cast %333 : vector<1x10xf32> to vector<1x1x10xf32>
    tpu.vector_store %arg15[%c0_197, %c0_198, %c0_199], %336 {strides = array<i32>} : memref<1x1x10xf32, #tpu.memory_space<vmem>>, vector<1x1x10xf32>,
    return
  }
  func.func @transform_0(%arg0: i32) -> (i32, i32, i32) {
    %c0_i32 = arith.constant 0 : i32
    %c0_i32_0 = arith.constant 0 : i32
    %c0_i32_1 = arith.constant 0 : i32
    return %arg0, %c0_i32, %c0_i32_0 : i32, i32, i32
  }
  func.func @transform_1(%arg0: i32) -> (i32, i32, i32) {
    %c0_i32 = arith.constant 0 : i32
    %c0_i32_0 = arith.constant 0 : i32
    %c0_i32_1 = arith.constant 0 : i32
    %c0_i32_2 = arith.constant 0 : i32
    return %c0_i32, %c0_i32_0, %c0_i32_1 : i32, i32, i32
  }
  func.func @transform_2(%arg0: i32) -> (i32, i32) {
    %c0_i32 = arith.constant 0 : i32
    %c0_i32_0 = arith.constant 0 : i32
    %c0_i32_1 = arith.constant 0 : i32
    return %c0_i32, %c0_i32_0 : i32, i32
  }
  func.func @transform_3(%arg0: i32) -> (i32, i32, i32) {
    %c0_i32 = arith.constant 0 : i32
    %c0_i32_0 = arith.constant 0 : i32
    %c0_i32_1 = arith.constant 0 : i32
    %c0_i32_2 = arith.constant 0 : i32
    return %c0_i32, %c0_i32_0, %c0_i32_1 : i32, i32, i32
  }
  func.func @transform_4(%arg0: i32) -> (i32, i32) {
    %c0_i32 = arith.constant 0 : i32
    %c0_i32_0 = arith.constant 0 : i32
    %c0_i32_1 = arith.constant 0 : i32
    return %c0_i32, %c0_i32_0 : i32, i32
  }
  func.func @transform_5(%arg0: i32) -> (i32, i32, i32) {
    %c0_i32 = arith.constant 0 : i32
    %c0_i32_0 = arith.constant 0 : i32
    %c0_i32_1 = arith.constant 0 : i32
    %c0_i32_2 = arith.constant 0 : i32
    return %c0_i32, %c0_i32_0, %c0_i32_1 : i32, i32, i32
  }
  func.func @transform_6(%arg0: i32) -> (i32, i32) {
    %c0_i32 = arith.constant 0 : i32
    %c0_i32_0 = arith.constant 0 : i32
    %c0_i32_1 = arith.constant 0 : i32
    return %c0_i32, %c0_i32_0 : i32, i32
  }
  func.func @transform_7(%arg0: i32) -> (i32, i32, i32) {
    %c0_i32 = arith.constant 0 : i32
    %c0_i32_0 = arith.constant 0 : i32
    %c0_i32_1 = arith.constant 0 : i32
    %c0_i32_2 = arith.constant 0 : i32
    return %c0_i32, %c0_i32_0, %c0_i32_1 : i32, i32, i32
  }
  func.func @transform_8(%arg0: i32) -> (i32, i32) {
    %c0_i32 = arith.constant 0 : i32
    %c0_i32_0 = arith.constant 0 : i32
    %c0_i32_1 = arith.constant 0 : i32
    return %c0_i32, %c0_i32_0 : i32, i32
  }
  func.func @transform_9(%arg0: i32) -> (i32, i32) {
    %c0_i32 = arith.constant 0 : i32
    %c0_i32_0 = arith.constant 0 : i32
    %c0_i32_1 = arith.constant 0 : i32
    return %c0_i32, %c0_i32_0 : i32, i32
  }
  func.func @transform_10(%arg0: i32) -> (i32, i32) {
    %c0_i32 = arith.constant 0 : i32
    %c0_i32_0 = arith.constant 0 : i32
    %c0_i32_1 = arith.constant 0 : i32
    return %c0_i32, %c0_i32_0 : i32, i32
  }
  func.func @transform_11(%arg0: i32) -> (i32, i32) {
    %c0_i32 = arith.constant 0 : i32
    %c0_i32_0 = arith.constant 0 : i32
    %c0_i32_1 = arith.constant 0 : i32
    return %c0_i32, %c0_i32_0 : i32, i32
  }
  func.func @transform_12(%arg0: i32) -> (i32, i32, i32) {
    %c0_i32 = arith.constant 0 : i32
    %c0_i32_0 = arith.constant 0 : i32
    %c0_i32_1 = arith.constant 0 : i32
    %c0_i32_2 = arith.constant 0 : i32
    return %c0_i32, %c0_i32_0, %c0_i32_1 : i32, i32, i32
  }
  func.func @transform_13(%arg0: i32) -> (i32, i32) {
    %c0_i32 = arith.constant 0 : i32
    %c0_i32_0 = arith.constant 0 : i32
    %c0_i32_1 = arith.constant 0 : i32
    return %c0_i32, %c0_i32_0 : i32, i32
  }
  func.func @transform_14(%arg0: i32) -> (i32, i32, i32) {
    %c0_i32 = arith.constant 0 : i32
    %c0_i32_0 = arith.constant 0 : i32
    %c0_i32_1 = arith.constant 0 : i32
    return %arg0, %c0_i32, %c0_i32_0 : i32, i32, i32
  }
}

</mosaic_0001>

<bundles_post_ra>
// kernel: model_cnn_forward.1
= control target key start
LH: loop header
LB: loop body
LE: loop exit
PB: predicated region body
PF: predicated region fallthrough
CT: control target
= control target key end

     0   :  { %s10534_s0 = inlined_call_operand.vmem [shape: f32[2,1,960], index: 0, kind: input, shape index: {}]   ;;  %s10535_s1 = inlined_call_operand.vmem [shape: bf16[9,8,1], index: 1, kind: input, shape index: {}]   ;;  %s10536_s2 = inlined_call_operand.vmem [shape: f32[8,1], index: 2, kind: input, shape index: {}]   ;;  %s10537_s3 = inlined_call_operand.vmem [shape: bf16[9,8,8], index: 3, kind: input, shape index: {}]   ;;  %s10538_s4 = inlined_call_operand.vmem [shape: f32[8,1], index: 4, kind: input, shape index: {}]   ;;  %s10539_s5 = inlined_call_operand.vmem [shape: bf16[9,8,8], index: 5, kind: input, shape index: {}]   ;;  %s10540_s6 = inlined_call_operand.vmem [shape: f32[8,1], index: 6, kind: input, shape index: {}]   ;;  %s10541_s7 = inlined_call_operand.vmem [shape: bf16[9,8,8], index: 7, kind: input, shape index: {}]   ;;  %s10542_s8 = inlined_call_operand.vmem [shape: f32[8,1], index: 8, kind: input, shape index: {}]   ;;  %s10543_s9 = inlined_call_operand.vmem [shape: bf16[840,288], index: 9, kind: input, shape index: {}]   ;;  %s10544_s10 = inlined_call_operand.vmem [shape: f32[1,872], index: 10, kind: input, shape index: {}]   ;;  %s10545_s11 = inlined_call_operand.vmem [shape: f32[1,240], index: 11, kind: input, shape index: {}]   ;;  %s10546_s12 = inlined_call_operand.vmem [shape: f32[8,222,10], index: 12, kind: input, shape index: {}]   ;;  %s10547_s13 = inlined_call_operand.vmem [shape: f32[1,10], index: 13, kind: input, shape index: {}]   ;;  %s10548_s14 = inlined_call_operand.hbm [shape: f32[2,1,10], index: 14, kind: output, shape index: {}]  }
   0x1   :  { %10565 = sst [smem:[#allocation8_spill]] %s10534_s0 }
   0x2   :  { %10566 = sst [smem:[#allocation9_spill]] %s10535_s1 }
   0x3   :  { %19 = vsyncpa [#allocation4], 0 }
   0x4   :  { %21 = vsyncpa [#allocation4 + $0x1], 0  ;;  %s7832_s29 = smov 0   ;;  %s7834_s30 = smov 0  }
   0x5   :  { %s7836_s15 = smov 0   ;;  %s7838_s16 = smov 0  }
   0x6 LB: > { %10567 = sst [smem:[#allocation6_spill]] %s7732_s15  ;;  %s7853_s17 = sadd.s32 4294967295, %s7736_s16   ;;  %s7736_s16 = sphi %s7838_s16, %s10586_s16   ;;  %s7732_s15 = sphi %s7836_s15, %s10585_s15   ;;  %s7728_s30 = sphi %s7834_s30, %s10584_s30   ;;  %s7724_s29 = sphi %s7832_s29, %s10583_s29  }
   0x7   : > { %s6688_s18 = sadd.s32 4294967294, %s7736_s16   ;;  %s7857_s19 = sadd.s32 1, %s7736_s16  }
   0x8   : > { %s333_s20 = sadd.s32 1, %s7732_s15  ;;  %s330_s21 = ssub.s32 %s7736_s16, %s7857_s19 }
   0x9   : > { %p343_p0 = scmp.ne.s32.totalorder %s7732_s15, %s7728_s30  ;;  %p331_p1 = scmp.eq.s32.totalorder %s330_s21, 0 }
   0xa   : > { %p344_p2 = scmp.eq.s32.totalorder %s7853_s17, 1  ;;  %p349_p3 = scmp.ne.s32.totalorder %s7728_s30, %s7724_s29 }
   0xb   : > { %p350_p4 = scmp.eq.s32.totalorder %s6688_s18, 1  ;;  %p6691_p7 = scmp.ge.s32.totalorder %s7736_s16, 1 }
   0xc   : > { %s7868_s22 = scalar_select %p331_p1, %s7732_s15, %s333_s20  }
   0xd   : > { %p7870_p5 = por %p344_p2, %p343_p0  ;;  %p7874_p6 = por %p350_p4, %p349_p3 }
   0xe   : > { %10568 = sst [smem:[#allocation7_spill]] %s7868_s22  ;;  %p414_p8 = scmp.lt.s32.totalorder %s7736_s16, 3 }
  0x10   : > { %p415_p9 = pnand %p6691_p7, %p414_p8 }
  0x11   : > { %s10571_s1 = sld [smem:[#allocation9_spill]] (!%p415_p9)  ;;  %p458_p10 = scmp.lt.s32.totalorder (!%p415_p9), %s7853_s17, 1 }
  0x12   : > { %418 = sbr.rel (%p415_p9) target bundleno = 2962 (0xb92), region = 76  ;;  %s10572_s0 = sld [smem:[#allocation8_spill]] (!%p415_p9) }
  0x13   : > { %s7739_s15 = smov (!%p415_p9), 127   ;;  %s10559_s22 = smov (!%p415_p9), 126  }
  0x14   : > { %s10557_s28 = smov (!%p415_p9), 96   ;;  %s7744_s18 = smov (!%p415_p9), 68  }
  0x15   : > { %s7745_s20 = smov (!%p415_p9), 67   ;;  %s10555_s21 = smov (!%p415_p9), 66  }
  0x17   : > { %v6693_v0 = vld [vmem:[%s10571_s1 + $0x4] sm:$0xff]   ;;  %v6695_v1 = vld [vmem:[%s10571_s1 + $0xc] sm:$0xff]   ;;  %v10550_v2 = vmov 0   ;;  %v6697_v7 = vld [vmem:[%s10571_s1 + $0x14] sm:$0xff]   ;;  %s459_s26 = scalar_select %p458_p10, %s7853_s17, 1  ;;  %v472_v15 = vlaneseq  ;;  %vm557_vm0 = vcmask 1039360  }
  0x18   : > { %7416 = vset.pattern.permute.xlu0 %v10550_v2  ;;  %v523_v3 = vunpack.c.l.bf16 %v6693_v0  ;;  %v580_v4 = vunpack.c.h.bf16 %v6693_v0  ;;  %v637_v5 = vunpack.c.l.bf16 %v6695_v1  ;;  %v704_v6 = vunpack.c.h.bf16 %v6695_v1  ;;  %7427 = vset.pattern.permute.xlu1 %v10550_v2  ;;  %v6699_v8 = vld [vmem:[%s10571_s1 + $0x1c] sm:$0xff]  }
  0x19   : > { %v766_v9 = vunpack.c.l.bf16 %v6697_v7  ;;  %v828_v10 = vunpack.c.h.bf16 %v6697_v7  ;;  %v890_v11 = vunpack.c.l.bf16 %v6699_v8  ;;  %1233 = vmatprep.mubr.bf16.mxu0 %v10550_v2  ;;  %1274 = vmatprep.mubr.bf16.mxu1 %v10550_v2  ;;  %v952_v13 = vunpack.c.h.bf16 %v6699_v8  ;;  %s6692_s27 = sshll.u32 %s459_s26, 3  ;;  %v464_v17 = vld [vmem:[%s10571_s1] sm:$0xf]  ;;  %s10561_s26 = smov 98  }
  0x1a   : > { %v7417_v12 = vpack.i.bf16 %v580_v4, %v523_v3  ;;  %v7422_v16 = vpack.i.bf16 %v704_v6, %v637_v5  ;;  %s461_s25 = scalar_lea.vmem %s10572_s0, %s6692_s27  ;;  %v7904_v19 = vshrl.u32 %v472_v15, 7  ;;  %v465_v20 = vunpack.c.l.bf16 %v464_v17  ;;  %v1012_v21 = vld [vmem:[%s10536_s2] sm:$0xff]  ;;  %s7742_s27 = smov 97  }
  0x1b   : > { %v7428_v14 = vpack.i.bf16 %v828_v10, %v766_v9  ;;  %v7433_v18 = vpack.i.bf16 %v952_v13, %v890_v11  ;;  %v7909_v22 = vld [vmem:[%s461_s25] sm:$0xff]  ;;  %vm614_vm1 = vcmask 1031168   ;;  %vm680_vm2 = vcmask 801792   ;;  %s10576_s25 = smov 66   ;;  %s7755_s0 = smov 17  }
  0x1c   : > { %7418 = vperm.xlu0 %7416, %v7417_v12   ;;  %v645_v23 = vsub.s32 7, %v7904_v19  ;;  %v7916_v25 = vsub.s32 1, %v7904_v19  ;;  %v7919_v26 = vsub.s32 0, %v7904_v19  ;;  %v486_v29 = vsub.s32 3, %v7904_v19 }
  0x1d   : > { %7429 = vperm.xlu1 %7427, %v7428_v14   ;;  %v482_v30 = vsub.s32 2, %v7904_v19  ;;  %v494_v53 = vsub.s32 5, %v7904_v19  ;;  %v490_v54 = vsub.s32 4, %v7904_v19  ;;  %v10554_v55 = vsub.s32 6, %v7904_v19 }
  0x1e   : > { %v7913_v24 = vrot.slane %v7909_v22, %v645_v23  ;;  %v7923_v27 = vrot.slane %v7909_v22, %v7916_v25  ;;  %v7927_v28 = vrot.slane %v7909_v22, %v7919_v26  ;;  %v7936_v35 = vrot.slane %v7909_v22, %v486_v29 }
  0x1f   : > { %v7941_v36 = vrot.slane %v7909_v22, %v482_v30  ;;  %v7989_v58 = vrot.slane %v7909_v22, %v494_v53  ;;  %v7994_v59 = vrot.slane %v7909_v22, %v490_v54  ;;  %v8005_v0 = vrot.slane %v7909_v22, %v10554_v55 }
  0x20   : > { %7423 = vperm.xlu0 %7416, %v7422_v16   ;;  %vm742_vm3 = vcmask 793600   ;;  %vm804_vm4 = vcmask 785408   ;;  %vm866_vm5 = vcmask 556032   ;;  %vm928_vm6 = vcmask 547840  }
  0x21   : > { %7434 = vperm.xlu1 %7427, %v7433_v18   ;;  %vm990_vm7 = vcmask 539648   ;;  %vm1083_vm8 = vcmask 523264   ;;  %vm1120_vm9 = vcmask 1047800   ;;  %vm1106_vm10 = vcmask 252928  }
  0x22   : > { %vm5159_vm11 = vcmask 261120   ;;  %vm1127_vm12 = vcmask 842752   ;;  %vm1179_vm13 = vcmask 1043456   ;;  %vm1175_vm14 = vcmask 64512  }
  0x23   : > { %vm7749_vm15 = vmmov 0  }
  0x24   : > { %468 = vperm.xlu0 %7416, %v465_v20  }
  0x25   : > { %1015 = vperm.xlu1 %7427, %v1012_v21  }
  0x97   : > { %v7419_v31 = vpop.permute.xlu0 %7418 }
  0x98   : > { %v7420_v32 = vunpack.i.l.bf16 %v7419_v31  ;;  %v7421_v37 = vunpack.i.h.bf16 %v7419_v31  ;;  %v7430_v60 = vpop.permute.xlu1 %7429 }
  0x99   : > { %v7996_v61 = vunpack.i.l.bf16 %v7430_v60  ;;  %v8025_v8 = vunpack.i.h.bf16 %v7430_v60 }
  0x9a   : > { %v530_v33 = vmul.f32 %v7420_v32, %v7923_v27  ;;  %v529_v34 = vmul.f32 %v7420_v32, %v7927_v28  ;;  %v532_v38 = vmul.f32 %v7420_v32, %v7936_v35  ;;  %v531_v39 = vmul.f32 %v7420_v32, %v7941_v36 }
  0x9b   : > { %v587_v40 = vmul.f32 %v7421_v37, %v7923_v27  ;;  %v586_v41 = vmul.f32 %v7421_v37, %v7927_v28  ;;  %v7424_v42 = vpop.permute.xlu0 %7423  ;;  %v589_v44 = vmul.f32 %v7421_v37, %v7936_v35  ;;  %v588_v45 = vmul.f32 %v7421_v37, %v7941_v36 }
  0x9c   : > { %545 = vrot.lane.b32.xlu0 %v530_v33, %s7739_s15  ;;  %543 = vrot.lane.b32.xlu1 %v529_v34, %s7739_s15  ;;  %v7953_v43 = vunpack.i.l.bf16 %v7424_v42  ;;  %v7965_v48 = vunpack.i.h.bf16 %v7424_v42  ;;  %v534_v62 = vmul.f32 %v7420_v32, %v7989_v58  ;;  %v533_v63 = vmul.f32 %v7420_v32, %v7994_v59  ;;  %v7435_v17 = vpop.permute.xlu1 %7434 }
  0x9d   : > { %v772_v1 = vmul.f32 %v7996_v61, %v7927_v28  ;;  %v535_v3 = vmul.f32 %v7420_v32, %v8005_v0  ;;  %v774_v4 = vmul.f32 %v7996_v61, %v7941_v36  ;;  %v773_v5 = vmul.f32 %v7996_v61, %v7923_v27 }
  0x9e   : > { %v649_v46 = vmul.f32 %v7953_v43, %v7923_v27  ;;  %v648_v47 = vmul.f32 %v7953_v43, %v7927_v28  ;;  %v651_v49 = vmul.f32 %v7953_v43, %v7936_v35  ;;  %v650_v50 = vmul.f32 %v7953_v43, %v7941_v36 }
  0x9f   : > { %v711_v51 = vmul.f32 %v7965_v48, %v7923_v27  ;;  %v710_v52 = vmul.f32 %v7965_v48, %v7927_v28  ;;  %v713_v56 = vmul.f32 %v7965_v48, %v7936_v35  ;;  %v712_v57 = vmul.f32 %v7965_v48, %v7941_v36 }
  0xa0   : > { %549 = vrot.lane.b32.xlu0 %v532_v38, %s7739_s15  ;;  %547 = vrot.lane.b32.xlu1 %v531_v39, %s7739_s15  ;;  %v590_v6 = vmul.f32 %v7421_v37, %v7994_v59  ;;  %v775_v7 = vmul.f32 %v7996_v61, %v7936_v35  ;;  %v592_v9 = vmul.f32 %v7421_v37, %v8005_v0  ;;  %v7436_v18 = vunpack.i.l.bf16 %v7435_v17  ;;  %v8113_v60 = vpop.permute.xlu1 %1015 }
  0xa1   : > { %v591_v10 = vmul.f32 %v7421_v37, %v7989_v58  ;;  %v835_v11 = vmul.f32 %v8025_v8, %v7923_v27  ;;  %v834_v12 = vmul.f32 %v8025_v8, %v7927_v28  ;;  %v837_v13 = vmul.f32 %v8025_v8, %v7936_v35 }
  0xa2   : > { %v836_v14 = vmul.f32 %v8025_v8, %v7941_v36  ;;  %v653_v15 = vmul.f32 %v7953_v43, %v7989_v58  ;;  %v652_v16 = vmul.f32 %v7953_v43, %v7994_v59  ;;  %v655_v20 = vmul.f32 %v7953_v43, %v7913_v24 }
  0xa3   : > { %v654_v21 = vmul.f32 %v7953_v43, %v8005_v0  ;;  %v897_v22 = vmul.f32 %v7436_v18, %v7923_v27  ;;  %v896_v23 = vmul.f32 %v7436_v18, %v7927_v28  ;;  %v899_v31 = vmul.f32 %v7436_v18, %v7936_v35 }
  0xa4   : > { %602 = vrot.lane.b32.xlu0 %v587_v40, %s10559_s22  ;;  %600 = vrot.lane.b32.xlu1 %v586_v41, %s10559_s22  ;;  %v898_v32 = vmul.f32 %v7436_v18, %v7941_v36  ;;  %v714_v33 = vmul.f32 %v7965_v48, %v7994_v59  ;;  %v715_v34 = vmul.f32 %v7965_v48, %v7989_v58  ;;  %v7437_v37 = vunpack.i.h.bf16 %v7435_v17 }
  0xa5   : > { %v716_v38 = vmul.f32 %v7965_v48, %v8005_v0  ;;  %v717_v39 = vmul.f32 %v7965_v48, %v7913_v24  ;;  %v838_v48 = vmul.f32 %v8025_v8, %v7994_v59 }
  0xa6   : > { %v958_v40 = vmul.f32 %v7437_v37, %v7927_v28  ;;  %v959_v41 = vmul.f32 %v7437_v37, %v7923_v27  ;;  %v960_v42 = vmul.f32 %v7437_v37, %v7941_v36  ;;  %v961_v43 = vmul.f32 %v7437_v37, %v7936_v35 }
  0xa8   : > { %606 = vrot.lane.b32.xlu0 %v589_v44, %s10559_s22  ;;  %604 = vrot.lane.b32.xlu1 %v588_v45, %s10559_s22  ;;  %v776_v44 = vmul.f32 %v7996_v61, %v7994_v59  ;;  %v777_v45 = vmul.f32 %v7996_v61, %v7989_v58 }
  0xac   : > { %666 = vrot.lane.b32.xlu0 %v649_v46, %s10561_s26  ;;  %664 = vrot.lane.b32.xlu1 %v648_v47, %s10561_s26  ;;  %v778_v46 = vmul.f32 %v7996_v61, %v8005_v0  ;;  %v779_v47 = vmul.f32 %v7996_v61, %v7913_v24  ;;  %v902_v61 = vmul.f32 %v7436_v18, %v8005_v0 }
  0xb0   : > { %670 = vrot.lane.b32.xlu0 %v651_v49, %s10561_s26  ;;  %668 = vrot.lane.b32.xlu1 %v650_v50, %s10561_s26  ;;  %v839_v49 = vmul.f32 %v8025_v8, %v7989_v58  ;;  %v840_v50 = vmul.f32 %v8025_v8, %v8005_v0 }
  0xb4   : > { %728 = vrot.lane.b32.xlu0 %v711_v51, %s7742_s27  ;;  %726 = vrot.lane.b32.xlu1 %v710_v52, %s7742_s27  ;;  %v841_v51 = vmul.f32 %v8025_v8, %v7913_v24  ;;  %v900_v52 = vmul.f32 %v7436_v18, %v7994_v59  ;;  %v964_v8 = vmul.f32 %v7437_v37, %v8005_v0 }
  0xb8   : > { %732 = vrot.lane.b32.xlu0 %v713_v56, %s7742_s27  ;;  %730 = vrot.lane.b32.xlu1 %v712_v57, %s7742_s27  ;;  %v901_v56 = vmul.f32 %v7436_v18, %v7989_v58  ;;  %v8111_v57 = vpop.permute.xlu0 %468 }
  0xbc   : > { %553 = vrot.lane.b32.xlu0 %v534_v62, %s7739_s15  ;;  %551 = vrot.lane.b32.xlu1 %v533_v63, %s7739_s15  ;;  %v903_v62 = vmul.f32 %v7436_v18, %v7913_v24 }
  0xc0   : > { %788 = vrot.lane.b32.xlu0 %v772_v1, %s10557_s28  ;;  %555 = vrot.lane.b32.xlu1 %v535_v3, %s7739_s15  ;;  %v962_v3 = vmul.f32 %v7437_v37, %v7994_v59 }
  0xc4   : > { %792 = vrot.lane.b32.xlu0 %v774_v4, %s10557_s28  ;;  %790 = vrot.lane.b32.xlu1 %v773_v5, %s10557_s28  ;;  %v963_v4 = vmul.f32 %v7437_v37, %v7989_v58  ;;  %v10552_v5 = vmov 0.0  }
  0xc5   : > { %1076 = vst [vmem:[#allocation2] sm:$0xff] %v10552_v5  ;;  %1082 = vst [vmem:[#allocation2 + $0x30] sm:$0xff] %v10552_v5 }
  0xc6   : > { %5158 = vst [vmem:[#allocation2 + $0x8] sm:$0xff] %v10552_v5 }
  0xc8   : > { %608 = vrot.lane.b32.xlu0 %v590_v6, %s10559_s22  ;;  %794 = vrot.lane.b32.xlu1 %v775_v7, %s10557_s28 }
  0xcc   : > { %612 = vrot.lane.b32.xlu0 %v592_v9, %s10559_s22  ;;  %610 = vrot.lane.b32.xlu1 %v591_v10, %s10559_s22  ;;  %v965_v9 = vmul.f32 %v7437_v37, %v7913_v24 }
  0xd0   : > { %852 = vrot.lane.b32.xlu0 %v835_v11, %s7744_s18  ;;  %850 = vrot.lane.b32.xlu1 %v834_v12, %s7744_s18 }
  0xd4   : > { %856 = vrot.lane.b32.xlu0 %v837_v13, %s7744_s18  ;;  %854 = vrot.lane.b32.xlu1 %v836_v14, %s7744_s18 }
  0xd8   : > { %674 = vrot.lane.b32.xlu0 %v653_v15, %s10561_s26  ;;  %672 = vrot.lane.b32.xlu1 %v652_v16, %s10561_s26 }
  0xdc   : > { %678 = vrot.lane.b32.xlu0 %v655_v20, %s10561_s26  ;;  %676 = vrot.lane.b32.xlu1 %v654_v21, %s10561_s26 }
  0xe0   : > { %914 = vrot.lane.b32.xlu0 %v897_v22, %s7745_s20  ;;  %912 = vrot.lane.b32.xlu1 %v896_v23, %s7745_s20 }
  0xe4   : > { %918 = vrot.lane.b32.xlu0 %v899_v31, %s7745_s20  ;;  %916 = vrot.lane.b32.xlu1 %v898_v32, %s7745_s20 }
  0xe8   : > { %734 = vrot.lane.b32.xlu0 %v714_v33, %s7742_s27  ;;  %736 = vrot.lane.b32.xlu1 %v715_v34, %s7742_s27 }
  0xec   : > { %738 = vrot.lane.b32.xlu0 %v716_v38, %s7742_s27  ;;  %740 = vrot.lane.b32.xlu1 %v717_v39, %s7742_s27 }
  0xf0   : > { %974 = vrot.lane.b32.xlu0 %v958_v40, %s10555_s21  ;;  %976 = vrot.lane.b32.xlu1 %v959_v41, %s10555_s21 }
  0xf4   : > { %978 = vrot.lane.b32.xlu0 %v960_v42, %s10555_s21  ;;  %980 = vrot.lane.b32.xlu1 %v961_v43, %s10555_s21 }
  0xf8   : > { %796 = vrot.lane.b32.xlu0 %v776_v44, %s10557_s28  ;;  %798 = vrot.lane.b32.xlu1 %v777_v45, %s10557_s28 }
  0xfc   : > { %800 = vrot.lane.b32.xlu0 %v778_v46, %s10557_s28  ;;  %802 = vrot.lane.b32.xlu1 %v779_v47, %s10557_s28 }
 0x100   : > { %858 = vrot.lane.b32.xlu0 %v838_v48, %s7744_s18  ;;  %860 = vrot.lane.b32.xlu1 %v839_v49, %s7744_s18 }
 0x104   : > { %862 = vrot.lane.b32.xlu0 %v840_v50, %s7744_s18  ;;  %864 = vrot.lane.b32.xlu1 %v841_v51, %s7744_s18 }
 0x108   : > { %920 = vrot.lane.b32.xlu0 %v900_v52, %s7745_s20  ;;  %922 = vrot.lane.b32.xlu1 %v901_v56, %s7745_s20  ;;  %v507_v52 = vmul.f32 %v7927_v28, %v8111_v57  ;;  %v509_v28 = vmul.f32 %v7941_v36, %v8111_v57 }
 0x10c   : > { %924 = vrot.lane.b32.xlu0 %v902_v61, %s7745_s20  ;;  %926 = vrot.lane.b32.xlu1 %v903_v62, %s7745_s20 }
 0x10e   : > { %v546_v63 = vpop.permute.xlu0 %545  ;;  %v544_v1 = vpop.permute.xlu1 %543 }
 0x10f   : > { %v558_v51 = vsel %vm557_vm0, %v544_v1, %v546_v63  ;;  %v508_v1 = vmul.f32 %v7923_v27, %v8111_v57 }
 0x110   : > { %982 = vrot.lane.b32.xlu0 %v962_v3, %s10555_s21  ;;  %984 = vrot.lane.b32.xlu1 %v963_v4, %s10555_s21  ;;  %v571_v61 = vadd.f32 %v558_v51, %v507_v52 }
 0x112   : > { %v8126_v6 = vpop.permute.xlu0 %549  ;;  %v548_v7 = vpop.permute.xlu1 %547 }
 0x113   : > { %v559_v4 = vsel %vm557_vm0, %v546_v63, %v548_v7 }
 0x114   : > { %986 = vrot.lane.b32.xlu0 %v964_v8, %s10555_s21  ;;  %988 = vrot.lane.b32.xlu1 %v965_v9, %s10555_s21  ;;  %v560_v8 = vsel %vm557_vm0, %v548_v7, %v8126_v6  ;;  %v572_v52 = vadd.f32 %v559_v4, %v508_v1  ;;  %s7748_s21 = smov 31  }
 0x115   : > { %v573_v5 = vadd.f32 %v560_v8, %v509_v28 }
 0x116   : > { %v603_v10 = vpop.permute.xlu0 %602  ;;  %v601_v11 = vpop.permute.xlu1 %600 }
 0x117   : > { %v615_v56 = vsel %vm614_vm1, %v601_v11, %v603_v10 }
 0x118   : > { %v628_v2 = vadd.f32 %v615_v56, %v571_v61 }
 0x11a   : > { %v8132_v12 = vpop.permute.xlu0 %606  ;;  %v605_v13 = vpop.permute.xlu1 %604 }
 0x11b   : > { %v616_v11 = vsel %vm614_vm1, %v603_v10, %v605_v13  ;;  %v617_v51 = vsel %vm614_vm1, %v605_v13, %v8132_v12 }
 0x11c   : > { %v629_v56 = vadd.f32 %v616_v11, %v572_v52  ;;  %v630_v61 = vadd.f32 %v617_v51, %v573_v5 }
 0x11e   : > { %v667_v14 = vpop.permute.xlu0 %666  ;;  %v665_v15 = vpop.permute.xlu1 %664 }
 0x11f   : > { %v681_v9 = vsel %vm680_vm2, %v665_v15, %v667_v14 }
 0x120   : > { %v695_v7 = vadd.f32 %v681_v9, %v628_v2 }
 0x122   : > { %v8134_v16 = vpop.permute.xlu0 %670  ;;  %v669_v17 = vpop.permute.xlu1 %668 }
 0x123   : > { %v682_v27 = vsel %vm680_vm2, %v667_v14, %v669_v17  ;;  %v683_v36 = vsel %vm680_vm2, %v669_v17, %v8134_v16 }
 0x124   : > { %v696_v8 = vadd.f32 %v682_v27, %v629_v56  ;;  %v697_v9 = vadd.f32 %v683_v36, %v630_v61 }
 0x126   : > { %v729_v18 = vpop.permute.xlu0 %728  ;;  %v727_v20 = vpop.permute.xlu1 %726 }
 0x127   : > { %v743_v63 = vsel %vm742_vm3, %v727_v20, %v729_v18 }
 0x128   : > { %v757_v13 = vadd.f32 %v743_v63, %v695_v7 }
 0x12a   : > { %v8136_v21 = vpop.permute.xlu0 %732  ;;  %v731_v22 = vpop.permute.xlu1 %730 }
 0x12b   : > { %v744_v20 = vsel %vm742_vm3, %v729_v18, %v731_v22  ;;  %v745_v2 = vsel %vm742_vm3, %v731_v22, %v8136_v21 }
 0x12c   : > { %v758_v18 = vadd.f32 %v744_v20, %v696_v8  ;;  %v759_v11 = vadd.f32 %v745_v2, %v697_v9 }
 0x12e   : > { %v8138_v24 = vpop.permute.xlu0 %553  ;;  %v8140_v23 = vpop.permute.xlu1 %551 }
 0x132   : > { %v789_v31 = vpop.permute.xlu0 %788  ;;  %v8142_v32 = vpop.permute.xlu1 %555 }
 0x136   : > { %v793_v33 = vpop.permute.xlu0 %792  ;;  %v791_v34 = vpop.permute.xlu1 %790 }
 0x137   : > { %v805_v10 = vsel %vm804_vm4, %v789_v31, %v791_v34  ;;  %v806_v17 = vsel %vm804_vm4, %v791_v34, %v793_v33 }
 0x138   : > { %v819_v1 = vadd.f32 %v805_v10, %v757_v13  ;;  %v820_v63 = vadd.f32 %v806_v17, %v758_v18  ;;  %v8210_v10 = vld [vmem:[%s10544_s10] sm:$0x7f] }
 0x13a   : > { %v8144_v37 = vpop.permute.xlu0 %608  ;;  %v8146_v38 = vpop.permute.xlu1 %794 }
 0x13b   : > { %v807_v5 = vsel %vm804_vm4, %v793_v33, %v8146_v38 }
 0x13c   : > { %v821_v52 = vadd.f32 %v807_v5, %v759_v11  ;;  %v1041_v5 = vrot.slane %v8210_v10, %v7916_v25 }
 0x13e   : > { %v8148_v39 = vpop.permute.xlu0 %612  ;;  %v8150_v40 = vpop.permute.xlu1 %610 }
 0x142   : > { %v853_v41 = vpop.permute.xlu0 %852  ;;  %v851_v42 = vpop.permute.xlu1 %850 }
 0x143   : > { %v867_v4 = vsel %vm866_vm5, %v851_v42, %v853_v41 }
 0x144   : > { %v881_v51 = vadd.f32 %v867_v4, %v819_v1 }
 0x146   : > { %v8152_v43 = vpop.permute.xlu0 %856  ;;  %v855_v44 = vpop.permute.xlu1 %854 }
 0x147   : > { %v868_v22 = vsel %vm866_vm5, %v853_v41, %v855_v44  ;;  %v869_v42 = vsel %vm866_vm5, %v855_v44, %v8152_v43 }
 0x148   : > { %v882_v41 = vadd.f32 %v868_v22, %v820_v63  ;;  %v883_v56 = vadd.f32 %v869_v42, %v821_v52  ;;  %v1045_v42 = vrot.slane %v8210_v10, %v482_v30  ;;  %v562_v30 = vsel %vm557_vm0, %v8140_v23, %v8138_v24 }
 0x14a   : > { %v8154_v45 = vpop.permute.xlu0 %674  ;;  %v8156_v46 = vpop.permute.xlu1 %672 }
 0x14e   : > { %v8158_v47 = vpop.permute.xlu0 %678  ;;  %v8160_v48 = vpop.permute.xlu1 %676 }
 0x152   : > { %v915_v49 = vpop.permute.xlu0 %914  ;;  %v913_v50 = vpop.permute.xlu1 %912 }
 0x153   : > { %v929_v31 = vsel %vm928_vm6, %v913_v50, %v915_v49 }
 0x154   : > { %v943_v7 = vadd.f32 %v929_v31, %v881_v51 }
 0x156   : > { %v8166_v62 = vpop.permute.xlu0 %918  ;;  %v917_v3 = vpop.permute.xlu1 %916 }
 0x157   : > { %v930_v34 = vsel %vm928_vm6, %v915_v49, %v917_v3  ;;  %v931_v33 = vsel %vm928_vm6, %v917_v3, %v8166_v62  ;;  %v1037_v3 = vrot.slane %v8210_v10, %v7919_v26 }
 0x158   : > { %v944_v61 = vadd.f32 %v930_v34, %v882_v41  ;;  %v945_v13 = vadd.f32 %v931_v33, %v883_v56  ;;  %v561_v41 = vsel %vm557_vm0, %v8126_v6, %v8140_v23  ;;  %v510_v56 = vmul.f32 %v7936_v35, %v8111_v57 }
 0x159   : > { %v563_v23 = vsel %vm557_vm0, %v8138_v24, %v8142_v32  ;;  %v684_v35 = vsel %vm680_vm2, %v8134_v16, %v8156_v46  ;;  %v620_v24 = vsel %vm614_vm1, %v8150_v40, %v8148_v39 }
 0x15a   : > { %v8180_v15 = vpop.permute.xlu0 %734  ;;  %v8182_v55 = vpop.permute.xlu1 %736 }
 0x15b   : > { %v746_v16 = vsel %vm742_vm3, %v8136_v21, %v8180_v15 }
 0x15e   : > { %v8192_v14 = vpop.permute.xlu0 %738  ;;  %v8194_v28 = vpop.permute.xlu1 %740 }
 0x162   : > { %v975_v27 = vpop.permute.xlu0 %974  ;;  %v977_v36 = vpop.permute.xlu1 %976 }
 0x163   : > { %v991_v50 = vsel %vm990_vm7, %v975_v27, %v977_v36 }
 0x164   : > { %v1005_v44 = vadd.f32 %v991_v50, %v943_v7 }
 0x166   : > { %v979_v20 = vpop.permute.xlu0 %978  ;;  %v8212_v2 = vpop.permute.xlu1 %980  ;;  %v1018_v49 = vadd.f32 %v8113_v60, %v1005_v44  ;;  %v511_v44 = vmul.f32 %v7994_v59, %v8111_v57  ;;  %v685_v59 = vsel %vm680_vm2, %v8156_v46, %v8154_v45  ;;  %v747_v46 = vsel %vm742_vm3, %v8180_v15, %v8182_v55 }
 0x167   : > { %v992_v4 = vsel %vm990_vm7, %v977_v36, %v979_v20  ;;  %v993_v8 = vsel %vm990_vm7, %v979_v20, %v8212_v2  ;;  %v574_v20 = vadd.f32 %v561_v41, %v510_v56 }
 0x168   : > { %v1006_v9 = vadd.f32 %v992_v4, %v944_v61  ;;  %v1007_v1 = vadd.f32 %v993_v8, %v945_v13  ;;  %v1025_v17 = vmax.f32 %v1018_v49, 0.0  ;;  %v618_v61 = vsel %vm614_vm1, %v8132_v12, %v8144_v37 }
 0x169   : > { %v619_v13 = vsel %vm614_vm1, %v8144_v37, %v8150_v40  ;;  %v575_v6 = vadd.f32 %v562_v30, %v511_v44  ;;  %v512_v12 = vmul.f32 %v7989_v58, %v8111_v57  ;;  %v513_v37 = vmul.f32 %v8005_v0, %v8111_v57 }
 0x16a   : > { %v797_v31 = vpop.permute.xlu0 %796  ;;  %v799_v18 = vpop.permute.xlu1 %798  ;;  %v1069_v11 = vmul.f32 %v1037_v3, %v1025_v17  ;;  %v1019_v51 = vadd.f32 %v8113_v60, %v1006_v9  ;;  %v1020_v22 = vadd.f32 %v8113_v60, %v1007_v1  ;;  %v631_v4 = vadd.f32 %v618_v61, %v574_v20 }
 0x16b   : > { %v632_v8 = vadd.f32 %v619_v13, %v575_v6  ;;  %v576_v9 = vadd.f32 %v563_v23, %v512_v12  ;;  %v577_v58 = vadd.f32 %v8142_v32, %v513_v37  ;;  %v687_v40 = vsel %vm680_vm2, %v8160_v48, %v8158_v47 }
 0x16c   : > { %1092 = vrot.lane.b32.xlu0 %v1069_v11, %s7748_s21  ;;  %v1026_v63 = vmax.f32 %v1019_v51, 0.0  ;;  %v1027_v52 = vmax.f32 %v1020_v22, 0.0  ;;  %v698_v1 = vadd.f32 %v684_v35, %v631_v4  ;;  %v808_v21 = vsel %vm804_vm4, %v8146_v38, %v797_v31 }
 0x16d   : > { %v699_v17 = vadd.f32 %v685_v59, %v632_v8  ;;  %v809_v15 = vsel %vm804_vm4, %v797_v31, %v799_v18  ;;  %v634_v11 = vadd.f32 %v8148_v39, %v577_v58  ;;  %v633_v32 = vadd.f32 %v620_v24, %v576_v9 }
 0x16e   : > { %v801_v7 = vpop.permute.xlu0 %800  ;;  %v803_v27 = vpop.permute.xlu1 %802  ;;  %v1070_v36 = vmul.f32 %v1041_v5, %v1026_v63  ;;  %v1071_v34 = vmul.f32 %v1045_v42, %v1027_v52  ;;  %v686_v5 = vsel %vm680_vm2, %v8154_v45, %v8160_v48  ;;  %v760_v51 = vadd.f32 %v746_v16, %v698_v1 }
 0x16f   : > { %v761_v22 = vadd.f32 %v747_v46, %v699_v17  ;;  %v748_v42 = vsel %vm742_vm3, %v8182_v55, %v8192_v14  ;;  %v749_v45 = vsel %vm742_vm3, %v8192_v14, %v8194_v28  ;;  %v700_v48 = vadd.f32 %v686_v5, %v633_v32 }
 0x170   : > { %1094 = vrot.lane.b32.xlu1 %v1070_v36, %s7748_s21  ;;  %1096 = vrot.lane.b32.xlu0 %v1071_v34, %s7748_s21  ;;  %v701_v31 = vadd.f32 %v687_v40, %v634_v11  ;;  %v822_v63 = vadd.f32 %v808_v21, %v760_v51  ;;  %v810_v34 = vsel %vm804_vm4, %v799_v18, %v801_v7 }
 0x171   : > { %v823_v39 = vadd.f32 %v809_v15, %v761_v22  ;;  %v811_v41 = vsel %vm804_vm4, %v801_v7, %v803_v27  ;;  %v762_v28 = vadd.f32 %v748_v42, %v700_v48 }
 0x172   : > { %v859_v33 = vpop.permute.xlu0 %858  ;;  %v861_v50 = vpop.permute.xlu1 %860  ;;  %v763_v30 = vadd.f32 %v749_v45, %v701_v31 }
 0x173   : > { %v870_v47 = vsel %vm866_vm5, %v8152_v43, %v859_v33  ;;  %v871_v38 = vsel %vm866_vm5, %v859_v33, %v861_v50  ;;  %v824_v61 = vadd.f32 %v810_v34, %v762_v28 }
 0x174   : > { %v884_v43 = vadd.f32 %v870_v47, %v822_v63  ;;  %v885_v56 = vadd.f32 %v871_v38, %v823_v39  ;;  %v825_v13 = vadd.f32 %v811_v41, %v763_v30 }
 0x176   : > { %v863_v49 = vpop.permute.xlu0 %862  ;;  %v865_v3 = vpop.permute.xlu1 %864 }
 0x177   : > { %v872_v33 = vsel %vm866_vm5, %v861_v50, %v863_v49  ;;  %v873_v44 = vsel %vm866_vm5, %v863_v49, %v865_v3  ;;  %v1049_v49 = vrot.slane %v8210_v10, %v486_v29  ;;  %v1053_v3 = vrot.slane %v8210_v10, %v490_v54 }
 0x178   : > { %v886_v59 = vadd.f32 %v872_v33, %v824_v61  ;;  %v887_v12 = vadd.f32 %v873_v44, %v825_v13  ;;  %v1057_v54 = vrot.slane %v8210_v10, %v494_v53 }
 0x17a   : > { %v921_v0 = vpop.permute.xlu0 %920  ;;  %v923_v57 = vpop.permute.xlu1 %922 }
 0x17b   : > { %v932_v55 = vsel %vm928_vm6, %v8166_v62, %v921_v0  ;;  %v933_v14 = vsel %vm928_vm6, %v921_v0, %v923_v57 }
 0x17c   : > { %v946_v20 = vadd.f32 %v932_v55, %v884_v43  ;;  %v947_v6 = vadd.f32 %v933_v14, %v885_v56 }
 0x17e   : > { %v925_v52 = vpop.permute.xlu0 %924  ;;  %v927_v36 = vpop.permute.xlu1 %926 }
 0x17f   : > { %v934_v7 = vsel %vm928_vm6, %v923_v57, %v925_v52  ;;  %v935_v62 = vsel %vm928_vm6, %v925_v52, %v927_v36  ;;  %v10573_v57 = vsub.s32 6, %v7904_v19  ;;  %v10574_v19 = vmov 0.0  }
 0x180   : > { %v948_v4 = vadd.f32 %v934_v7, %v886_v59  ;;  %v949_v8 = vadd.f32 %v935_v62, %v887_v12  ;;  %1084 = vst.msk [vmem:[#allocation2 + $0x38] sm:$0xff] %vm1083_vm8, %v10574_v19  ;;  %vm5078_vm8 = vcmask 769024  }
 0x181   : > { %v1061_v5 = vrot.slane %v8210_v10, %v10573_v57 }
 0x182   : > { %v983_v18 = vpop.permute.xlu0 %982  ;;  %v985_v23 = vpop.permute.xlu1 %984 }
 0x183   : > { %v994_v27 = vsel %vm990_vm7, %v8212_v2, %v983_v18  ;;  %v995_v35 = vsel %vm990_vm7, %v983_v18, %v985_v23 }
 0x184   : > { %v1008_v50 = vadd.f32 %v994_v27, %v946_v20  ;;  %v1009_v37 = vadd.f32 %v995_v35, %v947_v6  ;;  %v6701_v27 = vld [vmem:[%s10537_s3 + $0x4] sm:$0xf]  ;;  %v10575_v35 = vmov 0  }
 0x186   : > { %v987_v24 = vpop.permute.xlu0 %986  ;;  %v989_v16 = vpop.permute.xlu1 %988  ;;  %v1021_v2 = vadd.f32 %v8113_v60, %v1008_v50  ;;  %v1022_v46 = vadd.f32 %v8113_v60, %v1009_v37 }
 0x187   : > { %v996_v9 = vsel %vm990_vm7, %v985_v23, %v987_v24  ;;  %v997_v58 = vsel %vm990_vm7, %v987_v24, %v989_v16  ;;  %v1136_v61 = vld [vmem:[#allocation2 + $0x38] sm:$0xff] }
 0x188   : > { %v1010_v1 = vadd.f32 %v996_v9, %v948_v4  ;;  %v1011_v17 = vadd.f32 %v997_v58, %v949_v8  ;;  %v1028_v0 = vmax.f32 %v1021_v2, 0.0  ;;  %v1029_v29 = vmax.f32 %v1022_v46, 0.0  ;;  %v3090_v4 = vld [vmem:[%s10538_s4] sm:$0xff] }
 0x189   : > { %v1770_v13 = vpack.c.bf16 %v1136_v61, %v1136_v61 }
 0x18a   : > { %v1024_v40 = vadd.f32 %v8113_v60, %v1011_v17  ;;  %v1072_v21 = vmul.f32 %v1049_v49, %v1028_v0  ;;  %v1073_v15 = vmul.f32 %v1053_v3, %v1029_v29  ;;  %v1023_v11 = vadd.f32 %v8113_v60, %v1010_v1 }
 0x18c   : > { %v1031_v32 = vmax.f32 %v1024_v40, 0.0  ;;  %1098 = vrot.lane.b32.xlu1 %v1072_v21, %s7748_s21  ;;  %1100 = vrot.lane.b32.xlu0 %v1073_v15, %s7748_s21  ;;  %v1030_v51 = vmax.f32 %v1023_v11, 0.0 }
 0x18e   : > { %v1074_v22 = vmul.f32 %v1057_v54, %v1030_v51  ;;  %v1075_v42 = vmul.f32 %v1061_v5, %v1031_v32  ;;  %v1137_v5 = vld [vmem:[%s10537_s3] sm:$0xf] }
 0x190   : > { %1102 = vrot.lane.b32.xlu1 %v1074_v22, %s7748_s21  ;;  %1104 = vrot.lane.b32.xlu0 %v1075_v42, %s7748_s21  ;;  %s7750_s21 = smov 110  }
 0x1de   : > { %v1093_v53 = vpop.permute.xlu0 %1092 }
 0x1df   : > { %1121 = vst.msk [vmem:[#allocation2] sm:$0xff] %vm1120_vm9, %v1093_v53  ;;  %vm5171_vm9 = vcmask 1047688  }
 0x1e2   : > { %v1095_v60 = vpop.permute.xlu1 %1094  ;;  %v1097_v10 = vpop.permute.xlu0 %1096 }
 0x1e3   : > { %v1107_v45 = vsel %vm1106_vm10, %v1093_v53, %v1095_v60  ;;  %v1108_v47 = vsel %vm1106_vm10, %v1095_v60, %v1097_v10 }
 0x1e4   : > { %v8325_v38 = vpack.c.bf16 %v1107_v45, %v1107_v45  ;;  %1123 = vst [vmem:[#allocation2 + $0x10] sm:$0xff] %v1108_v47  ;;  %v8335_v63 = vpack.c.bf16 %v1108_v47, %v1108_v47 }
 0x1e5   : > { %5160 = vst.msk [vmem:[#allocation2 + $0x10] sm:$0xff] %vm5159_vm11, %v10574_v19  ;;  %vm5173_vm11 = vcmask 924672  }
 0x1e6   : > { %v1129_v48 = vld [vmem:[#allocation2] sm:$0xff]  ;;  %1156 = vrot.lane.b32.xlu0 %v8325_v38, %s7739_s15  ;;  %v1374_v0 = vsel %vm1179_vm13, %v8335_v63, 0 }
 0x1e7   : > { %v8330_v31 = vpack.c.bf16 %v1129_v48, %v1129_v48  ;;  %5157 = vst [vmem:[#allocation2] sm:$0xff] %v10574_v19 }
 0x1e9   : > { %1154 = vrot.lane.b32.xlu1 %v8330_v31, %s7739_s15  ;;  %v1368_v29 = vsel %vm1179_vm13, %v8330_v31, 0 }
 0x1ed   : > { %1158 = vrot.lane.b32.xlu1 %v8335_v63, %s7739_s15 }
 0x1fe   : > { %v1099_v39 = vpop.permute.xlu1 %1098  ;;  %v1101_v52 = vpop.permute.xlu0 %1100 }
 0x1ff   : > { %v1109_v36 = vsel %vm1106_vm10, %v1097_v10, %v1099_v39  ;;  %v1110_v34 = vsel %vm1106_vm10, %v1099_v39, %v1101_v52  ;;  %v6716_v39 = vld [vmem:[%s10537_s3 + $0x8] sm:$0xf] }
 0x200   : > { %v8341_v41 = vpack.c.bf16 %v1109_v36, %v1109_v36  ;;  %v8343_v55 = vpack.c.bf16 %v1110_v34, %v1110_v34 }
 0x202   : > { %v1103_v14 = vpop.permute.xlu1 %1102  ;;  %v1105_v28 = vpop.permute.xlu0 %1104  ;;  %1160 = vrot.lane.b32.xlu0 %v8341_v41, %s7739_s15  ;;  %1162 = vrot.lane.b32.xlu1 %v8343_v55, %s7739_s15  ;;  %v1380_v11 = vsel %vm1179_vm13, %v8343_v55, 0 }
 0x203   : > { %v1111_v30 = vsel %vm1106_vm10, %v1101_v52, %v1103_v14  ;;  %v1112_v43 = vsel %vm1106_vm10, %v1103_v14, %v1105_v28  ;;  %vm5167_vm10 = vcmask 138240  }
 0x204   : > { %v8351_v56 = vpack.c.bf16 %v1111_v30, %v1111_v30  ;;  %1128 = vst.msk [vmem:[#allocation2 + $0x30] sm:$0xff] %vm1127_vm12, %v1112_v43 }
 0x206   : > { %1164 = vrot.lane.b32.xlu0 %v8351_v56, %s7739_s15 }
 0x20a   : > { %1553 = vrot.lane.b32.xlu0 %v8330_v31, %s10559_s22 }
 0x20b   : > { %v1135_v33 = vld [vmem:[#allocation2 + $0x30] sm:$0xff] }
 0x20c   : > { %v8357_v44 = vpack.c.bf16 %v1135_v33, %v1135_v33 }
 0x20e   : > { %1166 = vrot.lane.b32.xlu1 %v8357_v44, %s7739_s15  ;;  %1557 = vrot.lane.b32.xlu0 %v8335_v63, %s10559_s22  ;;  %v1386_v15 = vsel %vm1179_vm13, %v8357_v44, 0 }
 0x212   : > { %1555 = vrot.lane.b32.xlu1 %v8325_v38, %s10559_s22  ;;  %1561 = vrot.lane.b32.xlu0 %v8343_v55, %s10559_s22 }
 0x216   : > { %1559 = vrot.lane.b32.xlu1 %v8341_v41, %s10559_s22  ;;  %1565 = vrot.lane.b32.xlu0 %v8357_v44, %s10559_s22 }
 0x21a   : > { %1563 = vrot.lane.b32.xlu1 %v8351_v56, %s10559_s22  ;;  %1774 = vrot.lane.b32.xlu0 %v8325_v38, %s10561_s26  ;;  %s10580_s22 = smov 95  }
 0x21e   : > { %1772 = vrot.lane.b32.xlu1 %v8330_v31, %s10561_s26  ;;  %1778 = vrot.lane.b32.xlu0 %v8341_v41, %s10561_s26 }
 0x222   : > { %1776 = vrot.lane.b32.xlu1 %v8335_v63, %s10561_s26  ;;  %1782 = vrot.lane.b32.xlu0 %v8351_v56, %s10561_s26 }
 0x226   : > { %1780 = vrot.lane.b32.xlu1 %v8343_v55, %s10561_s26  ;;  %1786 = vrot.lane.b32.xlu0 %v1770_v13, %s10561_s26 }
 0x22a   : > { %1784 = vrot.lane.b32.xlu1 %v8357_v44, %s10561_s26  ;;  %1994 = vrot.lane.b32.xlu0 %v8325_v38, %s7742_s27  ;;  %s10578_s26 = smov 126  }
 0x22e   : > { %1992 = vrot.lane.b32.xlu1 %v8330_v31, %s7742_s27  ;;  %1998 = vrot.lane.b32.xlu0 %v8341_v41, %s7742_s27 }
 0x232   : > { %1996 = vrot.lane.b32.xlu1 %v8335_v63, %s7742_s27  ;;  %2002 = vrot.lane.b32.xlu0 %v8351_v56, %s7742_s27 }
 0x236   : > { %2000 = vrot.lane.b32.xlu1 %v8343_v55, %s7742_s27  ;;  %2006 = vrot.lane.b32.xlu0 %v1770_v13, %s7742_s27 }
 0x23a   : > { %2004 = vrot.lane.b32.xlu1 %v8357_v44, %s7742_s27  ;;  %2214 = vrot.lane.b32.xlu0 %v8325_v38, %s10557_s28  ;;  %s7751_s27 = smov 112  }
 0x23e   : > { %2212 = vrot.lane.b32.xlu1 %v8330_v31, %s10557_s28  ;;  %2218 = vrot.lane.b32.xlu0 %v8341_v41, %s10557_s28 }
 0x242   : > { %2216 = vrot.lane.b32.xlu1 %v8335_v63, %s10557_s28  ;;  %2222 = vrot.lane.b32.xlu0 %v8351_v56, %s10557_s28 }
 0x246   : > { %2220 = vrot.lane.b32.xlu1 %v8343_v55, %s10557_s28  ;;  %2226 = vrot.lane.b32.xlu0 %v1770_v13, %s10557_s28 }
 0x24a   : > { %2224 = vrot.lane.b32.xlu1 %v8357_v44, %s10557_s28  ;;  %2434 = vrot.lane.b32.xlu0 %v8325_v38, %s7744_s18  ;;  %s10577_s28 = smov 98  }
 0x24e   : > { %2432 = vrot.lane.b32.xlu1 %v8330_v31, %s7744_s18  ;;  %2438 = vrot.lane.b32.xlu0 %v8341_v41, %s7744_s18 }
 0x252   : > { %2436 = vrot.lane.b32.xlu1 %v8335_v63, %s7744_s18  ;;  %2442 = vrot.lane.b32.xlu0 %v8351_v56, %s7744_s18 }
 0x256   : > { %2440 = vrot.lane.b32.xlu1 %v8343_v55, %s7744_s18  ;;  %2446 = vrot.lane.b32.xlu0 %v1770_v13, %s7744_s18 }
 0x258   : > { %v1157_v6 = vpop.permute.xlu0 %1156 }
 0x25a   : > { %2444 = vrot.lane.b32.xlu1 %v8357_v44, %s7744_s18  ;;  %2654 = vrot.lane.b32.xlu0 %v8325_v38, %s7745_s20  ;;  %s7752_s18 = smov 111  }
 0x25b   : > { %v1155_v20 = vpop.permute.xlu1 %1154 }
 0x25c   : > { %v1169_v18 = vsel %vm557_vm0, %v1155_v20, %v1157_v6 }
 0x25d   : > { %v1181_v62 = vsel %vm1179_vm13, %v1169_v18, 0 }
 0x25e   : > { %2652 = vrot.lane.b32.xlu1 %v8330_v31, %s7745_s20  ;;  %2658 = vrot.lane.b32.xlu0 %v8341_v41, %s7745_s20 }
 0x25f   : > { %v1159_v23 = vpop.permute.xlu1 %1158 }
 0x260   : > { %v1170_v7 = vsel %vm557_vm0, %v1157_v6, %v1159_v23 }
 0x261   : > { %6702 = vmatprep.subr.msk.bf16.mxu0 %vm1179_vm13, %v1170_v7 }
 0x262   : > { %2656 = vrot.lane.b32.xlu1 %v8335_v63, %s7745_s20  ;;  %1216 = vmatpush1.bf16.msra.mxu0 %v1181_v62  ;;  %v6724_v62 = vld [vmem:[%s10537_s3 + $0xc] sm:$0xf] }
 0x263   : > { %2662 = vrot.lane.b32.xlu0 %v8351_v56, %s7745_s20 }
 0x265   : > { %6703 = vmatmul.mubr.msk.bf16.vlgmr.msra.gmra.mxu0 %vm1175_vm14, %v6701_v27 }
 0x266   : > { %2660 = vrot.lane.b32.xlu1 %v8343_v55, %s7745_s20  ;;  %1315 = vmatprep.mubr.bf16.mxu0 %v10575_v35 }
 0x267   : > { %2666 = vrot.lane.b32.xlu0 %v1770_v13, %s7745_s20 }
 0x26a   : > { %2664 = vrot.lane.b32.xlu1 %v8357_v44, %s7745_s20  ;;  %s7754_s20 = smov 94  }
 0x26b   : > { %2874 = vrot.lane.b32.xlu0 %v8325_v38, %s10576_s25 }
 0x26e   : > { %2872 = vrot.lane.b32.xlu1 %v8330_v31, %s10576_s25 }
 0x26f   : > { %2878 = vrot.lane.b32.xlu0 %v8341_v41, %s10576_s25 }
 0x272   : > { %2876 = vrot.lane.b32.xlu1 %v8335_v63, %s10576_s25 }
 0x273   : > { %2882 = vrot.lane.b32.xlu0 %v8351_v56, %s10576_s25 }
 0x274   : > { %v1163_v59 = vpop.permute.xlu1 %1162  ;;  %v1161_v12 = vpop.permute.xlu0 %1160 }
 0x275   : > { %v1172_v50 = vsel %vm557_vm0, %v1161_v12, %v1163_v59  ;;  %v1171_v37 = vsel %vm557_vm0, %v1159_v23, %v1161_v12 }
 0x276   : > { %2880 = vrot.lane.b32.xlu1 %v8343_v55, %s10576_s25  ;;  %6704 = vmatprep.subr.msk.bf16.mxu1 %vm1179_vm13, %v1172_v50  ;;  %v1187_v49 = vsel %vm1179_vm13, %v1171_v37, 0 }
 0x277   : > { %2886 = vrot.lane.b32.xlu0 %v1770_v13, %s10576_s25  ;;  %1257 = vmatpush1.bf16.msra.mxu1 %v1187_v49 }
 0x278   : > { %v1165_v3 = vpop.permute.xlu0 %1164  ;;  %7291 = vmatprep.subr.bf16.mxu1 %v10574_v19 }
 0x279   : > { %v1173_v24 = vsel %vm557_vm0, %v1163_v59, %v1165_v3 }
 0x27a   : > { %2884 = vrot.lane.b32.xlu1 %v8357_v44, %s10576_s25  ;;  %6705 = vmatmul.mubr.msk.bf16.vlgmr.msra.gmra.mxu1 %vm1175_vm14, %v6701_v27  ;;  %v1193_v58 = vsel %vm1179_vm13, %v1173_v24, 0  ;;  %s10579_s25 = smov 96  }
 0x27b   : > { %7293 = vmatprep.mubr.msk.bf16.mxu1 %vm7749_vm15, %v10574_v19 }
 0x27c   : > { %v1554_v8 = vpop.permute.xlu0 %1553 }
 0x27e   : > { %3093 = vperm.xlu1 %7427, %v3090_v4  }
 0x280   : > { %v1167_v16 = vpop.permute.xlu1 %1166  ;;  %v1558_v2 = vpop.permute.xlu0 %1557 }
 0x281   : > { %v1174_v46 = vsel %vm557_vm0, %v1165_v3, %v1167_v16  ;;  %v1199_v9 = vsel %vm1179_vm13, %v1167_v16, 0 }
 0x282   : > { %6706 = vmatprep.subr.msk.bf16.mxu0 %vm1179_vm13, %v1174_v46  ;;  %7292 = vmatpush3.bf16.msra.mxu1 %v1199_v9 }
 0x283   : > { %1298 = vmatpush1.bf16.msra.mxu0 %v1193_v58  ;;  %6711 = vmatprep.subr.msk.bf16.mxu1 %vm1179_vm13, %v8341_v41 }
 0x284   : > { %v1556_v1 = vpop.permute.xlu1 %1555  ;;  %6709 = vmatprep.subr.msk.bf16.mxu0 %vm1179_vm13, %v8325_v38  ;;  %v1562_v17 = vpop.permute.xlu0 %1561 }
 0x285   : > { %7294 = vmatmul.mubr.msk.bf16.vlgmr.msra.gmra.mxu1 %vm1175_vm14, %v6701_v27  ;;  %v1569_v51 = vsel %vm614_vm1, %v1556_v1, %v1558_v2  ;;  %v1568_v60 = vsel %vm614_vm1, %v1554_v8, %v1556_v1 }
 0x286   : > { %6707 = vmatmul.mubr.msk.bf16.vlgmr.msra.gmra.mxu0 %vm1175_vm14, %v6701_v27  ;;  %1444 = vmatpush1.bf16.msra.mxu1 %v1374_v0  ;;  %v1578_v38 = vsel %vm1179_vm13, %v1568_v60, 0 }
 0x287   : > { %1403 = vmatpush1.bf16.msra.mxu0 %v1368_v29  ;;  %1420 = vmatprep.mubr.bf16.mxu0 %v10575_v35 }
 0x288   : > { %v1560_v54 = vpop.permute.xlu1 %1559  ;;  %6713 = vmatprep.subr.msk.bf16.mxu0 %vm1179_vm13, %v8351_v56  ;;  %v1566_v57 = vpop.permute.xlu0 %1565  ;;  %1461 = vmatprep.mubr.bf16.mxu1 %v10575_v35 }
 0x289   : > { %7297 = vmatprep.subr.bf16.mxu1 %v10574_v19  ;;  %v1571_v32 = vsel %vm614_vm1, %v1560_v54, %v1562_v17  ;;  %v1570_v53 = vsel %vm614_vm1, %v1558_v2, %v1560_v54  ;;  %v1596_v41 = vsel %vm1179_vm13, %v1566_v57, 0  ;;  %v6732_v54 = vld [vmem:[%s10537_s3 + $0x10] sm:$0xf] }
 0x28a   : > { %v1584_v47 = vsel %vm1179_vm13, %v1570_v53, 0 }
 0x28c   : > { %v1564_v40 = vpop.permute.xlu1 %1563  ;;  %v1775_v21 = vpop.permute.xlu0 %1774 }
 0x28d   : > { %6712 = vmatmul.mubr.msk.bf16.vlgmr.msra.gmra.mxu1 %vm1175_vm14, %v1137_v5  ;;  %v1573_v48 = vsel %vm614_vm1, %v1564_v40, %v1566_v57  ;;  %v1572_v52 = vsel %vm614_vm1, %v1562_v17, %v1564_v40 }
 0x28e   : > { %6710 = vmatmul.mubr.msk.bf16.vlgmr.msra.gmra.mxu0 %vm1175_vm14, %v1137_v5  ;;  %7298 = vmatpush3.bf16.msra.mxu1 %v1386_v15  ;;  %v1590_v55 = vsel %vm1179_vm13, %v1572_v52, 0 }
 0x28f   : > { %1485 = vmatpush1.bf16.msra.mxu0 %v1380_v11  ;;  %6719 = vmatprep.subr.msk.bf16.mxu1 %vm1179_vm13, %v1571_v32 }
 0x290   : > { %6717 = vmatprep.subr.msk.bf16.mxu0 %vm1179_vm13, %v1569_v51  ;;  %v1773_v22 = vpop.permute.xlu1 %1772  ;;  %1502 = vmatprep.mubr.bf16.mxu0 %v10575_v35  ;;  %v1779_v42 = vpop.permute.xlu0 %1778 }
 0x291   : > { %7299 = vmatprep.mubr.msk.bf16.mxu1 %vm7749_vm15, %v10574_v19  ;;  %v1789_v33 = vsel %vm680_vm2, %v1773_v22, %v1775_v21 }
 0x292   : > { %v1800_v20 = vsel %vm1179_vm13, %v1789_v33, 0 }
 0x294   : > { %v1777_v10 = vpop.permute.xlu1 %1776  ;;  %v1783_v45 = vpop.permute.xlu0 %1782 }
 0x295   : > { %7300 = vmatmul.mubr.msk.bf16.vlgmr.msra.gmra.mxu1 %vm1175_vm14, %v1137_v5  ;;  %v1790_v28 = vsel %vm680_vm2, %v1775_v21, %v1777_v10  ;;  %v1791_v56 = vsel %vm680_vm2, %v1777_v10, %v1779_v42 }
 0x296   : > { %6714 = vmatmul.mubr.msk.bf16.vlgmr.msra.gmra.mxu0 %vm1175_vm14, %v1137_v5  ;;  %1654 = vmatpush1.bf16.msra.mxu1 %v1584_v47  ;;  %v1806_v13 = vsel %vm1179_vm13, %v1791_v56, 0 }
 0x297   : > { %1613 = vmatpush1.bf16.msra.mxu0 %v1578_v38  ;;  %1630 = vmatprep.mubr.bf16.mxu0 %v10575_v35 }
 0x298   : > { %6721 = vmatprep.subr.msk.bf16.mxu0 %vm1179_vm13, %v1573_v48  ;;  %v1781_v31 = vpop.permute.xlu1 %1780  ;;  %v1787_v63 = vpop.permute.xlu0 %1786  ;;  %1671 = vmatprep.mubr.bf16.mxu1 %v10575_v35 }
 0x299   : > { %7303 = vmatprep.subr.bf16.mxu1 %v10574_v19  ;;  %v1792_v14 = vsel %vm680_vm2, %v1779_v42, %v1781_v31  ;;  %v1793_v27 = vsel %vm680_vm2, %v1781_v31, %v1783_v45  ;;  %v8609_v31 = vld [vmem:[#allocation2 + $0x8] sm:$0xff] }
 0x29a   : > { %v1812_v49 = vsel %vm1179_vm13, %v1793_v27, 0 }
 0x29c   : > { %v1785_v36 = vpop.permute.xlu1 %1784  ;;  %v1995_v34 = vpop.permute.xlu0 %1994 }
 0x29d   : > { %6720 = vmatmul.mubr.msk.bf16.vlgmr.msra.gmra.mxu1 %vm1175_vm14, %v6716_v39  ;;  %v1794_v6 = vsel %vm680_vm2, %v1783_v45, %v1785_v36  ;;  %v1795_v7 = vsel %vm680_vm2, %v1785_v36, %v1787_v63 }
 0x29e   : > { %6718 = vmatmul.mubr.msk.bf16.vlgmr.msra.gmra.mxu0 %vm1175_vm14, %v6716_v39  ;;  %7304 = vmatpush3.bf16.msra.mxu1 %v1596_v41  ;;  %v1818_v50 = vsel %vm1179_vm13, %v1795_v7, 0 }
 0x29f   : > { %1695 = vmatpush1.bf16.msra.mxu0 %v1590_v55  ;;  %6727 = vmatprep.subr.msk.bf16.mxu1 %vm1179_vm13, %v1792_v14 }
 0x2a0   : > { %6725 = vmatprep.subr.msk.bf16.mxu0 %vm1179_vm13, %v1790_v28  ;;  %v1993_v30 = vpop.permute.xlu1 %1992  ;;  %1712 = vmatprep.mubr.bf16.mxu0 %v10575_v35  ;;  %v1999_v43 = vpop.permute.xlu0 %1998 }
 0x2a1   : > { %7305 = vmatprep.mubr.msk.bf16.mxu1 %vm7749_vm15, %v10574_v19  ;;  %v2009_v16 = vsel %vm742_vm3, %v1993_v30, %v1995_v34 }
 0x2a2   : > { %v2020_v58 = vsel %vm1179_vm13, %v2009_v16, 0 }
 0x2a4   : > { %v1997_v44 = vpop.permute.xlu1 %1996  ;;  %v2003_v61 = vpop.permute.xlu0 %2002 }
 0x2a5   : > { %7306 = vmatmul.mubr.msk.bf16.vlgmr.msra.gmra.mxu1 %vm1175_vm14, %v6716_v39  ;;  %v2010_v3 = vsel %vm742_vm3, %v1995_v34, %v1997_v44  ;;  %v2011_v24 = vsel %vm742_vm3, %v1997_v44, %v1999_v43 }
 0x2a6   : > { %6722 = vmatmul.mubr.msk.bf16.vlgmr.msra.gmra.mxu0 %vm1175_vm14, %v6716_v39  ;;  %1876 = vmatpush1.bf16.msra.mxu1 %v1806_v13  ;;  %v2026_v9 = vsel %vm1179_vm13, %v2011_v24, 0  ;;  %v6740_v39 = vld [vmem:[%s10537_s3 + $0x14] sm:$0xf] }
 0x2a7   : > { %1835 = vmatpush1.bf16.msra.mxu0 %v1800_v20  ;;  %1852 = vmatprep.mubr.bf16.mxu0 %v10575_v35 }
 0x2a8   : > { %6729 = vmatprep.subr.msk.bf16.mxu0 %vm1179_vm13, %v1794_v6  ;;  %v2001_v18 = vpop.permute.xlu1 %2000  ;;  %v2007_v23 = vpop.permute.xlu0 %2006  ;;  %1893 = vmatprep.mubr.bf16.mxu1 %v10575_v35 }
 0x2a9   : > { %7309 = vmatprep.subr.bf16.mxu1 %v10574_v19  ;;  %v2012_v37 = vsel %vm742_vm3, %v1999_v43, %v2001_v18  ;;  %v2013_v57 = vsel %vm742_vm3, %v2001_v18, %v2003_v61 }
 0x2aa   : > { %v2032_v15 = vsel %vm1179_vm13, %v2013_v57, 0 }
 0x2ac   : > { %v2005_v59 = vpop.permute.xlu1 %2004  ;;  %v2215_v12 = vpop.permute.xlu0 %2214 }
 0x2ad   : > { %6728 = vmatmul.mubr.msk.bf16.vlgmr.msra.gmra.mxu1 %vm1175_vm14, %v6724_v62  ;;  %v2014_v1 = vsel %vm742_vm3, %v2003_v61, %v2005_v59  ;;  %v2015_v29 = vsel %vm742_vm3, %v2005_v59, %v2007_v23  ;;  %v6748_v23 = vld [vmem:[%s10537_s3 + $0x18] sm:$0xf]  ;;  %vm4249_vm3 = vcmask 588800  }
 0x2ae   : > { %6726 = vmatmul.mubr.msk.bf16.vlgmr.msra.gmra.mxu0 %vm1175_vm14, %v6724_v62  ;;  %7310 = vmatpush3.bf16.msra.mxu1 %v1818_v50  ;;  %v2038_v21 = vsel %vm1179_vm13, %v2015_v29, 0 }
 0x2af   : > { %1917 = vmatpush1.bf16.msra.mxu0 %v1812_v49  ;;  %6735 = vmatprep.subr.msk.bf16.mxu1 %vm1179_vm13, %v2012_v37 }
 0x2b0   : > { %6733 = vmatprep.subr.msk.bf16.mxu0 %vm1179_vm13, %v2010_v3  ;;  %v2213_v4 = vpop.permute.xlu1 %2212  ;;  %1934 = vmatprep.mubr.bf16.mxu0 %v10575_v35  ;;  %v2219_v8 = vpop.permute.xlu0 %2218 }
 0x2b1   : > { %7311 = vmatprep.mubr.msk.bf16.mxu1 %vm7749_vm15, %v10574_v19  ;;  %v2229_v53 = vsel %vm804_vm4, %v2213_v4, %v2215_v12 }
 0x2b2   : > { %v2240_v47 = vsel %vm1179_vm13, %v2229_v53, 0 }
 0x2b4   : > { %v2217_v2 = vpop.permute.xlu1 %2216  ;;  %v2223_v46 = vpop.permute.xlu0 %2222 }
 0x2b5   : > { %7312 = vmatmul.mubr.msk.bf16.vlgmr.msra.gmra.mxu1 %vm1175_vm14, %v6724_v62  ;;  %v2230_v32 = vsel %vm804_vm4, %v2215_v12, %v2217_v2  ;;  %v2231_v42 = vsel %vm804_vm4, %v2217_v2, %v2219_v8 }
 0x2b6   : > { %6730 = vmatmul.mubr.msk.bf16.vlgmr.msra.gmra.mxu0 %vm1175_vm14, %v6724_v62  ;;  %2096 = vmatpush1.bf16.msra.mxu1 %v2026_v9  ;;  %v2246_v45 = vsel %vm1179_vm13, %v2231_v42, 0 }
 0x2b7   : > { %2055 = vmatpush1.bf16.msra.mxu0 %v2020_v58  ;;  %2072 = vmatprep.mubr.bf16.mxu0 %v10575_v35 }
 0x2b8   : > { %6737 = vmatprep.subr.msk.bf16.mxu0 %vm1179_vm13, %v2014_v1  ;;  %v2221_v17 = vpop.permute.xlu1 %2220  ;;  %v2227_v0 = vpop.permute.xlu0 %2226  ;;  %2113 = vmatprep.mubr.bf16.mxu1 %v10575_v35  ;;  %v6756_v1 = vld [vmem:[%s10537_s3 + $0x1c] sm:$0xf] }
 0x2b9   : > { %7315 = vmatprep.subr.bf16.mxu1 %v10574_v19  ;;  %v2232_v11 = vsel %vm804_vm4, %v2219_v8, %v2221_v17  ;;  %v2233_v52 = vsel %vm804_vm4, %v2221_v17, %v2223_v46 }
 0x2ba   : > { %v2252_v41 = vsel %vm1179_vm13, %v2233_v52, 0 }
 0x2bc   : > { %v2225_v5 = vpop.permute.xlu1 %2224  ;;  %v2435_v40 = vpop.permute.xlu0 %2434 }
 0x2bd   : > { %6736 = vmatmul.mubr.msk.bf16.vlgmr.msra.gmra.mxu1 %vm1175_vm14, %v6732_v54  ;;  %v2234_v38 = vsel %vm804_vm4, %v2223_v46, %v2225_v5  ;;  %v2235_v63 = vsel %vm804_vm4, %v2225_v5, %v2227_v0 }
 0x2be   : > { %6734 = vmatmul.mubr.msk.bf16.vlgmr.msra.gmra.mxu0 %vm1175_vm14, %v6732_v54  ;;  %7316 = vmatpush3.bf16.msra.mxu1 %v2038_v21  ;;  %v2258_v34 = vsel %vm1179_vm13, %v2235_v63, 0 }
 0x2bf   : > { %2137 = vmatpush1.bf16.msra.mxu0 %v2032_v15  ;;  %6743 = vmatprep.subr.msk.bf16.mxu1 %vm1179_vm13, %v2232_v11 }
 0x2c0   : > { %6741 = vmatprep.subr.msk.bf16.mxu0 %vm1179_vm13, %v2230_v32  ;;  %v2433_v51 = vpop.permute.xlu1 %2432  ;;  %2154 = vmatprep.mubr.bf16.mxu0 %v10575_v35  ;;  %v2439_v22 = vpop.permute.xlu0 %2438 }
 0x2c1   : > { %7317 = vmatprep.mubr.msk.bf16.mxu1 %vm7749_vm15, %v10574_v19  ;;  %v2449_v56 = vsel %vm866_vm5, %v2433_v51, %v2435_v40 }
 0x2c2   : > { %v2460_v13 = vsel %vm1179_vm13, %v2449_v56, 0 }
 0x2c4   : > { %v2437_v60 = vpop.permute.xlu1 %2436  ;;  %v2443_v10 = vpop.permute.xlu0 %2442 }
 0x2c5   : > { %7318 = vmatmul.mubr.msk.bf16.vlgmr.msra.gmra.mxu1 %vm1175_vm14, %v6732_v54  ;;  %v2450_v14 = vsel %vm866_vm5, %v2435_v40, %v2437_v60  ;;  %v2451_v43 = vsel %vm866_vm5, %v2437_v60, %v2439_v22 }
 0x2c6   : > { %6738 = vmatmul.mubr.msk.bf16.vlgmr.msra.gmra.mxu0 %vm1175_vm14, %v6732_v54  ;;  %2316 = vmatpush1.bf16.msra.mxu1 %v2246_v45  ;;  %v2466_v44 = vsel %vm1179_vm13, %v2451_v43, 0 }
 0x2c7   : > { %2275 = vmatpush1.bf16.msra.mxu0 %v2240_v47  ;;  %2292 = vmatprep.mubr.bf16.mxu0 %v10575_v35 }
 0x2c8   : > { %6745 = vmatprep.subr.msk.bf16.mxu0 %vm1179_vm13, %v2234_v38  ;;  %v2441_v19 = vpop.permute.xlu1 %2440  ;;  %2333 = vmatprep.mubr.bf16.mxu1 %v10575_v35  ;;  %v2447_v48 = vpop.permute.xlu0 %2446 }
 0x2c9   : > { %7321 = vmatprep.subr.bf16.mxu1 %v8609_v31  ;;  %v2452_v55 = vsel %vm866_vm5, %v2439_v22, %v2441_v19  ;;  %v2453_v7 = vsel %vm866_vm5, %v2441_v19, %v2443_v10 }
 0x2ca   : > { %v2472_v12 = vsel %vm1179_vm13, %v2453_v7, 0 }
 0x2cc   : > { %v2445_v36 = vpop.permute.xlu1 %2444  ;;  %v2655_v28 = vpop.permute.xlu0 %2654 }
 0x2cd   : > { %6744 = vmatmul.mubr.msk.bf16.vlgmr.msra.gmra.mxu1 %vm1175_vm14, %v6740_v39  ;;  %v2454_v20 = vsel %vm866_vm5, %v2443_v10, %v2445_v36  ;;  %v2455_v18 = vsel %vm866_vm5, %v2445_v36, %v2447_v48  ;;  %v6764_v10 = vld [vmem:[%s10537_s3 + $0x20] sm:$0xf]  ;;  %vm4827_vm5 = vcmask 908288  }
 0x2ce   : > { %6742 = vmatmul.mubr.msk.bf16.vlgmr.msra.gmra.mxu0 %vm1175_vm14, %v6740_v39  ;;  %7322 = vmatpush3.bf16.msra.mxu1 %v2258_v34  ;;  %v2478_v59 = vsel %vm1179_vm13, %v2455_v18, 0 }
 0x2cf   : > { %2357 = vmatpush1.bf16.msra.mxu0 %v2252_v41  ;;  %6751 = vmatprep.subr.msk.bf16.mxu1 %vm1179_vm13, %v2452_v55 }
 0x2d0   : > { %6749 = vmatprep.subr.msk.bf16.mxu0 %vm1179_vm13, %v2450_v14  ;;  %v2653_v30 = vpop.permute.xlu1 %2652  ;;  %2374 = vmatprep.mubr.bf16.mxu0 %v10575_v35  ;;  %v2659_v61 = vpop.permute.xlu0 %2658 }
 0x2d1   : > { %7323 = vmatprep.mubr.msk.bf16.mxu1 %vm7749_vm15, %v8609_v31  ;;  %v2669_v8 = vsel %vm928_vm6, %v2653_v30, %v2655_v28 }
 0x2d2   : > { %v2680_v2 = vsel %vm1179_vm13, %v2669_v8, 0 }
 0x2d4   : > { %v2657_v33 = vpop.permute.xlu1 %2656 }
 0x2d5   : > { %7324 = vmatmul.mubr.msk.bf16.vlgmr.msra.gmra.mxu1 %vm1175_vm14, %v6740_v39  ;;  %v2663_v62 = vpop.permute.xlu0 %2662  ;;  %v2670_v37 = vsel %vm928_vm6, %v2655_v28, %v2657_v33  ;;  %v2671_v4 = vsel %vm928_vm6, %v2657_v33, %v2659_v61 }
 0x2d6   : > { %6746 = vmatmul.mubr.msk.bf16.vlgmr.msra.gmra.mxu0 %vm1175_vm14, %v6740_v39  ;;  %2536 = vmatpush1.bf16.msra.mxu1 %v2466_v44  ;;  %v2686_v24 = vsel %vm1179_vm13, %v2671_v4, 0 }
 0x2d7   : > { %2495 = vmatpush1.bf16.msra.mxu0 %v2460_v13  ;;  %2512 = vmatprep.mubr.bf16.mxu0 %v10575_v35 }
 0x2d8   : > { %6753 = vmatprep.subr.msk.bf16.mxu0 %vm1179_vm13, %v2454_v20  ;;  %v2661_v6 = vpop.permute.xlu1 %2660  ;;  %2553 = vmatprep.mubr.bf16.mxu1 %v10575_v35 }
 0x2d9   : > { %7327 = vmatprep.subr.bf16.mxu1 %v8609_v31  ;;  %v2672_v50 = vsel %vm928_vm6, %v2659_v61, %v2661_v6  ;;  %v2667_v3 = vpop.permute.xlu0 %2666  ;;  %v2673_v17 = vsel %vm928_vm6, %v2661_v6, %v2663_v62 }
 0x2da   : > { %v2692_v57 = vsel %vm1179_vm13, %v2673_v17, 0 }
 0x2dc   : > { %v2665_v27 = vpop.permute.xlu1 %2664 }
 0x2dd   : > { %6752 = vmatmul.mubr.msk.bf16.vlgmr.msra.gmra.mxu1 %vm1175_vm14, %v6748_v23  ;;  %v2674_v46 = vsel %vm928_vm6, %v2663_v62, %v2665_v27  ;;  %v2875_v9 = vpop.permute.xlu0 %2874  ;;  %v2675_v58 = vsel %vm928_vm6, %v2665_v27, %v2667_v3  ;;  %vm4890_vm6 = vcmask 900096  }
 0x2de   : > { %6750 = vmatmul.mubr.msk.bf16.vlgmr.msra.gmra.mxu0 %vm1175_vm14, %v6748_v23  ;;  %7328 = vmatpush3.bf16.msra.mxu1 %v2478_v59  ;;  %v2698_v29 = vsel %vm1179_vm13, %v2675_v58, 0 }
 0x2df   : > { %2577 = vmatpush1.bf16.msra.mxu0 %v2472_v12  ;;  %6759 = vmatprep.subr.msk.bf16.mxu1 %vm1179_vm13, %v2672_v50 }
 0x2e0   : > { %6757 = vmatprep.subr.msk.bf16.mxu0 %vm1179_vm13, %v2670_v37  ;;  %v2873_v49 = vpop.permute.xlu1 %2872  ;;  %2594 = vmatprep.mubr.bf16.mxu0 %v10575_v35 }
 0x2e1   : > { %7329 = vmatprep.mubr.msk.bf16.mxu1 %vm7749_vm15, %v8609_v31  ;;  %v2879_v54 = vpop.permute.xlu0 %2878  ;;  %v2889_v15 = vsel %vm990_vm7, %v2873_v49, %v2875_v9 }
 0x2e2   : > { %v2900_v22 = vsel %vm1179_vm13, %v2889_v15, 0 }
 0x2e4   : > { %v2877_v16 = vpop.permute.xlu1 %2876 }
 0x2e5   : > { %7330 = vmatmul.mubr.msk.bf16.vlgmr.msra.gmra.mxu1 %vm1175_vm14, %v6748_v23  ;;  %v2890_v40 = vsel %vm990_vm7, %v2875_v9, %v2877_v16  ;;  %v2891_v21 = vsel %vm990_vm7, %v2877_v16, %v2879_v54  ;;  %v2883_v11 = vpop.permute.xlu0 %2882 }
 0x2e6   : > { %6754 = vmatmul.mubr.msk.bf16.vlgmr.msra.gmra.mxu0 %vm1175_vm14, %v6748_v23  ;;  %2756 = vmatpush1.bf16.msra.mxu1 %v2686_v24  ;;  %v2906_v51 = vsel %vm1179_vm13, %v2891_v21, 0 }
 0x2e7   : > { %2715 = vmatpush1.bf16.msra.mxu0 %v2680_v2  ;;  %2732 = vmatprep.mubr.bf16.mxu0 %v10575_v35 }
 0x2e8   : > { %6761 = vmatprep.subr.msk.bf16.mxu0 %vm1179_vm13, %v2674_v46  ;;  %2773 = vmatprep.mubr.bf16.mxu1 %v10575_v35  ;;  %v2881_v0 = vpop.permute.xlu1 %2880 }
 0x2e9   : > { %7333 = vmatprep.subr.bf16.mxu1 %v8609_v31  ;;  %v2892_v5 = vsel %vm990_vm7, %v2879_v54, %v2881_v0  ;;  %v2887_v53 = vpop.permute.xlu0 %2886  ;;  %v2893_v45 = vsel %vm990_vm7, %v2881_v0, %v2883_v11 }
 0x2ea   : > { %v2912_v38 = vsel %vm1179_vm13, %v2893_v45, 0 }
 0x2ec   : > { %v2885_v32 = vpop.permute.xlu1 %2884 }
 0x2ed   : > { %6760 = vmatmul.mubr.msk.bf16.vlgmr.msra.gmra.mxu1 %vm1175_vm14, %v6756_v1  ;;  %v2894_v42 = vsel %vm990_vm7, %v2883_v11, %v2885_v32  ;;  %v2895_v60 = vsel %vm990_vm7, %v2885_v32, %v2887_v53  ;;  %vm5015_vm7 = vcmask 777216  }
 0x2ee   : > { %6758 = vmatmul.mubr.msk.bf16.vlgmr.msra.gmra.mxu0 %vm1175_vm14, %v6756_v1  ;;  %7334 = vmatpush3.bf16.msra.mxu1 %v2698_v29  ;;  %v2918_v47 = vsel %vm1179_vm13, %v2895_v60, 0 }
 0x2ef   : > { %2797 = vmatpush1.bf16.msra.mxu0 %v2692_v57  ;;  %6767 = vmatprep.subr.msk.bf16.mxu1 %vm1179_vm13, %v2892_v5 }
 0x2f0   : > { %6765 = vmatprep.subr.msk.bf16.mxu0 %vm1179_vm13, %v2890_v40  ;;  %2814 = vmatprep.mubr.bf16.mxu0 %v10575_v35 }
 0x2f1   : > { %7335 = vmatprep.mubr.msk.bf16.mxu1 %vm7749_vm15, %v8609_v31 }
 0x2f5   : > { %7336 = vmatmul.mubr.msk.bf16.vlgmr.msra.gmra.mxu1 %vm1175_vm14, %v6756_v1 }
 0x2f6   : > { %6762 = vmatmul.mubr.msk.bf16.vlgmr.msra.gmra.mxu0 %vm1175_vm14, %v6756_v1  ;;  %2976 = vmatpush1.bf16.msra.mxu1 %v2906_v51 }
 0x2f7   : > { %2935 = vmatpush1.bf16.msra.mxu0 %v2900_v22  ;;  %2952 = vmatprep.mubr.bf16.mxu0 %v10575_v35 }
 0x2f8   : > { %6769 = vmatprep.subr.msk.bf16.mxu0 %vm1179_vm13, %v2894_v42  ;;  %2993 = vmatprep.mubr.bf16.mxu1 %v10575_v35 }
 0x2f9   : > { %7339 = vmatprep.subr.bf16.mxu1 %v8609_v31 }
 0x2fd   : > { %6768 = vmatmul.mubr.msk.bf16.vlgmr.msra.gmra.mxu1 %vm1175_vm14, %v6764_v10 }
 0x2fe   : > { %6766 = vmatmul.mubr.msk.bf16.vlgmr.msra.gmra.mxu0 %vm1175_vm14, %v6764_v10  ;;  %7340 = vmatpush3.bf16.msra.mxu1 %v2918_v47 }
 0x2ff   : > { %3017 = vmatpush1.bf16.msra.mxu0 %v2912_v38  ;;  %3034 = vmatprep.mubr.bf16.mxu0 %v10575_v35 }
 0x300   : > { %7341 = vmatprep.mubr.msk.bf16.mxu1 %vm7749_vm15, %v8609_v31 }
 0x305   : > { %7342 = vmatmul.mubr.msk.bf16.vlgmr.msra.gmra.mxu1 %vm1175_vm14, %v6764_v10 }
 0x306   : > { %6770 = vmatmul.mubr.msk.bf16.vlgmr.msra.gmra.mxu0 %vm1175_vm14, %v6764_v10 }
 0x325   : > { %v1235_v19 = vpop.f32.mrf.mxu0 }
 0x327   : > { %v1237_v48 = vpop.f32.mrf.mxu0 }
 0x329   : > { %v1239_v63 = vpop.f32.mrf.mxu0 }
 0x32b   : > { %v1240_v39 = vpop.f32.mrf.mxu0 }
 0x33a   : > { %v1276_v52 = vpop.f32.mrf.mxu1 }
 0x33c   : > { %v1278_v36 = vpop.f32.mrf.mxu1 }
 0x33e   : > { %v1280_v34 = vpop.f32.mrf.mxu1 }
 0x340   : > { %v1281_v41 = vpop.f32.mrf.mxu1 }
 0x345   : > { %v1358_v55 = vpop.f32.mrf.mxu1 }
 0x346   : > { %v1317_v14 = vpop.f32.mrf.mxu0 }
 0x347   : > { %v7295_v28 = vpop.f32.mrf.mxu1 }
 0x348   : > { %v1319_v30 = vpop.f32.mrf.mxu0 }
 0x349   : > { %v1361_v43 = vpop.f32.mrf.mxu1 }
 0x34a   : > { %v1321_v56 = vpop.f32.mrf.mxu0 }
 0x34b   : > { %v7296_v33 = vpop.f32.mrf.mxu1 }
 0x34c   : > { %v1322_v31 = vpop.f32.mrf.mxu0 }
 0x34d   : > { %v1463_v44 = vpop.f32.mrf.mxu1 }
 0x34e   : > { %v1422_v61 = vpop.f32.mrf.mxu0  ;;  %v1464_v13 = vadd.f32 %v1463_v44, %v1276_v52 }
 0x34f   : > { %v1423_v20 = vadd.f32 %v1422_v61, %v1235_v19  ;;  %v1465_v6 = vpop.f32.mrf.mxu1 }
 0x350   : > { %v1424_v18 = vpop.f32.mrf.mxu0  ;;  %v1466_v23 = vadd.f32 %v1465_v6, %v1278_v36 }
 0x351   : > { %v1425_v7 = vadd.f32 %v1424_v18, %v1237_v48  ;;  %v1467_v62 = vpop.f32.mrf.mxu1 }
 0x352   : > { %v1426_v27 = vpop.f32.mrf.mxu0 }
 0x353   : > { %v1468_v59 = vpop.f32.mrf.mxu1 }
 0x354   : > { %v1427_v12 = vpop.f32.mrf.mxu0 }
 0x355   : > { %v1545_v50 = vpop.f32.mrf.mxu1 }
 0x356   : > { %v1504_v37 = vpop.f32.mrf.mxu0  ;;  %v1546_v49 = vadd.f32 %v1545_v50, %v1358_v55 }
 0x357   : > { %v1505_v3 = vadd.f32 %v1504_v37, %v1317_v14  ;;  %v7301_v4 = vpop.f32.mrf.mxu1 }
 0x358   : > { %v1506_v8 = vpop.f32.mrf.mxu0 }
 0x359   : > { %v1548_v24 = vpop.f32.mrf.mxu1  ;;  %v1507_v32 = vadd.f32 %v1506_v8, %v1319_v30 }
 0x35a   : > { %v1508_v16 = vpop.f32.mrf.mxu0 }
 0x35b   : > { %v7302_v2 = vpop.f32.mrf.mxu1 }
 0x35c   : > { %v1509_v46 = vpop.f32.mrf.mxu0 }
 0x35d   : > { %v1673_v9 = vpop.f32.mrf.mxu1 }
 0x35e   : > { %v1632_v58 = vpop.f32.mrf.mxu0  ;;  %v1763_v1 = vadd.f32 %v1673_v9, %v1464_v13 }
 0x35f   : > { %v1761_v17 = vadd.f32 %v1632_v58, %v1423_v20  ;;  %v1675_v0 = vpop.f32.mrf.mxu1 }
 0x360   : > { %v1634_v29 = vpop.f32.mrf.mxu0  ;;  %v1764_v19 = vadd.f32 %v1675_v0, %v1466_v23 }
 0x361   : > { %v1677_v54 = vpop.f32.mrf.mxu1  ;;  %v1762_v39 = vadd.f32 %v1634_v29, %v1425_v7 }
 0x362   : > { %v1636_v57 = vpop.f32.mrf.mxu0 }
 0x363   : > { %v1678_v5 = vpop.f32.mrf.mxu1 }
 0x364   : > { %v1637_v40 = vpop.f32.mrf.mxu0 }
 0x365   : > { %v1755_v21 = vpop.f32.mrf.mxu1 }
 0x366   : > { %v1714_v15 = vpop.f32.mrf.mxu0  ;;  %v1767_v11 = vadd.f32 %v1755_v21, %v1546_v49 }
 0x367   : > { %v1765_v51 = vadd.f32 %v1714_v15, %v1505_v3  ;;  %v7307_v22 = vpop.f32.mrf.mxu1 }
 0x368   : > { %v1716_v42 = vpop.f32.mrf.mxu0 }
 0x369   : > { %v1766_v53 = vadd.f32 %v1716_v42, %v1507_v32  ;;  %v1758_v60 = vpop.f32.mrf.mxu1 }
 0x36a   : > { %v1718_v10 = vpop.f32.mrf.mxu0 }
 0x36b   : > { %v7308_v45 = vpop.f32.mrf.mxu1 }
 0x36c   : > { %v1719_v47 = vpop.f32.mrf.mxu0 }
 0x36d   : > { %v1895_v38 = vpop.f32.mrf.mxu1 }
 0x36e   : > { %v1854_v48 = vpop.f32.mrf.mxu0  ;;  %v1985_v63 = vadd.f32 %v1895_v38, %v1763_v1 }
 0x36f   : > { %v1983_v52 = vadd.f32 %v1854_v48, %v1761_v17  ;;  %v1897_v36 = vpop.f32.mrf.mxu1 }
 0x370   : > { %v1856_v34 = vpop.f32.mrf.mxu0  ;;  %v8707_v41 = vadd.f32 %v1897_v36, %v1764_v19 }
 0x371   : > { %v1984_v55 = vadd.f32 %v1856_v34, %v1762_v39  ;;  %v1899_v14 = vpop.f32.mrf.mxu1 }
 0x372   : > { %v1858_v28 = vpop.f32.mrf.mxu0 }
 0x373   : > { %v1900_v30 = vpop.f32.mrf.mxu1 }
 0x374   : > { %v1859_v43 = vpop.f32.mrf.mxu0 }
 0x375   : > { %v1977_v56 = vpop.f32.mrf.mxu1 }
 0x376   : > { %v1936_v33 = vpop.f32.mrf.mxu0  ;;  %v1989_v31 = vadd.f32 %v1977_v56, %v1767_v11 }
 0x377   : > { %v8709_v44 = vadd.f32 %v1936_v33, %v1765_v51  ;;  %v7313_v61 = vpop.f32.mrf.mxu1 }
 0x378   : > { %v1938_v13 = vpop.f32.mrf.mxu0 }
 0x379   : > { %v8711_v20 = vadd.f32 %v1938_v13, %v1766_v53  ;;  %v1980_v6 = vpop.f32.mrf.mxu1 }
 0x37a   : > { %v1940_v18 = vpop.f32.mrf.mxu0 }
 0x37b   : > { %v7314_v23 = vpop.f32.mrf.mxu1 }
 0x37c   : > { %v1941_v7 = vpop.f32.mrf.mxu0 }
 0x37d   : > { %v2115_v62 = vpop.f32.mrf.mxu1 }
 0x37e   : > { %v2074_v27 = vpop.f32.mrf.mxu0  ;;  %v8713_v59 = vadd.f32 %v2115_v62, %v1985_v63 }
 0x37f   : > { %v8715_v12 = vadd.f32 %v2074_v27, %v1983_v52  ;;  %v2117_v50 = vpop.f32.mrf.mxu1 }
 0x380   : > { %v2076_v37 = vpop.f32.mrf.mxu0 }
 0x381   : > { %v8717_v49 = vadd.f32 %v2076_v37, %v1984_v55  ;;  %v2119_v3 = vpop.f32.mrf.mxu1 }
 0x382   : > { %v2078_v4 = vpop.f32.mrf.mxu0 }
 0x383   : > { %v2120_v8 = vpop.f32.mrf.mxu1 }
 0x384   : > { %v2079_v24 = vpop.f32.mrf.mxu0 }
 0x385   : > { %v2197_v16 = vpop.f32.mrf.mxu1 }
 0x386   : > { %v2156_v2 = vpop.f32.mrf.mxu0  ;;  %v8719_v46 = vadd.f32 %v2197_v16, %v1989_v31 }
 0x387   : > { %v7319_v9 = vpop.f32.mrf.mxu1 }
 0x388   : > { %v2158_v58 = vpop.f32.mrf.mxu0  ;;  %v2206_v9 = vadd.f32 %v2117_v50, %v8707_v41 }
 0x389   : > { %v2200_v1 = vpop.f32.mrf.mxu1 }
 0x38a   : > { %v2160_v17 = vpop.f32.mrf.mxu0 }
 0x38b   : > { %v7320_v0 = vpop.f32.mrf.mxu1 }
 0x38c   : > { %v2161_v29 = vpop.f32.mrf.mxu0 }
 0x38d   : > { %v2335_v54 = vpop.f32.mrf.mxu1 }
 0x38e   : > { %v2294_v57 = vpop.f32.mrf.mxu0 }
 0x38f   : > { %v2337_v5 = vpop.f32.mrf.mxu1 }
 0x390   : > { %v2296_v40 = vpop.f32.mrf.mxu0  ;;  %v2426_v0 = vadd.f32 %v2337_v5, %v2206_v9 }
 0x391   : > { %v2339_v21 = vpop.f32.mrf.mxu1 }
 0x392   : > { %v2298_v15 = vpop.f32.mrf.mxu0 }
 0x393   : > { %v2340_v11 = vpop.f32.mrf.mxu1  ;;  %v2207_v15 = vadd.f32 %v2156_v2, %v8709_v44 }
 0x394   : > { %v2299_v32 = vpop.f32.mrf.mxu0  ;;  %v2424_v11 = vadd.f32 %v2296_v40, %v8717_v49 }
 0x395   : > { %v8721_v51 = vpop.f32.mrf.mxu1  ;;  %v2425_v32 = vadd.f32 %v2335_v54, %v8713_v59 }
 0x396   : > { %v2376_v22 = vpop.f32.mrf.mxu0  ;;  %v2429_v54 = vadd.f32 %v8721_v51, %v8719_v46 }
 0x397   : > { %v7325_v42 = vpop.f32.mrf.mxu1 }
 0x398   : > { %v2378_v53 = vpop.f32.mrf.mxu0 }
 0x399   : > { %v2420_v60 = vpop.f32.mrf.mxu1 }
 0x39a   : > { %v2380_v10 = vpop.f32.mrf.mxu0 }
 0x39b   : > { %v7326_v45 = vpop.f32.mrf.mxu1  ;;  %v2208_v10 = vadd.f32 %v2158_v58, %v8711_v20 }
 0x39c   : > { %v2381_v47 = vpop.f32.mrf.mxu0  ;;  %v2423_v45 = vadd.f32 %v2294_v57, %v8715_v12 }
 0x39d   : > { %v2555_v38 = vpop.f32.mrf.mxu1 }
 0x39e   : > { %v2514_v19 = vpop.f32.mrf.mxu0  ;;  %v2645_v50 = vadd.f32 %v2555_v38, %v2425_v32  ;;  %v7466_v32 = vld [vmem:[%s10543_s9 + $0xa8] ss:$12 sps:$4 sm:$0xff]  }
 0x39f   : > { %v2557_v48 = vpop.f32.mrf.mxu1 }
 0x3a0   : > { %v2516_v63 = vpop.f32.mrf.mxu0  ;;  %v2646_v42 = vadd.f32 %v2557_v48, %v2426_v0 }
 0x3a1   : > { %v2559_v39 = vpop.f32.mrf.mxu1  ;;  %v2644_v41 = vadd.f32 %v2516_v63, %v2424_v11  ;;  %v3094_v63 = vpop.permute.xlu1 %3093  ;;  %v7465_v11 = vld [vmem:[%s10543_s9 + $0x22c] ss:$12 sps:$4 sm:$0xff]  }
 0x3a2   : > { %v2518_v52 = vpop.f32.mrf.mxu0  ;;  %v2427_v39 = vadd.f32 %v2376_v22, %v2207_v15  ;;  %v7463_v15 = vld [vmem:[%s10543_s9 + $0x228] ss:$12 sps:$4 sm:$0xff]   ;;  %4303 = vmatprep.subr.bf16.mxu1 %v7465_v11  ;;  %v7537_v11 = vld [vmem:[%s10543_s9 + $0x28c] ss:$12 sps:$4 sm:$0xff]  }
 0x3a3   : > { %v2560_v36 = vpop.f32.mrf.mxu1  ;;  %4304 = vmatpush1.bf16.msra.mxu1 %v7463_v15  ;;  %v7532_v15 = vld [vmem:[%s10543_s9 + $0x120] ss:$12 sps:$4 sm:$0xff]  }
 0x3a4   : > { %v2519_v34 = vpop.f32.mrf.mxu0  ;;  %v2428_v36 = vadd.f32 %v2378_v53, %v2208_v10  ;;  %v7474_v10 = vld [vmem:[%s10543_s9 + $0x94] ss:$12 sps:$4 sm:$0xff]  }
 0x3a5   : > { %v2637_v55 = vpop.f32.mrf.mxu1  ;;  %v2643_v34 = vadd.f32 %v2514_v19, %v2423_v45  ;;  %v7469_v45 = vld [vmem:[%s10543_s9 + $0x210] ss:$12 sps:$4 sm:$0xff]  }
 0x3a6   : > { %v2596_v14 = vpop.f32.mrf.mxu0 }
 0x3a7   : > { %v7331_v28 = vpop.f32.mrf.mxu1  ;;  %v2647_v44 = vadd.f32 %v2596_v14, %v2427_v39  ;;  %v7477_v39 = vld [vmem:[%s10543_s9 + $0x1fc] ss:$12 sps:$4 sm:$0xff]  }
 0x3a8   : > { %v2598_v30 = vpop.f32.mrf.mxu0 }
 0x3a9   : > { %v2640_v43 = vpop.f32.mrf.mxu1  ;;  %v2648_v20 = vadd.f32 %v2598_v30, %v2428_v36  ;;  %v7486_v36 = vld [vmem:[%s10543_s9 + $0x64] ss:$12 sps:$4 sm:$0xff]  }
 0x3aa   : > { %v2600_v56 = vpop.f32.mrf.mxu0  ;;  %v2649_v43 = vadd.f32 %v2637_v55, %v2429_v54  ;;  %v7498_v54 = vld [vmem:[%s10543_s9 + $0x34] ss:$12 sps:$4 sm:$0xff]  }
 0x3ab   : > { %v7332_v33 = vpop.f32.mrf.mxu1 }
 0x3ac   : > { %v2601_v31 = vpop.f32.mrf.mxu0 }
 0x3ad   : > { %v2775_v61 = vpop.f32.mrf.mxu1 }
 0x3ae   : > { %v2734_v13 = vpop.f32.mrf.mxu0  ;;  %v2865_v49 = vadd.f32 %v2775_v61, %v2645_v50  ;;  %v7475_v50 = vld [vmem:[%s10543_s9 + $0x1f8] ss:$12 sps:$4 sm:$0xff]  }
 0x3af   : > { %v2777_v6 = vpop.f32.mrf.mxu1  ;;  %v2863_v12 = vadd.f32 %v2734_v13, %v2643_v34  ;;  %v7481_v34 = vld [vmem:[%s10543_s9 + $0x1e0] ss:$12 sps:$4 sm:$0xff]  }
 0x3b0   : > { %v2736_v18 = vpop.f32.mrf.mxu0  ;;  %v2866_v52 = vadd.f32 %v2777_v6, %v2646_v42  ;;  %v7468_v42 = vld [vmem:[%s10543_s9 + $0xac] ss:$12 sps:$4 sm:$0xff]  }
 0x3b1   : > { %v2779_v23 = vpop.f32.mrf.mxu1  ;;  %v2864_v2 = vadd.f32 %v2736_v18, %v2644_v41  ;;  %4262 = vmatprep.subr.bf16.mxu0 %v7468_v42  ;;  %v7480_v41 = vld [vmem:[%s10543_s9 + $0x7c] ss:$12 sps:$4 sm:$0xff]  }
 0x3b2   : > { %v2738_v7 = vpop.f32.mrf.mxu0  ;;  %4263 = vmatpush1.bf16.msra.mxu0 %v7466_v32  ;;  %v7540_v32 = vld [vmem:[%s10543_s9 + $0x10c] ss:$12 sps:$4 sm:$0xff]   ;;  %v7535_v42 = vld [vmem:[%s10543_s9 + $0x288] ss:$12 sps:$4 sm:$0xff]  }
 0x3b3   : > { %v2780_v62 = vpop.f32.mrf.mxu1  ;;  %4264 = vmatprep.subr.bf16.mxu0 %v7474_v10  ;;  %v7543_v10 = vld [vmem:[%s10543_s9 + $0x274] ss:$12 sps:$4 sm:$0xff]  }
 0x3b4   : > { %v2739_v27 = vpop.f32.mrf.mxu0 }
 0x3b5   : > { %v2857_v37 = vpop.f32.mrf.mxu1 }
 0x3b6   : > { %v2816_v3 = vpop.f32.mrf.mxu0  ;;  %v2869_v61 = vadd.f32 %v2857_v37, %v2649_v43  ;;  %v7505_v43 = vld [vmem:[%s10543_s9 + $0x180] ss:$12 sps:$4 sm:$0xff]  }
 0x3b7   : > { %v7337_v4 = vpop.f32.mrf.mxu1  ;;  %v2867_v57 = vadd.f32 %v2816_v3, %v2647_v44  ;;  %v7489_v44 = vld [vmem:[%s10543_s9 + $0x1cc] ss:$12 sps:$4 sm:$0xff]  }
 0x3b8   : > { %v2818_v8 = vpop.f32.mrf.mxu0 }
 0x3b9   : > { %v2860_v24 = vpop.f32.mrf.mxu1  ;;  %v2868_v19 = vadd.f32 %v2818_v8, %v2648_v20  ;;  %v7493_v20 = vld [vmem:[%s10543_s9 + $0x1b0] ss:$12 sps:$4 sm:$0xff]  }
 0x3ba   : > { %v2820_v16 = vpop.f32.mrf.mxu0 }
 0x3bb   : > { %v7338_v1 = vpop.f32.mrf.mxu1 }
 0x3bc   : > { %v2821_v17 = vpop.f32.mrf.mxu0 }
 0x3bd   : > { %v2995_v29 = vpop.f32.mrf.mxu1 }
 0x3be   : > { %v2954_v21 = vpop.f32.mrf.mxu0  ;;  %v3085_v48 = vadd.f32 %v2995_v29, %v2865_v49  ;;  %v7487_v49 = vld [vmem:[%s10543_s9 + $0x1c8] ss:$12 sps:$4 sm:$0xff]  }
 0x3bf   : > { %v2997_v60 = vpop.f32.mrf.mxu1  ;;  %v3083_v56 = vadd.f32 %v2954_v21, %v2863_v12  ;;  %v7501_v12 = vld [vmem:[%s10543_s9 + $0x19c] ss:$12 sps:$4 sm:$0xff]  }
 0x3c0   : > { %v2956_v47 = vpop.f32.mrf.mxu0  ;;  %v3086_v40 = vadd.f32 %v2997_v60, %v2866_v52  ;;  %v8735_v46 = vadd.f32 %v3094_v63, %v3085_v48  ;;  %v7471_v60 = vld [vmem:[%s10543_s9 + $0x214] ss:$12 sps:$4 sm:$0xff]   ;;  %v7478_v52 = vld [vmem:[%s10543_s9 + $0x78] ss:$12 sps:$4 sm:$0xff]  }
 0x3c1   : > { %v2999_v5 = vpop.f32.mrf.mxu1  ;;  %v3084_v22 = vadd.f32 %v2956_v47, %v2864_v2  ;;  %v8739_v55 = vadd.f32 %v3094_v63, %v3083_v56  ;;  %4305 = vmatprep.subr.bf16.mxu1 %v7471_v60  ;;  %v7472_v47 = vld [vmem:[%s10543_s9 + $0x90] ss:$12 sps:$4 sm:$0xff]   ;;  %v7492_v2 = vld [vmem:[%s10543_s9 + $0x4c] ss:$12 sps:$4 sm:$0xff]   ;;  %v7538_v60 = vld [vmem:[%s10543_s9 + $0x108] ss:$12 sps:$4 sm:$0xff]  }
 0x3c2   : > { %v2958_v28 = vpop.f32.mrf.mxu0  ;;  %v8731_v14 = vadd.f32 %v3094_v63, %v3086_v40  ;;  %v3105_v24 = vmax.f32 %v8735_v46, 0.0  ;;  %4306 = vmatpush1.bf16.msra.mxu1 %v7469_v45  ;;  %4265 = vmatpush1.bf16.msra.mxu0 %v7472_v47  ;;  %v7483_v5 = vld [vmem:[%s10543_s9 + $0x1e4] ss:$12 sps:$4 sm:$0xff]   ;;  %v7490_v40 = vld [vmem:[%s10543_s9 + $0x48] ss:$12 sps:$4 sm:$0xff]  }
 0x3c3   : > { %v3000_v59 = vpop.f32.mrf.mxu1  ;;  %v8733_v18 = vadd.f32 %v3094_v63, %v3084_v22  ;;  %v3103_v17 = vmax.f32 %v8739_v55, 0.0  ;;  %4307 = vmatprep.subr.bf16.mxu1 %v7477_v39  ;;  %4266 = vmatprep.subr.bf16.mxu0 %v7480_v41  ;;  %v7484_v28 = vld [vmem:[%s10543_s9 + $0x60] ss:$12 sps:$4 sm:$0xff]   ;;  %v7499_v22 = vld [vmem:[%s10543_s9 + $0x198] ss:$12 sps:$4 sm:$0xff]  }
 0x3c4   : > { %v2959_v58 = vpop.f32.mrf.mxu0  ;;  %v3106_v62 = vmax.f32 %v8731_v14, 0.0  ;;  %v7495_v59 = vld [vmem:[%s10543_s9 + $0x1b4] ss:$12 sps:$4 sm:$0xff]   ;;  %v7502_v48 = vld [vmem:[%s10543_s9 + $0x18] ss:$12 sps:$4 sm:$0xff]  }
 0x3c5   : > { %v3077_v38 = vpop.f32.mrf.mxu1  ;;  %v3104_v8 = vmax.f32 %v8733_v18, 0.0  ;;  %v7496_v58 = vld [vmem:[%s10543_s9 + $0x30] ss:$12 sps:$4 sm:$0xff]   ;;  %v7516_v56 = vld [vmem:[%s10543_s9 + $0x16c] ss:$12 sps:$4 sm:$0xff]   ;;  %v3407_v14 = vld [vmem:[%s10543_s9 + $0x4e0] sm:$0xff] }
 0x3c6   : > { %v3036_v53 = vpop.f32.mrf.mxu0  ;;  %v3089_v7 = vadd.f32 %v3077_v38, %v2869_v61  ;;  %4308 = vmatpush1.bf16.msra.mxu1 %v7475_v50  ;;  %4267 = vmatpush1.bf16.msra.mxu0 %v7478_v52  ;;  %v7507_v38 = vld [vmem:[%s10543_s9 + $0x184] ss:$12 sps:$4 sm:$0xff]   ;;  %v7519_v61 = vld [vmem:[%s10543_s9 + $0x2d4] ss:$12 sps:$4 sm:$0xff]   ;;  %v7549_v50 = vld [vmem:[%s10543_s9 + $0x25c] ss:$12 sps:$4 sm:$0xff]  }
 0x3c7   : > { %v3087_v33 = vadd.f32 %v3036_v53, %v2867_v57  ;;  %v7343_v31 = vpop.f32.mrf.mxu1  ;;  %v7448_v29 = vpack.i.bf16 %v3103_v17, %v3104_v8  ;;  %4309 = vmatprep.subr.bf16.mxu1 %v7483_v5  ;;  %4268 = vmatprep.subr.bf16.mxu0 %v7486_v36  ;;  %v7504_v57 = vld [vmem:[%s10543_s9 + $0x1c] ss:$12 sps:$4 sm:$0xff]   ;;  %v7508_v53 = vld [vmem:[%s10543_s9] ss:$12 sps:$4 sm:$0xff]   ;;  %v7547_v41 = vld [vmem:[%s10543_s9 + $0x258] ss:$12 sps:$4 sm:$0xff]  }
 0x3c8   : > { %v3038_v6 = vpop.f32.mrf.mxu0  ;;  %v8752_v1 = vadd.f32 %v3094_v63, %v3089_v7  ;;  %v7514_v31 = vld [vmem:[%s10543_s9 + $0x168] ss:$12 sps:$4 sm:$0xff]   ;;  %v7541_v47 = vld [vmem:[%s10543_s9 + $0x270] ss:$12 sps:$4 sm:$0xff]   ;;  %v7550_v52 = vld [vmem:[%s10543_s9 + $0xd8] ss:$12 sps:$4 sm:$0xff]  }
 0x3c9   : > { %v8737_v51 = vadd.f32 %v3094_v63, %v3087_v33  ;;  %v3088_v30 = vadd.f32 %v3038_v6, %v2868_v19  ;;  %v3080_v13 = vpop.f32.mrf.mxu1  ;;  %v7513_v19 = vld [vmem:[%s10543_s9 + $0x2ec] ss:$12 sps:$4 sm:$0xff]   ;;  %v7511_v33 = vld [vmem:[%s10543_s9 + $0x2e8] ss:$12 sps:$4 sm:$0xff]   ;;  %v7544_v39 = vld [vmem:[%s10543_s9 + $0xf0] ss:$12 sps:$4 sm:$0xff]  }
 0x3ca   : > { %v3040_v23 = vpop.f32.mrf.mxu0  ;;  %v3109_v21 = vmax.f32 %v8752_v1, 0.0  ;;  %4310 = vmatpush1.bf16.msra.mxu1 %v7481_v34  ;;  %4269 = vmatpush1.bf16.msra.mxu0 %v7484_v28  ;;  %v7522_v6 = vld [vmem:[%s10543_s9 + $0x154] ss:$12 sps:$4 sm:$0xff]   ;;  %v7520_v13 = vld [vmem:[%s10543_s9 + $0x150] ss:$12 sps:$4 sm:$0xff]  }
 0x3cb   : > { %v3107_v27 = vmax.f32 %v8737_v51, 0.0  ;;  %v8743_v3 = vadd.f32 %v3094_v63, %v3088_v30  ;;  %v7344_v37 = vpop.f32.mrf.mxu1  ;;  %4311 = vmatprep.subr.bf16.mxu1 %v7489_v44  ;;  %4270 = vmatprep.subr.bf16.mxu0 %v7492_v2  ;;  %v7510_v63 = vld [vmem:[%s10543_s9 + $0x4] ss:$12 sps:$4 sm:$0xff]   ;;  %v7525_v23 = vld [vmem:[%s10543_s9 + $0x2bc] ss:$12 sps:$4 sm:$0xff]  }
 0x3cc   : > { %v3041_v4 = vpop.f32.mrf.mxu0  ;;  %v7517_v30 = vld [vmem:[%s10543_s9 + $0x2d0] ss:$12 sps:$4 sm:$0xff]   ;;  %v7523_v37 = vld [vmem:[%s10543_s9 + $0x2b8] ss:$12 sps:$4 sm:$0xff]   ;;  %v7546_v45 = vld [vmem:[%s10543_s9 + $0xf4] ss:$12 sps:$4 sm:$0xff]  }
 0x3cd   : > { %v7438_v16 = vpack.i.bf16 %v3107_v27, %v3106_v62  ;;  %v3108_v9 = vmax.f32 %v8743_v3, 0.0  ;;  %v7528_v7 = vld [vmem:[%s10543_s9 + $0x13c] ss:$12 sps:$4 sm:$0xff]   ;;  %v7526_v4 = vld [vmem:[%s10543_s9 + $0x138] ss:$12 sps:$4 sm:$0xff]  }
 0x3ce   : > { %4312 = vmatpush1.bf16.msra.mxu1 %v7487_v49  ;;  %4271 = vmatpush1.bf16.msra.mxu0 %v7490_v40  ;;  %v7552_v5 = vld [vmem:[%s10543_s9 + $0xdc] ss:$12 sps:$4 sm:$0xff]   ;;  %v7562_v51 = vld [vmem:[%s10543_s9 + $0x3ac] ss:$12 sps:$4 sm:$0xff]  }
 0x3cf   : > { %v7443_v0 = vpack.i.bf16 %v3105_v24, %v3108_v9  ;;  %7439 = vrot.lane.b32.xlu0 %v7438_v16, %s7739_s15  ;;  %4313 = vmatprep.subr.bf16.mxu1 %v7495_v59  ;;  %v7531_v16 = vld [vmem:[%s10543_s9 + $0x2a4] ss:$12 sps:$4 sm:$0xff]  }
 0x3d0   : > { %4272 = vmatprep.subr.bf16.mxu0 %v7498_v54  ;;  %v7553_v54 = vld [vmem:[%s10543_s9 + $0x240] ss:$12 sps:$4 sm:$0xff]  }
 0x3d1   : > { %7444 = vrot.lane.b32.xlu1 %v7443_v0, %s7739_s15  ;;  %v7534_v0 = vld [vmem:[%s10543_s9 + $0x124] ss:$12 sps:$4 sm:$0xff]  }
 0x3d2   : > { %4314 = vmatpush1.bf16.msra.mxu1 %v7493_v20  ;;  %4273 = vmatpush1.bf16.msra.mxu0 %v7496_v58  ;;  %v7555_v20 = vld [vmem:[%s10543_s9 + $0x244] ss:$12 sps:$4 sm:$0xff]  }
 0x3d3   : > { %7449 = vrot.lane.b32.xlu0 %v7448_v29, %s7739_s15  ;;  %4315 = vmatprep.subr.bf16.mxu1 %v7501_v12  ;;  %v7529_v29 = vld [vmem:[%s10543_s9 + $0x2a0] ss:$12 sps:$4 sm:$0xff]  }
 0x3d4   : > { %4274 = vmatprep.subr.bf16.mxu0 %v7504_v57 }
 0x3d5   : > { %3129 = vrot.lane.b32.xlu1 %v3109_v21, %s7739_s15 }
 0x3d6   : > { %4316 = vmatpush1.bf16.msra.mxu1 %v7499_v22  ;;  %4275 = vmatpush1.bf16.msra.mxu0 %v7502_v48  ;;  %v7556_v48 = vld [vmem:[%s10543_s9 + $0xc0] ss:$12 sps:$4 sm:$0xff]  }
 0x3d7   : > { %4317 = vmatprep.subr.bf16.mxu1 %v7507_v38  ;;  %4276 = vmatprep.subr.bf16.mxu0 %v7510_v63  ;;  %v7558_v38 = vld [vmem:[%s10543_s9 + $0xc4] ss:$12 sps:$4 sm:$0xff]  }
 0x3da   : > { %4318 = vmatpush1.bf16.msra.mxu1 %v7505_v43  ;;  %4277 = vmatpush1.bf16.msra.mxu0 %v7508_v53 }
 0x3db   : > { %4319 = vmatprep.subr.bf16.mxu1 %v7513_v19  ;;  %4278 = vmatprep.subr.bf16.mxu0 %v7516_v56 }
 0x3de   : > { %4320 = vmatpush2.bf16.msra.mxu1 %v7511_v33  ;;  %4279 = vmatpush2.bf16.msra.mxu0 %v7514_v31 }
 0x3df   : > { %4321 = vmatprep.subr.bf16.mxu1 %v7519_v61  ;;  %4280 = vmatprep.subr.bf16.mxu0 %v7522_v6 }
 0x3e2   : > { %4322 = vmatpush2.bf16.msra.mxu1 %v7517_v30  ;;  %4281 = vmatpush2.bf16.msra.mxu0 %v7520_v13 }
 0x3e3   : > { %4323 = vmatprep.subr.bf16.mxu1 %v7525_v23  ;;  %4282 = vmatprep.subr.bf16.mxu0 %v7528_v7  ;;  %v6928_v23 = vcombine.low %v3407_v14, %v3407_v14 }
 0x3e6   : > { %4324 = vmatpush2.bf16.msra.mxu1 %v7523_v37  ;;  %4283 = vmatpush2.bf16.msra.mxu0 %v7526_v4 }
 0x3e7   : > { %4325 = vmatprep.subr.bf16.mxu1 %v7531_v16  ;;  %4284 = vmatprep.subr.bf16.mxu0 %v7534_v0 }
 0x3ea   : > { %4326 = vmatpush2.bf16.msra.mxu1 %v7529_v29  ;;  %4285 = vmatpush2.bf16.msra.mxu0 %v7532_v15 }
 0x3eb   : > { %4327 = vmatprep.subr.bf16.mxu1 %v7537_v11  ;;  %4286 = vmatprep.subr.bf16.mxu0 %v7540_v32 }
 0x3ee   : > { %4328 = vmatpush2.bf16.msra.mxu1 %v7535_v42  ;;  %4287 = vmatpush2.bf16.msra.mxu0 %v7538_v60 }
 0x3ef   : > { %4329 = vmatprep.subr.bf16.mxu1 %v7543_v10  ;;  %4288 = vmatprep.subr.bf16.mxu0 %v7546_v45  ;;  %v7560_v45 = vld [vmem:[%s10543_s9 + $0x3a8] ss:$12 sps:$4 sm:$0xff]  }
 0x3f2   : > { %4330 = vmatpush2.bf16.msra.mxu1 %v7541_v47  ;;  %4289 = vmatpush2.bf16.msra.mxu0 %v7544_v39  ;;  %v4254_v47 = vsel %vm1179_vm13, %v6928_v23, 0  ;;  %v7566_v39 = vld [vmem:[%s10543_s9 + $0x4cc] ss:$12 sps:$4 sm:$0xff]  }
 0x3f3   : > { %4331 = vmatprep.subr.bf16.mxu1 %v7549_v50  ;;  %4290 = vmatprep.subr.bf16.mxu0 %v7552_v5  ;;  %v7569_v50 = vld [vmem:[%s10543_s9 + $0x394] ss:$12 sps:$4 sm:$0xff]   ;;  %v7617_v23 = vld [vmem:[%s10543_s9 + $0x38] ss:$12 sps:$4 sm:$0xff]  }
 0x3f4   : > { %v7564_v5 = vld [vmem:[%s10543_s9 + $0x4c8] ss:$12 sps:$4 sm:$0xff]  }
 0x3f6   : > { %4332 = vmatpush2.bf16.msra.mxu1 %v7547_v41  ;;  %4291 = vmatpush2.bf16.msra.mxu0 %v7550_v52 }
 0x3f7   : > { %4333 = vmatprep.subr.bf16.mxu1 %v7555_v20  ;;  %4292 = vmatprep.subr.bf16.mxu0 %v7558_v38  ;;  %v7579_v20 = vld [vmem:[%s10543_s9 + $0x360] ss:$12 sps:$4 sm:$0xff]   ;;  %v7588_v38 = vld [vmem:[%s10543_s9 + $0x170] ss:$12 sps:$4 sm:$0xff]  }
 0x3fa   : > { %4334 = vmatpush2.bf16.msra.mxu1 %v7553_v54  ;;  %4293 = vmatpush2.bf16.msra.mxu0 %v7556_v48  ;;  %v7576_v54 = vld [vmem:[%s10543_s9 + $0x498] ss:$12 sps:$4 sm:$0xff]   ;;  %v7585_v48 = vld [vmem:[%s10543_s9 + $0x348] ss:$12 sps:$4 sm:$0xff]  }
 0x3fb   : > { %4344 = vmatprep.subr.bf16.mxu0 %v7562_v51  ;;  %v7597_v51 = vld [vmem:[%s10543_s9 + $0x98] ss:$12 sps:$4 sm:$0xff]  }
 0x441   : > { %v7440_v36 = vpop.permute.xlu0 %7439 }
 0x442   : > { %v7442_v34 = vunpack.i.h.bf16 %v7440_v36  ;;  %v7441_v28 = vunpack.i.l.bf16 %v7440_v36 }
 0x443   : > { %v7445_v44 = vpop.permute.xlu1 %7444 }
 0x444   : > { %v3134_v2 = vsel %vm557_vm0, %v7441_v28, %v7442_v34  ;;  %v7447_v49 = vunpack.i.h.bf16 %v7445_v44  ;;  %v7446_v40 = vunpack.i.l.bf16 %v7445_v44  ;;  %v7575_v44 = vld [vmem:[%s10543_s9 + $0x37c] ss:$12 sps:$4 sm:$0xff]  }
 0x445   : > { %v7450_v59 = vpop.permute.xlu0 %7449  ;;  %v3147_v63 = vmax.f32 %v3106_v62, %v3134_v2  ;;  %v7570_v2 = vld [vmem:[%s10543_s9 + $0x4b0] ss:$12 sps:$4 sm:$0xff]  }
 0x446   : > { %v3133_v58 = vsel %vm557_vm0, %v7447_v49, %v7441_v28  ;;  %v3135_v12 = vsel %vm557_vm0, %v7442_v34, %v7446_v40  ;;  %v7452_v57 = vunpack.i.h.bf16 %v7450_v59  ;;  %v7451_v22 = vunpack.i.l.bf16 %v7450_v59  ;;  %v7567_v34 = vld [vmem:[%s10543_s9 + $0x390] ss:$12 sps:$4 sm:$0xff]   ;;  %v7572_v28 = vld [vmem:[%s10543_s9 + $0x4b4] ss:$12 sps:$4 sm:$0xff]  }
 0x447   : > { %v8969_v43 = vmax.f32 %v3107_v27, %v3135_v12  ;;  %v3146_v19 = vmax.f32 %v3105_v24, %v3133_v58  ;;  %v6929_v27 = vcombine.high %v3407_v14, %v3407_v14  ;;  %v3130_v46 = vpop.permute.xlu1 %3129  ;;  %v7581_v59 = vld [vmem:[%s10543_s9 + $0x364] ss:$12 sps:$4 sm:$0xff]   ;;  %v7587_v12 = vld [vmem:[%s10543_s9 + $0x34c] ss:$12 sps:$4 sm:$0xff]   ;;  %v7596_v14 = vld [vmem:[%s10543_s9 + $0x31c] ss:$12 sps:$4 sm:$0xff]  }
 0x448   : > { %v3132_v53 = vsel %vm557_vm0, %v7451_v22, %v7447_v49  ;;  %v3131_v62 = vsel %vm557_vm0, %v7452_v57, %v7451_v22  ;;  %v3136_v24 = vsel %vm557_vm0, %v7446_v40, %v3130_v46  ;;  %v8992_v31 = vmax.f32 %v3109_v21, %v3130_v46  ;;  %v7573_v49 = vld [vmem:[%s10543_s9 + $0x378] ss:$12 sps:$4 sm:$0xff]   ;;  %v7578_v40 = vld [vmem:[%s10543_s9 + $0x49c] ss:$12 sps:$4 sm:$0xff]   ;;  %v7582_v57 = vld [vmem:[%s10543_s9 + $0x480] ss:$12 sps:$4 sm:$0xff]  }
 0x449   : > { %v3145_v56 = vmax.f32 %v3104_v8, %v3132_v53  ;;  %v7458_v33 = vpack.i.bf16 %v8969_v43, %v3147_v63  ;;  %6931 = vmatprep.subr.msk.bf16.mxu1 %vm1179_vm13, %v6929_v27  ;;  %v3144_v8 = vmax.f32 %v3103_v17, %v3131_v62  ;;  %v3149_v61 = vmax.f32 %v3108_v9, %v3136_v24  ;;  %v7584_v58 = vld [vmem:[%s10543_s9 + $0x484] ss:$12 sps:$4 sm:$0xff]   ;;  %v7598_v27 = vld [vmem:[%s10543_s9 + $0x140] ss:$12 sps:$4 sm:$0xff]   ;;  %v7603_v24 = vld [vmem:[%s10543_s9 + $0x128] ss:$12 sps:$4 sm:$0xff]  }
 0x44a   : > { %v7592_v53 = vld [vmem:[%s10543_s9 + $0xb0] ss:$12 sps:$4 sm:$0xff]   ;;  %v7594_v62 = vld [vmem:[%s10543_s9 + $0x318] ss:$12 sps:$4 sm:$0xff]  }
 0x44b   : > { %7459 = vrot.lane.b32.xlu0 %v7458_v33, %s10577_s28  ;;  %v7453_v18 = vpack.i.bf16 %v3145_v56, %v3146_v19  ;;  %v7593_v33 = vld [vmem:[%s10543_s9 + $0x158] ss:$12 sps:$4 sm:$0xff]  }
 0x44c   : > { %v7601_v46 = vld [vmem:[%s10543_s9 + $0x304] ss:$12 sps:$4 sm:$0xff]  }
 0x44d   : > { %7454 = vrot.lane.b32.xlu1 %v7453_v18, %s10577_s28  ;;  %v7602_v18 = vld [vmem:[%s10543_s9 + $0x80] ss:$12 sps:$4 sm:$0xff]  }
 0x44f   : > { %3158 = vrot.lane.b32.xlu0 %v3144_v8, %s10577_s28 }
 0x451   : > { %3170 = vrot.lane.b32.xlu1 %v8992_v31, %s10577_s28 }
 0x453   : > { %3168 = vrot.lane.b32.xlu0 %v3149_v61, %s10577_s28  ;;  %s10563_s28 = smov 95  }
 0x4bd   : > { %v9000_v55 = vpop.permute.xlu0 %7459 }
 0x4be   : > { %v7462_v17 = vunpack.i.h.bf16 %v9000_v55  ;;  %v7461_v6 = vunpack.i.l.bf16 %v9000_v55  ;;  %v7645_v55 = vld [vmem:[%s10543_s9 + $0x470] ss:$12 sps:$4 sm:$0xff]  }
 0x4bf   : > { %v7455_v30 = vpop.permute.xlu1 %7454 }
 0x4c0   : > { %v7457_v1 = vunpack.i.h.bf16 %v7455_v30  ;;  %v7456_v21 = vunpack.i.l.bf16 %v7455_v30  ;;  %v3175_v13 = vsel %vm680_vm2, %v7461_v6, %v7462_v17  ;;  %v7608_v30 = vld [vmem:[%s10543_s9 + $0x110] ss:$12 sps:$4 sm:$0xff]  }
 0x4c1   : > { %v3159_v3 = vpop.permute.xlu0 %3158  ;;  %v3188_v9 = vmax.f32 %v3147_v63, %v3175_v13  ;;  %v7591_v63 = vld [vmem:[%s10543_s9 + $0x334] ss:$12 sps:$4 sm:$0xff]   ;;  %v7609_v13 = vld [vmem:[%s10543_s9 + $0x450] ss:$12 sps:$4 sm:$0xff]  }
 0x4c2   : > { %v3174_v7 = vsel %vm680_vm2, %v7456_v21, %v7461_v6  ;;  %v3172_v37 = vsel %vm680_vm2, %v3159_v3, %v7457_v1  ;;  %v3173_v4 = vsel %vm680_vm2, %v7457_v1, %v7456_v21  ;;  %v7604_v6 = vld [vmem:[%s10543_s9 + $0x468] ss:$12 sps:$4 sm:$0xff]   ;;  %v7612_v21 = vld [vmem:[%s10543_s9 + $0x50] ss:$12 sps:$4 sm:$0xff]   ;;  %v7613_v3 = vld [vmem:[%s10543_s9 + $0xf8] ss:$12 sps:$4 sm:$0xff]  }
 0x4c3   : > { %v3187_v16 = vmax.f32 %v3146_v19, %v3174_v7  ;;  %v3185_v0 = vmax.f32 %v3144_v8, %v3172_v37  ;;  %v9010_v29 = vpack.c.bf16 %v3188_v9, %v3188_v9  ;;  %v3186_v15 = vmax.f32 %v3145_v56, %v3173_v4  ;;  %v3171_v32 = vpop.permute.xlu1 %3170  ;;  %v7589_v56 = vld [vmem:[%s10543_s9 + $0x330] ss:$12 sps:$4 sm:$0xff]   ;;  %v7599_v8 = vld [vmem:[%s10543_s9 + $0x300] ss:$12 sps:$4 sm:$0xff]   ;;  %v7614_v7 = vld [vmem:[%s10543_s9 + $0x438] ss:$12 sps:$4 sm:$0xff]  }
 0x4c4   : > { %v3191_v22 = vmax.f32 %v8992_v31, %v3171_v32  ;;  %v7606_v31 = vld [vmem:[%s10543_s9 + $0x46c] ss:$12 sps:$4 sm:$0xff]   ;;  %v7611_v1 = vld [vmem:[%s10543_s9 + $0x454] ss:$12 sps:$4 sm:$0xff]   ;;  %v7616_v9 = vld [vmem:[%s10543_s9 + $0x43c] ss:$12 sps:$4 sm:$0xff]  }
 0x4c5   : > { %v9012_v11 = vpack.c.bf16 %v3185_v0, %v3185_v0  ;;  %v9014_v42 = vpop.permute.xlu0 %3168  ;;  %4335 = vmatprep.mubr.bf16.mxu1 %v9010_v29  ;;  %v3193_v60 = vpack.c.bf16 %v3186_v15, %v3186_v15  ;;  %v9017_v10 = vpack.c.bf16 %v3187_v16, %v3187_v16  ;;  %v7618_v37 = vld [vmem:[%s10543_s9 + $0xe0] ss:$12 sps:$4 sm:$0xff]   ;;  %v7621_v4 = vld [vmem:[%s10543_s9 + $0x424] ss:$12 sps:$4 sm:$0xff]   ;;  %v7623_v15 = vld [vmem:[%s10543_s9 + $0xc8] ss:$12 sps:$4 sm:$0xff]  }
 0x4c6   : > { %v3177_v41 = vsel %vm680_vm2, %v9014_v42, %v3171_v32  ;;  %v9089_v19 = vpack.c.bf16 %v3191_v22, %v3191_v22  ;;  %v7622_v16 = vld [vmem:[%s10543_s9 + $0x20] ss:$12 sps:$4 sm:$0xff]  }
 0x4c7   : > { %v3190_v52 = vmax.f32 %v3149_v61, %v3177_v41  ;;  %4294 = vmatprep.mubr.bf16.mxu0 %v3193_v60  ;;  %4336 = vmatmul.mubr.bf16.vlgmr.msra.gmra.mxu1 %v9017_v10  ;;  %v7607_v61 = vld [vmem:[%s10543_s9 + $0x68] ss:$12 sps:$4 sm:$0xff]   ;;  %v7619_v0 = vld [vmem:[%s10543_s9 + $0x420] ss:$12 sps:$4 sm:$0xff]   ;;  %v7632_v41 = vld [vmem:[%s10543_s9 + $0x230] ss:$12 sps:$4 sm:$0xff]  }
 0x4c8   : > { %4392 = vmatpush1.bf16.msra.mxu1 %v4254_v47  ;;  %4295 = vmatmul.mubr.bf16.vlgmr.msra.gmra.mxu0 %v9012_v11  ;;  %v7626_v32 = vld [vmem:[%s10543_s9 + $0x40c] ss:$12 sps:$4 sm:$0xff]   ;;  %v7628_v47 = vld [vmem:[%s10543_s9 + $0x2f0] ss:$12 sps:$4 sm:$0xff]  }
 0x4c9   : > { %v9036_v36 = vpack.c.bf16 %v3190_v52, %v3190_v52  ;;  %4345 = vmatpush1.bf16.msra.mxu0 %v7560_v45  ;;  %4393 = vmatprep.subr.bf16.mxu1 %v7566_v39  ;;  %v7624_v45 = vld [vmem:[%s10543_s9 + $0x408] ss:$12 sps:$4 sm:$0xff]   ;;  %v7633_v52 = vld [vmem:[%s10543_s9 + $0x2d8] ss:$12 sps:$4 sm:$0xff]   ;;  %v7653_v22 = vld [vmem:[%s10543_s9 + $0x440] ss:$12 sps:$4 sm:$0xff]  }
 0x4ca   : > { %4346 = vmatprep.subr.bf16.mxu0 %v7569_v50  ;;  %4417 = vmatprep.mubr.bf16.mxu1 %v10575_v35  ;;  %v7631_v39 = vld [vmem:[%s10543_s9 + $0x3f4] ss:$12 sps:$4 sm:$0xff]   ;;  %v7629_v50 = vld [vmem:[%s10543_s9 + $0x3f0] ss:$12 sps:$4 sm:$0xff]  }
 0x4cb   : > { %4376 = vmatprep.mubr.bf16.mxu0 %v9036_v36 }
 0x4cc   : > { %4394 = vmatpush1.bf16.msra.mxu1 %v7564_v5  ;;  %v7636_v5 = vld [vmem:[%s10543_s9 + $0x3dc] ss:$12 sps:$4 sm:$0xff]  }
 0x4cd   : > { %4347 = vmatpush1.bf16.msra.mxu0 %v7567_v34  ;;  %4395 = vmatprep.subr.bf16.mxu1 %v7572_v28  ;;  %v7637_v34 = vld [vmem:[%s10543_s9 + $0x218] ss:$12 sps:$4 sm:$0xff]  }
 0x4ce   : > { %4348 = vmatprep.subr.bf16.mxu0 %v7575_v44  ;;  %v7634_v28 = vld [vmem:[%s10543_s9 + $0x3d8] ss:$12 sps:$4 sm:$0xff]   ;;  %v7638_v44 = vld [vmem:[%s10543_s9 + $0x2c0] ss:$12 sps:$4 sm:$0xff]  }
 0x4d0   : > { %4396 = vmatpush1.bf16.msra.mxu1 %v7570_v2  ;;  %v7642_v2 = vld [vmem:[%s10543_s9 + $0x200] ss:$12 sps:$4 sm:$0xff]  }
 0x4d1   : > { %4349 = vmatpush1.bf16.msra.mxu0 %v7573_v49  ;;  %4397 = vmatprep.subr.bf16.mxu1 %v7578_v40  ;;  %v7639_v49 = vld [vmem:[%s10543_s9 + $0x3c0] ss:$12 sps:$4 sm:$0xff]   ;;  %v7643_v40 = vld [vmem:[%s10543_s9 + $0x2a8] ss:$12 sps:$4 sm:$0xff]  }
 0x4d2   : > { %4350 = vmatprep.subr.bf16.mxu0 %v7581_v59 }
 0x4d4   : > { %4398 = vmatpush1.bf16.msra.mxu1 %v7576_v54 }
 0x4d5   : > { %4351 = vmatpush1.bf16.msra.mxu0 %v7579_v20  ;;  %4399 = vmatprep.subr.bf16.mxu1 %v7584_v58  ;;  %v7649_v20 = vld [vmem:[%s10543_s9 + $0x458] ss:$12 sps:$4 sm:$0xff]   ;;  %v7648_v58 = vld [vmem:[%s10543_s9 + $0x1d0] ss:$12 sps:$4 sm:$0xff]  }
 0x4d6   : > { %4352 = vmatprep.subr.bf16.mxu0 %v7587_v12  ;;  %v7650_v12 = vld [vmem:[%s10543_s9 + $0x398] ss:$12 sps:$4 sm:$0xff]  }
 0x4d8   : > { %4400 = vmatpush1.bf16.msra.mxu1 %v7582_v57  ;;  %v7651_v57 = vld [vmem:[%s10543_s9 + $0x278] ss:$12 sps:$4 sm:$0xff]  }
 0x4d9   : > { %4353 = vmatpush1.bf16.msra.mxu0 %v7585_v48  ;;  %7219 = vmatprep.subr.bf16.mxu1 %v7588_v38  ;;  %v7652_v48 = vld [vmem:[%s10543_s9 + $0x1b8] ss:$12 sps:$4 sm:$0xff]   ;;  %v7655_v38 = vld [vmem:[%s10543_s9 + $0x260] ss:$12 sps:$4 sm:$0xff]  }
 0x4da   : > { %4354 = vmatprep.subr.bf16.mxu0 %v7591_v63  ;;  %v7657_v63 = vld [vmem:[%s10543_s9 + $0x428] ss:$12 sps:$4 sm:$0xff]  }
 0x4db   : > { %6932 = vmatmul.mubr.msk.bf16.vlgmr.msra.gmra.mxu1 %vm4249_vm3, %v9089_v19 }
 0x4dc   : > { %7220 = vmatpush3.bf16.msra.mxu1 %v7592_v53  ;;  %4458 = vmatprep.mubr.bf16.mxu1 %v3193_v60  ;;  %v7627_v60 = vld [vmem:[%s10543_s9 + $0x8] ss:$12 sps:$4 sm:$0xff]   ;;  %v7656_v53 = vld [vmem:[%s10543_s9 + $0x1a0] ss:$12 sps:$4 sm:$0xff]  }
 0x4dd   : > { %4355 = vmatpush1.bf16.msra.mxu0 %v7589_v56  ;;  %7221 = vmatprep.subr.bf16.mxu1 %v7593_v33  ;;  %v7658_v56 = vld [vmem:[%s10543_s9 + $0x368] ss:$12 sps:$4 sm:$0xff]  }
 0x4de   : > { %4356 = vmatprep.subr.bf16.mxu0 %v7596_v14  ;;  %v7659_v33 = vld [vmem:[%s10543_s9 + $0x248] ss:$12 sps:$4 sm:$0xff]   ;;  %v7661_v14 = vld [vmem:[%s10543_s9 + $0x410] ss:$12 sps:$4 sm:$0xff]  }
 0x4e0   : > { %7222 = vmatpush3.bf16.msra.mxu1 %v7597_v51  ;;  %v7660_v51 = vld [vmem:[%s10543_s9 + $0x188] ss:$12 sps:$4 sm:$0xff]  }
 0x4e1   : > { %4357 = vmatpush1.bf16.msra.mxu0 %v7594_v62  ;;  %7223 = vmatprep.subr.bf16.mxu1 %v7598_v27  ;;  %v7662_v62 = vld [vmem:[%s10543_s9 + $0x350] ss:$12 sps:$4 sm:$0xff]   ;;  %v7664_v27 = vld [vmem:[%s10543_s9 + $0x4e8] ss:$0 sps:$4 sm:$0xff]  }
 0x4e2   : > { %4358 = vmatprep.subr.bf16.mxu0 %v7601_v46  ;;  %v7663_v46 = vld [vmem:[%s10543_s9 + $0x3f8] ss:$12 sps:$4 sm:$0xff]  }
 0x4e4   : > { %7224 = vmatpush3.bf16.msra.mxu1 %v7602_v18  ;;  %v9293_v18 = vld [vmem:[#allocation2 + $0x8] sm:$0xff] }
 0x4e5   : > { %4359 = vmatpush1.bf16.msra.mxu0 %v7599_v8  ;;  %7225 = vmatprep.subr.bf16.mxu1 %v7603_v24  ;;  %v4260_v8 = vsel %vm1179_vm13, %v7664_v27, 0  ;;  %v7665_v24 = vld [vmem:[%s10543_s9 + $0x338] ss:$12 sps:$4 sm:$0xff]  }
 0x4e6   : > { %4360 = vmatprep.subr.bf16.mxu0 %v7606_v31  ;;  %v7666_v31 = vld [vmem:[%s10543_s9 + $0x3e0] ss:$12 sps:$4 sm:$0xff]  }
 0x4e8   : > { %7226 = vmatpush3.bf16.msra.mxu1 %v7607_v61  ;;  %v7667_v61 = vld [vmem:[%s10543_s9 + $0x4d0] ss:$12 sps:$4 sm:$0xff]  }
 0x4e9   : > { %4361 = vmatpush2.bf16.msra.mxu0 %v7604_v6  ;;  %7227 = vmatprep.subr.bf16.mxu1 %v7608_v30  ;;  %v7668_v6 = vld [vmem:[%s10543_s9 + $0x320] ss:$12 sps:$4 sm:$0xff]   ;;  %v7670_v30 = vld [vmem:[%s10543_s9 + $0x4b8] ss:$12 sps:$4 sm:$0xff]  }
 0x4ea   : > { %4362 = vmatprep.subr.bf16.mxu0 %v7611_v1  ;;  %v7671_v1 = vld [vmem:[%s10543_s9 + $0x308] ss:$12 sps:$4 sm:$0xff]  }
 0x4ec   : > { %7228 = vmatpush3.bf16.msra.mxu1 %v7612_v21  ;;  %v7672_v21 = vld [vmem:[%s10543_s9 + $0x4a0] ss:$12 sps:$4 sm:$0xff]  }
 0x4ed   : > { %4363 = vmatpush2.bf16.msra.mxu0 %v7609_v13  ;;  %7229 = vmatprep.subr.bf16.mxu1 %v7613_v3  ;;  %v7673_v13 = vld [vmem:[%s10543_s9 + $0x488] ss:$12 sps:$4 sm:$0xff]  }
 0x4ee   : > { %4364 = vmatprep.subr.bf16.mxu0 %v7616_v9 }
 0x4f0   : > { %7230 = vmatpush3.bf16.msra.mxu1 %v7617_v23 }
 0x4f1   : > { %4365 = vmatpush2.bf16.msra.mxu0 %v7614_v7  ;;  %7231 = vmatprep.subr.bf16.mxu1 %v7618_v37 }
 0x4f2   : > { %4366 = vmatprep.subr.bf16.mxu0 %v7621_v4 }
 0x4f4   : > { %7232 = vmatpush3.bf16.msra.mxu1 %v7622_v16 }
 0x4f5   : > { %4367 = vmatpush2.bf16.msra.mxu0 %v7619_v0  ;;  %7233 = vmatprep.subr.bf16.mxu1 %v7623_v15 }
 0x4f6   : > { %4368 = vmatprep.subr.bf16.mxu0 %v7626_v32 }
 0x4f8   : > { %7234 = vmatpush3.bf16.msra.mxu1 %v7627_v60 }
 0x4f9   : > { %4369 = vmatpush2.bf16.msra.mxu0 %v7624_v45  ;;  %7241 = vmatprep.subr.bf16.mxu1 %v7628_v47 }
 0x4fa   : > { %4370 = vmatprep.subr.bf16.mxu0 %v7631_v39 }
 0x4fb   : > { %4459 = vmatmul.mubr.bf16.vlgmr.msra.gmra.mxu1 %v9012_v11  ;;  %v7641_v11 = vld [vmem:[%s10543_s9 + $0x3c4] ss:$12 sps:$4 sm:$0xff]  }
 0x4fc   : > { %7242 = vmatpush3.bf16.msra.mxu1 %v7632_v41  ;;  %4498 = vmatprep.mubr.bf16.mxu1 %v9010_v29  ;;  %v3176_v29 = vsel %vm680_vm2, %v7462_v17, %v9014_v42  ;;  %v7644_v17 = vld [vmem:[%s10543_s9 + $0x1e8] ss:$12 sps:$4 sm:$0xff]   ;;  %v7646_v42 = vld [vmem:[%s10543_s9 + $0x3b0] ss:$12 sps:$4 sm:$0xff]   ;;  %vm4763_vm2 = vcmask 916480  }
 0x4fd   : > { %4371 = vmatpush2.bf16.msra.mxu0 %v7629_v50  ;;  %7243 = vmatprep.subr.bf16.mxu1 %v7633_v52  ;;  %v3189_v59 = vmax.f32 %v8969_v43, %v3176_v29  ;;  %v7647_v43 = vld [vmem:[%s10543_s9 + $0x290] ss:$12 sps:$4 sm:$0xff]  }
 0x4fe   : > { %4372 = vmatprep.subr.bf16.mxu0 %v7636_v5 }
 0x4ff   : > { %v9235_v54 = vpack.c.bf16 %v3189_v59, %v3189_v59 }
 0x500   : > { %7244 = vmatpush3.bf16.msra.mxu1 %v7637_v34 }
 0x501   : > { %4373 = vmatpush2.bf16.msra.mxu0 %v7634_v28  ;;  %7245 = vmatprep.subr.bf16.mxu1 %v7638_v44 }
 0x502   : > { %4374 = vmatprep.subr.bf16.mxu0 %v7641_v11 }
 0x504   : > { %7246 = vmatpush3.bf16.msra.mxu1 %v7642_v2 }
 0x505   : > { %4375 = vmatpush2.bf16.msra.mxu0 %v7639_v49  ;;  %7247 = vmatprep.subr.bf16.mxu1 %v7643_v40 }
 0x506   : > { %7263 = vmatprep.subr.bf16.mxu0 %v7645_v55 }
 0x508   : > { %4377 = vmatmul.mubr.bf16.vlgmr.msra.gmra.mxu0 %v9235_v54  ;;  %7248 = vmatpush3.bf16.msra.mxu1 %v7644_v17 }
 0x509   : > { %7264 = vmatpush3.bf16.msra.mxu0 %v7646_v42  ;;  %4538 = vmatprep.mubr.bf16.mxu0 %v9036_v36  ;;  %v7654_v36 = vld [vmem:[%s10543_s9 + $0x380] ss:$12 sps:$4 sm:$0xff]  }
 0x50a   : > { %7249 = vmatprep.subr.bf16.mxu1 %v7647_v43  ;;  %7265 = vmatprep.subr.bf16.mxu0 %v7649_v20 }
 0x50c   : > { %7250 = vmatpush3.bf16.msra.mxu1 %v7648_v58 }
 0x50d   : > { %7266 = vmatpush3.bf16.msra.mxu0 %v7650_v12  ;;  %7251 = vmatprep.subr.bf16.mxu1 %v7651_v57 }
 0x50e   : > { %7267 = vmatprep.subr.bf16.mxu0 %v7653_v22 }
 0x510   : > { %7252 = vmatpush3.bf16.msra.mxu1 %v7652_v48 }
 0x511   : > { %7268 = vmatpush3.bf16.msra.mxu0 %v7654_v36  ;;  %7253 = vmatprep.subr.bf16.mxu1 %v7655_v38 }
 0x512   : > { %7269 = vmatprep.subr.bf16.mxu0 %v7657_v63 }
 0x514   : > { %7254 = vmatpush3.bf16.msra.mxu1 %v7656_v53 }
 0x515   : > { %7270 = vmatpush3.bf16.msra.mxu0 %v7658_v56  ;;  %7255 = vmatprep.subr.bf16.mxu1 %v7659_v33 }
 0x516   : > { %7271 = vmatprep.subr.bf16.mxu0 %v7661_v14 }
 0x518   : > { %7256 = vmatpush3.bf16.msra.mxu1 %v7660_v51 }
 0x519   : > { %7272 = vmatpush3.bf16.msra.mxu0 %v7662_v62  ;;  %7345 = vmatprep.subr.bf16.mxu1 %v9293_v18  ;;  %v5133_v62 = vld [vmem:[%s10540_s6] sm:$0xff] }
 0x51a   : > { %7273 = vmatprep.subr.bf16.mxu0 %v7663_v46 }
 0x51b   : > { %4499 = vmatmul.mubr.bf16.vlgmr.msra.gmra.mxu1 %v9017_v10  ;;  %v7669_v10 = vld [vmem:[%s10543_s9 + $0x3c8] ss:$12 sps:$4 sm:$0xff]  }
 0x51c   : > { %7346 = vmatpush3.bf16.msra.mxu1 %v4260_v8  ;;  %7355 = vmatprep.mubr.msk.bf16.mxu1 %vm7749_vm15, %v9293_v18 }
 0x51d   : > { %7274 = vmatpush3.bf16.msra.mxu0 %v7665_v24  ;;  %7347 = vmatprep.subr.bf16.mxu1 %v9293_v18 }
 0x51e   : > { %7275 = vmatprep.subr.bf16.mxu0 %v7666_v31  ;;  %v6934_v31 = vld [vmem:[%s10539_s5 + $0x4] sm:$0xf] }
 0x520   : > { %7348 = vmatpush3.bf16.msra.mxu1 %v7667_v61 }
 0x521   : > { %7276 = vmatpush3.bf16.msra.mxu0 %v7668_v6  ;;  %7349 = vmatprep.subr.bf16.mxu1 %v9293_v18 }
 0x522   : > { %7277 = vmatprep.subr.bf16.mxu0 %v7669_v10 }
 0x524   : > { %7350 = vmatpush3.bf16.msra.mxu1 %v7670_v30 }
 0x525   : > { %7278 = vmatpush3.bf16.msra.mxu0 %v7671_v1  ;;  %7351 = vmatprep.subr.bf16.mxu1 %v9293_v18 }
 0x528   : > { %4539 = vmatmul.mubr.bf16.vlgmr.msra.gmra.mxu0 %v9235_v54  ;;  %7352 = vmatpush3.bf16.msra.mxu1 %v7672_v21 }
 0x529   : > { %7353 = vmatprep.subr.bf16.mxu1 %v9293_v18  ;;  %4639 = vmatprep.mubr.bf16.mxu0 %v10575_v35 }
 0x52c   : > { %7354 = vmatpush3.bf16.msra.mxu1 %v7673_v13  ;;  %v4586_v13 = vld [vmem:[%s10539_s5] sm:$0xf] }
 0x52f   : > { %7356 = vmatmul.mubr.msk.bf16.vlgmr.msra.gmra.mxu1 %vm4249_vm3, %v9089_v19 }
 0x530   : > { %4746 = vmatprep.mubr.bf16.mxu1 %v10575_v35 }
 0x587   : > { %v4337_v3 = vpop.f32.mrf.mxu1 }
 0x588   : > { %v4296_v9 = vpop.f32.mrf.mxu0 }
 0x589   : > { %v4339_v23 = vpop.f32.mrf.mxu1  ;;  %v4338_v52 = vadd.f32 %v4337_v3, %v4296_v9  ;;  %v6939_v3 = vld [vmem:[%s10539_s5 + $0x8] sm:$0xf] }
 0x58a   : > { %v4298_v7 = vpop.f32.mrf.mxu0 }
 0x58b   : > { %v4341_v37 = vpop.f32.mrf.mxu1  ;;  %v4340_v5 = vadd.f32 %v4339_v23, %v4298_v7 }
 0x58c   : > { %v4300_v4 = vpop.f32.mrf.mxu0 }
 0x58d   : > { %v4342_v16 = vpop.f32.mrf.mxu1 }
 0x58e   : > { %v4301_v0 = vpop.f32.mrf.mxu0  ;;  %v6942_v16 = vld [vmem:[%s10539_s5 + $0xc] sm:$0xf] }
 0x59b   : > { %v4419_v15 = vpop.f32.mrf.mxu1 }
 0x59d   : > { %v4421_v32 = vpop.f32.mrf.mxu1 }
 0x59f   : > { %v4423_v60 = vpop.f32.mrf.mxu1 }
 0x5a1   : > { %v4424_v45 = vpop.f32.mrf.mxu1 }
 0x5bb   : > { %v7235_v47 = vpop.f32.mrf.mxu1 }
 0x5bd   : > { %v7236_v39 = vpop.f32.mrf.mxu1 }
 0x5be   : > { %v7237_v58 = vadd.f32 %v7236_v39, %v7235_v47 }
 0x5bf   : > { %v7238_v41 = vpop.f32.mrf.mxu1 }
 0x5c1   : > { %v7239_v50 = vpop.f32.mrf.mxu1 }
 0x5c8   : > { %v4378_v19 = vpop.f32.mrf.mxu0 }
 0x5c9   : > { %v4379_v34 = vadd.f32 %v4378_v19, %v4338_v52 }
 0x5ca   : > { %v4380_v28 = vpop.f32.mrf.mxu0 }
 0x5cb   : > { %v4420_v44 = vadd.f32 %v4419_v15, %v4379_v34  ;;  %v4381_v11 = vadd.f32 %v4380_v28, %v4340_v5  ;;  %v6945_v34 = vld [vmem:[%s10539_s5 + $0x10] sm:$0xf]  ;;  %v6948_v28 = vld [vmem:[%s10539_s5 + $0x14] sm:$0xf] }
 0x5cc   : > { %v4382_v29 = vpop.f32.mrf.mxu0 }
 0x5cd   : > { %v4587_v2 = vpack.c.bf16 %v4420_v44, %v4420_v44  ;;  %v4422_v49 = vadd.f32 %v4421_v32, %v4381_v11 }
 0x5ce   : > { %v4383_v40 = vpop.f32.mrf.mxu0 }
 0x5cf   : > { %v4588_v59 = vpack.c.bf16 %v4422_v49, %v4422_v49  ;;  %4593 = vrot.lane.b32.xlu1 %v4587_v2, %s7739_s15  ;;  %v4652_v10 = vsel %vm1179_vm13, %v4587_v2, 0 }
 0x5d1   : > { %4595 = vrot.lane.b32.xlu0 %v4588_v59, %s7739_s15 }
 0x5d3   : > { %4700 = vrot.lane.b32.xlu1 %v4587_v2, %s10578_s26 }
 0x5d5   : > { %4884 = vrot.lane.b32.xlu0 %v4587_v2, %s7750_s21 }
 0x5d7   : > { %4759 = vrot.lane.b32.xlu1 %v4587_v2, %s7751_s27 }
 0x5d9   : > { %4702 = vrot.lane.b32.xlu0 %v4588_v59, %s10578_s26 }
 0x5db   : > { %v7257_v55 = vpop.f32.mrf.mxu1  ;;  %4821 = vrot.lane.b32.xlu1 %v4587_v2, %s7752_s18 }
 0x5dd   : > { %v7258_v17 = vpop.f32.mrf.mxu1  ;;  %4761 = vrot.lane.b32.xlu0 %v4588_v59, %s7751_s27 }
 0x5de   : > { %v7259_v43 = vadd.f32 %v7258_v17, %v7257_v55 }
 0x5df   : > { %v7260_v42 = vpop.f32.mrf.mxu1  ;;  %4947 = vrot.lane.b32.xlu1 %v4587_v2, %s10579_s25 }
 0x5e0   : > { %v4501_v57 = vadd.f32 %v7259_v43, %v7237_v58  ;;  %v6954_v43 = vld [vmem:[%s10539_s5 + $0x1c] sm:$0xf] }
 0x5e1   : > { %v7261_v54 = vpop.f32.mrf.mxu1  ;;  %4823 = vrot.lane.b32.xlu0 %v4588_v59, %s7752_s18 }
 0x5e2   : > { %v6951_v54 = vld [vmem:[%s10539_s5 + $0x18] sm:$0xf] }
 0x5e3   : > { %4886 = vrot.lane.b32.xlu1 %v4588_v59, %s7750_s21 }
 0x5e5   : > { %4949 = vrot.lane.b32.xlu0 %v4588_v59, %s10579_s25 }
 0x5e8   : > { %v7279_v20 = vpop.f32.mrf.mxu0 }
 0x5ea   : > { %v7280_v12 = vpop.f32.mrf.mxu0 }
 0x5eb   : > { %v7281_v22 = vadd.f32 %v7280_v12, %v7279_v20 }
 0x5ec   : > { %v7282_v48 = vpop.f32.mrf.mxu0 }
 0x5ed   : > { %v4541_v36 = vadd.f32 %v7281_v22, %v4501_v57 }
 0x5ee   : > { %v7283_v38 = vpop.f32.mrf.mxu0 }
 0x5ef   : > { %v4580_v63 = vpop.f32.mrf.mxu1 }
 0x5f0   : > { %v4581_v53 = vadd.f32 %v4580_v63, %v4541_v36  ;;  %v6957_v36 = vld [vmem:[%s10539_s5 + $0x20] sm:$0xf] }
 0x5f1   : > { %v7357_v56 = vpop.f32.mrf.mxu1 }
 0x5f2   : > { %v4819_v33 = vpack.c.bf16 %v4581_v53, %v4581_v53 }
 0x5f3   : > { %v4583_v14 = vpop.f32.mrf.mxu1 }
 0x5f4   : > { %4888 = vrot.lane.b32.xlu0 %v4819_v33, %s7750_s21  ;;  %4825 = vrot.lane.b32.xlu1 %v4819_v33, %s7752_s18 }
 0x5f5   : > { %v7358_v51 = vpop.f32.mrf.mxu1 }
 0x5f8   : > { %5009 = vrot.lane.b32.xlu0 %v4587_v2, %s10563_s28  ;;  %5011 = vrot.lane.b32.xlu1 %v4588_v59, %s10563_s28 }
 0x5fc   : > { %5013 = vrot.lane.b32.xlu0 %v4819_v33, %s10563_s28  ;;  %4951 = vrot.lane.b32.xlu1 %v4819_v33, %s10579_s25 }
 0x600   : > { %5074 = vrot.lane.b32.xlu0 %v4588_v59, %s7754_s20  ;;  %5072 = vrot.lane.b32.xlu1 %v4587_v2, %s7754_s20 }
 0x604   : > { %5136 = vperm.xlu0 %7416, %v5133_v62   ;;  %5076 = vrot.lane.b32.xlu1 %v4819_v33, %s7754_s20 }
 0x641   : > { %v4594_v27 = vpop.permute.xlu1 %4593 }
 0x643   : > { %v4596_v46 = vpop.permute.xlu0 %4595 }
 0x644   : > { %v4597_v8 = vsel %vm557_vm0, %v4594_v27, %v4596_v46  ;;  %6935 = vmatprep.subr.msk.bf16.mxu0 %vm1179_vm13, %v4596_v46 }
 0x645   : > { %v4602_v24 = vsel %vm1179_vm13, %v4597_v8, 0  ;;  %v4701_v6 = vpop.permute.xlu1 %4700 }
 0x646   : > { %4622 = vmatpush1.bf16.msra.mxu0 %v4602_v24 }
 0x647   : > { %v4885_v61 = vpop.permute.xlu0 %4884  ;;  %6937 = vmatprep.subr.msk.bf16.mxu0 %vm1179_vm13, %v4588_v59 }
 0x649   : > { %6936 = vmatmul.mubr.msk.bf16.vlgmr.msra.gmra.mxu0 %vm1175_vm14, %v6934_v31  ;;  %v4760_v9 = vpop.permute.xlu1 %4759 }
 0x64a   : > { %4672 = vmatpush1.bf16.msra.mxu0 %v4652_v10  ;;  %4689 = vmatprep.mubr.bf16.mxu0 %v10575_v35 }
 0x64b   : > { %v4703_v30 = vpop.permute.xlu0 %4702 }
 0x64c   : > { %v4704_v1 = vsel %vm614_vm1, %v4701_v6, %v4703_v30  ;;  %6940 = vmatprep.subr.msk.bf16.mxu1 %vm1179_vm13, %v4703_v30 }
 0x64d   : > { %v4709_v21 = vsel %vm1179_vm13, %v4704_v1, 0  ;;  %v4822_v4 = vpop.permute.xlu1 %4821 }
 0x64e   : > { %4729 = vmatpush1.bf16.msra.mxu1 %v4709_v21 }
 0x64f   : > { %v4762_v23 = vpop.permute.xlu0 %4761 }
 0x650   : > { %v4764_v7 = vsel %vm4763_vm2, %v4760_v9, %v4762_v23  ;;  %6943 = vmatprep.subr.msk.bf16.mxu0 %vm1179_vm13, %v4762_v23 }
 0x651   : > { %v4769_v37 = vsel %vm1179_vm13, %v4764_v7, 0  ;;  %6938 = vmatmul.mubr.msk.bf16.vlgmr.msra.gmra.mxu0 %vm1175_vm14, %v4586_v13  ;;  %6941 = vmatmul.mubr.msk.bf16.vlgmr.msra.gmra.mxu1 %vm1175_vm14, %v6939_v3  ;;  %v4948_v0 = vpop.permute.xlu1 %4947 }
 0x652   : > { %4789 = vmatpush1.bf16.msra.mxu0 %v4769_v37  ;;  %4806 = vmatprep.mubr.bf16.mxu0 %v10575_v35 }
 0x653   : > { %4871 = vmatprep.mubr.bf16.mxu1 %v10575_v35  ;;  %v4824_v15 = vpop.permute.xlu0 %4823 }
 0x654   : > { %v4828_v45 = vsel %vm4827_vm5, %v4822_v4, %v4824_v15 }
 0x655   : > { %v4887_v32 = vpop.permute.xlu1 %4886  ;;  %v4834_v19 = vsel %vm1179_vm13, %v4828_v45, 0 }
 0x656   : > { %v4891_v47 = vsel %vm4890_vm6, %v4885_v61, %v4887_v32 }
 0x657   : > { %v4950_v60 = vpop.permute.xlu0 %4949  ;;  %v4897_v5 = vsel %vm1179_vm13, %v4891_v47, 0 }
 0x658   : > { %v4953_v29 = vsel %vm804_vm4, %v4948_v0, %v4950_v60 }
 0x659   : > { %6944 = vmatmul.mubr.msk.bf16.vlgmr.msra.gmra.mxu0 %vm1175_vm14, %v6942_v16  ;;  %v4959_v17 = vsel %vm1179_vm13, %v4953_v29, 0 }
 0x65a   : > { %4934 = vmatprep.mubr.bf16.mxu0 %v10575_v35 }
 0x666   : > { %v4889_v39 = vpop.permute.xlu0 %4888  ;;  %v4826_v41 = vpop.permute.xlu1 %4825 }
 0x667   : > { %v4892_v50 = vsel %vm4890_vm6, %v4887_v32, %v4889_v39  ;;  %v4829_v52 = vsel %vm4827_vm5, %v4824_v15, %v4826_v41 }
 0x668   : > { %6946 = vmatprep.subr.msk.bf16.mxu1 %vm1179_vm13, %v4829_v52  ;;  %6949 = vmatprep.subr.msk.bf16.mxu0 %vm1179_vm13, %v4892_v50 }
 0x669   : > { %4854 = vmatpush1.bf16.msra.mxu1 %v4834_v19  ;;  %4917 = vmatpush1.bf16.msra.mxu0 %v4897_v5 }
 0x66a   : > { %v5010_v44 = vpop.permute.xlu0 %5009  ;;  %v5012_v11 = vpop.permute.xlu1 %5011 }
 0x66b   : > { %v5016_v2 = vsel %vm5015_vm7, %v5010_v44, %v5012_v11 }
 0x66c   : > { %6947 = vmatmul.mubr.msk.bf16.vlgmr.msra.gmra.mxu1 %vm1175_vm14, %v6945_v34  ;;  %6950 = vmatmul.mubr.msk.bf16.vlgmr.msra.gmra.mxu0 %vm1175_vm14, %v6948_v28  ;;  %v5022_v42 = vsel %vm1179_vm13, %v5016_v2, 0 }
 0x66d   : > { %4996 = vmatprep.mubr.bf16.mxu1 %v10575_v35  ;;  %5059 = vmatprep.mubr.bf16.mxu0 %v10575_v35 }
 0x66e   : > { %v5014_v49 = vpop.permute.xlu0 %5013  ;;  %v4952_v40 = vpop.permute.xlu1 %4951 }
 0x66f   : > { %v5017_v59 = vsel %vm5015_vm7, %v5012_v11, %v5014_v49  ;;  %v4954_v55 = vsel %vm804_vm4, %v4950_v60, %v4952_v40  ;;  %v5143_v40 = vld [vmem:[%s10545_s11] sm:$0x3] }
 0x670   : > { %6952 = vmatprep.subr.msk.bf16.mxu1 %vm1179_vm13, %v4954_v55  ;;  %6955 = vmatprep.subr.msk.bf16.mxu0 %vm1179_vm13, %v5017_v59 }
 0x671   : > { %4979 = vmatpush1.bf16.msra.mxu1 %v4959_v17  ;;  %5042 = vmatpush1.bf16.msra.mxu0 %v5022_v42 }
 0x672   : > { %v5075_v20 = vpop.permute.xlu0 %5074  ;;  %v5073_v58 = vpop.permute.xlu1 %5072 }
 0x673   : > { %v5079_v12 = vsel %vm5078_vm8, %v5073_v58, %v5075_v20 }
 0x674   : > { %6953 = vmatmul.mubr.msk.bf16.vlgmr.msra.gmra.mxu1 %vm1175_vm14, %v6951_v54  ;;  %6956 = vmatmul.mubr.msk.bf16.vlgmr.msra.gmra.mxu0 %vm1175_vm14, %v6954_v43  ;;  %v5085_v48 = vsel %vm1179_vm13, %v5079_v12, 0  ;;  %v5148_v43 = vrot.slane %v5143_v40, %v7919_v26 }
 0x675   : > { %5122 = vmatprep.mubr.bf16.mxu1 %v10575_v35  ;;  %5231 = vmatprep.mubr.bf16.mxu0 %v10575_v35 }
 0x676   : > { %v5077_v57 = vpop.permute.xlu1 %5076 }
 0x677   : > { %v5080_v22 = vsel %vm5078_vm8, %v5075_v20, %v5077_v57 }
 0x678   : > { %6958 = vmatprep.subr.msk.bf16.mxu1 %vm1179_vm13, %v5080_v22  ;;  %v5152_v22 = vrot.slane %v5143_v40, %v7916_v25 }
 0x679   : > { %5105 = vmatpush1.bf16.msra.mxu1 %v5085_v48 }
 0x67c   : > { %6959 = vmatmul.mubr.msk.bf16.vlgmr.msra.gmra.mxu1 %vm1175_vm14, %v6957_v36 }
 0x67d   : > { %5281 = vmatprep.mubr.bf16.mxu1 %v10575_v35 }
 0x67f   : > { %v5137_v17 = vpop.permute.xlu0 %5136 }
 0x709   : > { %v4641_v38 = vpop.f32.mrf.mxu0 }
 0x70b   : > { %v4643_v63 = vpop.f32.mrf.mxu0 }
 0x70d   : > { %v4645_v53 = vpop.f32.mrf.mxu0 }
 0x70f   : > { %v4646_v56 = vpop.f32.mrf.mxu0 }
 0x711   : > { %v4691_v33 = vpop.f32.mrf.mxu0  ;;  %v4748_v14 = vpop.f32.mrf.mxu1 }
 0x712   : > { %v4692_v30 = vadd.f32 %v4691_v33, %v4641_v38 }
 0x713   : > { %v4693_v51 = vpop.f32.mrf.mxu0  ;;  %v4750_v62 = vpop.f32.mrf.mxu1 }
 0x714   : > { %v4694_v1 = vadd.f32 %v4693_v51, %v4643_v63  ;;  %v4755_v21 = vadd.f32 %v4748_v14, %v4692_v30  ;;  %v5177_v63 = vld [vmem:[#allocation2 + $0x10] sm:$0xff] }
 0x715   : > { %v4695_v27 = vpop.f32.mrf.mxu0  ;;  %v4752_v46 = vpop.f32.mrf.mxu1  ;;  %v5410_v56 = vpack.c.bf16 %v5177_v63, %v5177_v63  ;;  %v6983_v63 = vld [vmem:[%s10541_s7 + $0x20] sm:$0xf] }
 0x716   : > { %v4756_v9 = vadd.f32 %v4750_v62, %v4694_v1 }
 0x717   : > { %v4696_v8 = vpop.f32.mrf.mxu0  ;;  %v4753_v24 = vpop.f32.mrf.mxu1 }
 0x718   : > { %v5178_v8 = vld [vmem:[%s10541_s7] sm:$0xf] }
 0x719   : > { %v4808_v31 = vpop.f32.mrf.mxu0  ;;  %v5720_v24 = vld [vmem:[%s10542_s8] sm:$0xff] }
 0x71a   : > { %v4815_v37 = vadd.f32 %v4808_v31, %v4755_v21 }
 0x71b   : > { %v4810_v61 = vpop.f32.mrf.mxu0 }
 0x71c   : > { %v4816_v0 = vadd.f32 %v4810_v61, %v4756_v9 }
 0x71d   : > { %v4812_v6 = vpop.f32.mrf.mxu0 }
 0x71f   : > { %v4813_v10 = vpop.f32.mrf.mxu0 }
 0x72c   : > { %v4873_v13 = vpop.f32.mrf.mxu1  ;;  %v4936_v3 = vpop.f32.mrf.mxu0 }
 0x72d   : > { %v4880_v15 = vadd.f32 %v4873_v13, %v4815_v37  ;;  %v6960_v13 = vld [vmem:[%s10541_s7 + $0x4] sm:$0xf] }
 0x72e   : > { %v4875_v23 = vpop.f32.mrf.mxu1  ;;  %v4938_v7 = vpop.f32.mrf.mxu0 }
 0x72f   : > { %v4881_v45 = vadd.f32 %v4875_v23, %v4816_v0  ;;  %v4943_v41 = vadd.f32 %v4936_v3, %v4880_v15 }
 0x730   : > { %v4877_v4 = vpop.f32.mrf.mxu1  ;;  %v4940_v16 = vpop.f32.mrf.mxu0 }
 0x731   : > { %v4944_v19 = vadd.f32 %v4938_v7, %v4881_v45  ;;  %v6965_v16 = vld [vmem:[%s10541_s7 + $0x8] sm:$0xf]  ;;  %v6968_v45 = vld [vmem:[%s10541_s7 + $0xc] sm:$0xf] }
 0x732   : > { %v4878_v32 = vpop.f32.mrf.mxu1  ;;  %v4941_v60 = vpop.f32.mrf.mxu0 }
 0x734   : > { %v4998_v47 = vpop.f32.mrf.mxu1  ;;  %v5061_v39 = vpop.f32.mrf.mxu0 }
 0x735   : > { %v5005_v5 = vadd.f32 %v4998_v47, %v4943_v41 }
 0x736   : > { %v5000_v50 = vpop.f32.mrf.mxu1  ;;  %v5063_v52 = vpop.f32.mrf.mxu0 }
 0x737   : > { %v5006_v44 = vadd.f32 %v5000_v50, %v4944_v19  ;;  %v5068_v2 = vadd.f32 %v5061_v39, %v5005_v5  ;;  %v6971_v19 = vld [vmem:[%s10541_s7 + $0x10] sm:$0xf] }
 0x738   : > { %v5002_v34 = vpop.f32.mrf.mxu1  ;;  %v5065_v28 = vpop.f32.mrf.mxu0 }
 0x739   : > { %v5069_v59 = vadd.f32 %v5063_v52, %v5006_v44 }
 0x73a   : > { %v5003_v11 = vpop.f32.mrf.mxu1  ;;  %v5066_v29 = vpop.f32.mrf.mxu0 }
 0x73b   : > { %v6974_v29 = vld [vmem:[%s10541_s7 + $0x14] sm:$0xf] }
 0x73c   : > { %v5124_v49 = vpop.f32.mrf.mxu1 }
 0x73d   : > { %v5131_v55 = vadd.f32 %v5124_v49, %v5068_v2 }
 0x73e   : > { %v5126_v42 = vpop.f32.mrf.mxu1 }
 0x73f   : > { %v5139_v54 = vadd.f32 %v5137_v17, %v5131_v55  ;;  %v5132_v20 = vadd.f32 %v5126_v42, %v5069_v59 }
 0x740   : > { %v5128_v58 = vpop.f32.mrf.mxu1 }
 0x741   : > { %v5141_v12 = vmax.f32 %v5139_v54, 0.0  ;;  %v5140_v57 = vadd.f32 %v5137_v17, %v5132_v20  ;;  %v6977_v17 = vld [vmem:[%s10541_s7 + $0x18] sm:$0xf] }
 0x742   : > { %v5129_v48 = vpop.f32.mrf.mxu1 }
 0x743   : > { %v5155_v36 = vmul.f32 %v5148_v43, %v5141_v12  ;;  %v5142_v38 = vmax.f32 %v5140_v57, 0.0  ;;  %v6980_v12 = vld [vmem:[%s10541_s7 + $0x1c] sm:$0xf] }
 0x745   : > { %v5156_v53 = vmul.f32 %v5152_v22, %v5142_v38  ;;  %5163 = vrot.lane.b32.xlu1 %v5155_v36, %s7755_s0 }
 0x747   : > { %5165 = vrot.lane.b32.xlu0 %v5156_v53, %s7755_s0  ;;  %s456_s0 = sand.u32 1, %s7728_s30  }
 0x748   : > { %s6621_s28 = scalar_lea.sflag [#allocation4], %s456_s0 }
 0x749   : > { %5416 = vrot.lane.b32.xlu1 %v5410_v56, %s7752_s18 }
 0x7b7   : > { %v5164_v33 = vpop.permute.xlu1 %5163 }
 0x7b8   : > { %5172 = vst.msk [vmem:[#allocation2] sm:$0xff] %vm5171_vm9, %v5164_v33 }
 0x7b9   : > { %v5166_v26 = vpop.permute.xlu0 %5165 }
 0x7ba   : > { %v5168_v14 = vsel %vm5167_vm10, %v5164_v33, %v5166_v26 }
 0x7bb   : > { %5174 = vst.msk [vmem:[#allocation2 + $0x8] sm:$0xff] %vm5173_vm11, %v5168_v14  ;;  %v5417_v31 = vpop.permute.xlu1 %5416 }
 0x7bf   : > { %v5175_v25 = vld [vmem:[#allocation2] sm:$0xff] }
 0x7c0   : > { %v5179_v51 = vpack.c.bf16 %v5175_v25, %v5175_v25 }
 0x7c2   : > { %v5176_v62 = vld [vmem:[#allocation2 + $0x8] sm:$0xff]  ;;  %5474 = vrot.lane.b32.xlu0 %v5179_v51, %s7750_s21  ;;  %5185 = vrot.lane.b32.xlu1 %v5179_v51, %s7739_s15  ;;  %v5244_v46 = vsel %vm1179_vm13, %v5179_v51, 0 }
 0x7c3   : > { %v5180_v27 = vpack.c.bf16 %v5176_v62, %v5176_v62 }
 0x7c5   : > { %6963 = vmatprep.subr.msk.bf16.mxu1 %vm1179_vm13, %v5180_v27 }
 0x7c6   : > { %5292 = vrot.lane.b32.xlu1 %v5179_v51, %s10578_s26  ;;  %5187 = vrot.lane.b32.xlu0 %v5180_v27, %s7739_s15 }
 0x7c7   : > { %5264 = vmatpush1.bf16.msra.mxu1 %v5244_v46 }
 0x7ca   : > { %5351 = vrot.lane.b32.xlu1 %v5179_v51, %s7751_s27  ;;  %5478 = vrot.lane.b32.xlu0 %v5410_v56, %s7750_s21 }
 0x7cb   : > { %6964 = vmatmul.mubr.msk.bf16.vlgmr.msra.gmra.mxu1 %vm1175_vm14, %v5178_v8 }
 0x7cc   : > { %5397 = vmatprep.mubr.bf16.mxu1 %v10575_v35 }
 0x7ce   : > { %5412 = vrot.lane.b32.xlu1 %v5179_v51, %s7752_s18  ;;  %5294 = vrot.lane.b32.xlu0 %v5180_v27, %s10578_s26 }
 0x7d2   : > { %5536 = vrot.lane.b32.xlu1 %v5179_v51, %s10579_s25  ;;  %5353 = vrot.lane.b32.xlu0 %v5180_v27, %s7751_s27 }
 0x7d6   : > { %5540 = vrot.lane.b32.xlu1 %v5410_v56, %s10579_s25  ;;  %5414 = vrot.lane.b32.xlu0 %v5180_v27, %s7752_s18  ;;  %s457_s18 = scalar_lea.vmem [#allocation3], %s456_s0 }
 0x7da   : > { %5476 = vrot.lane.b32.xlu1 %v5180_v27, %s7750_s21  ;;  %5598 = vrot.lane.b32.xlu0 %v5179_v51, %s10580_s22  ;;  %s7198_s21 = sshll.u32 %s7853_s17, 4  ;;  %s7756_s17 = smov [#allocation3]  }
 0x7db   : > { %s10499_s1 = scalar_lea.hbm %s10548_s14, %s7198_s21  ;;  %s7680_s26 = sshll.u32 %s7756_s17, 4  ;;  %s7681_s26 = int_to_ptr.vmem [resolvable:$false] %s7680_s26 }
 0x7de   : > { %5660 = vrot.lane.b32.xlu1 %v5179_v51, %s7754_s20  ;;  %5538 = vrot.lane.b32.xlu0 %v5180_v27, %s10579_s25  ;;  %s6633_s25 = sshll.u32 %s457_s18, 4  ;;  %s6634_s25 = int_to_ptr.vmem [resolvable:$true] %s6633_s25 }
 0x7df   : > { %p7683_p0 = scmp.lt.s32.totalorder %s6634_s25, %s7681_s26 }
 0x7e2   : > { %5600 = vrot.lane.b32.xlu1 %v5180_v27, %s10580_s22  ;;  %5602 = vrot.lane.b32.xlu0 %v5410_v56, %s10580_s22  ;;  %s7676_s22 = scalar_lea.vmem %s6634_s25, 16 }
 0x7e3   : > { %p7677_p11 = scmp.ne.s32.totalorder %s6634_s25, %s7676_s22 }
 0x7e5   : > { %p7678_p12 = pnand %p7677_p11, %p7870_p5 }
 0x7e6   : > { %5664 = vrot.lane.b32.xlu1 %v5410_v56, %s7754_s20  ;;  %5662 = vrot.lane.b32.xlu0 %v5180_v27, %s7754_s20 }
 0x7e7   : > { %p7679_p13 = pneg %p7678_p12 }
 0x7ea   : > { %5723 = vperm.xlu0 %7416, %v5720_v24  }
 0x834   : > { %v5475_v61 = vpop.permute.xlu0 %5474  ;;  %v5186_v6 = vpop.permute.xlu1 %5185 }
 0x838   : > { %v5188_v10 = vpop.permute.xlu0 %5187  ;;  %v5293_v30 = vpop.permute.xlu1 %5292 }
 0x839   : > { %v5189_v1 = vsel %vm557_vm0, %v5186_v6, %v5188_v10  ;;  %6961 = vmatprep.subr.msk.bf16.mxu0 %vm1179_vm13, %v5188_v10 }
 0x83a   : > { %v5194_v21 = vsel %vm1179_vm13, %v5189_v1, 0 }
 0x83b   : > { %5214 = vmatpush1.bf16.msra.mxu0 %v5194_v21 }
 0x83c   : > { %v5479_v3 = vpop.permute.xlu0 %5478  ;;  %v5352_v9 = vpop.permute.xlu1 %5351 }
 0x83e   : > { %6962 = vmatmul.mubr.msk.bf16.vlgmr.msra.gmra.mxu0 %vm1175_vm14, %v6960_v13 }
 0x83f   : > { %5338 = vmatprep.mubr.bf16.mxu0 %v10575_v35 }
 0x840   : > { %v5295_v23 = vpop.permute.xlu0 %5294  ;;  %v5413_v7 = vpop.permute.xlu1 %5412 }
 0x841   : > { %v5296_v37 = vsel %vm614_vm1, %v5293_v30, %v5295_v23  ;;  %6966 = vmatprep.subr.msk.bf16.mxu0 %vm1179_vm13, %v5295_v23  ;;  %vm5786_vm1 = vcmask 1045504  }
 0x842   : > { %v5301_v4 = vsel %vm1179_vm13, %v5296_v37, 0 }
 0x843   : > { %5321 = vmatpush1.bf16.msra.mxu0 %v5301_v4 }
 0x844   : > { %v5354_v0 = vpop.permute.xlu0 %5353  ;;  %v5537_v15 = vpop.permute.xlu1 %5536 }
 0x845   : > { %v5355_v32 = vsel %vm4763_vm2, %v5352_v9, %v5354_v0  ;;  %6969 = vmatprep.subr.msk.bf16.mxu1 %vm1179_vm13, %v5354_v0 }
 0x846   : > { %v5360_v60 = vsel %vm1179_vm13, %v5355_v32, 0  ;;  %6967 = vmatmul.mubr.msk.bf16.vlgmr.msra.gmra.mxu0 %vm1175_vm14, %v6965_v16 }
 0x847   : > { %5380 = vmatpush1.bf16.msra.mxu1 %v5360_v60  ;;  %5461 = vmatprep.mubr.bf16.mxu0 %v10575_v35 }
 0x848   : > { %v5415_v47 = vpop.permute.xlu0 %5414  ;;  %v5541_v39 = vpop.permute.xlu1 %5540 }
 0x849   : > { %v5418_v41 = vsel %vm4827_vm5, %v5413_v7, %v5415_v47  ;;  %v5419_v50 = vsel %vm4827_vm5, %v5415_v47, %v5417_v31 }
 0x84a   : > { %v5424_v52 = vsel %vm1179_vm13, %v5418_v41, 0  ;;  %6970 = vmatmul.mubr.msk.bf16.vlgmr.msra.gmra.mxu1 %vm1175_vm14, %v6968_v45  ;;  %6972 = vmatprep.subr.msk.bf16.mxu0 %vm1179_vm13, %v5419_v50 }
 0x84b   : > { %5444 = vmatpush1.bf16.msra.mxu0 %v5424_v52  ;;  %5523 = vmatprep.mubr.bf16.mxu1 %v10575_v35 }
 0x84c   : > { %v5599_v5 = vpop.permute.xlu0 %5598  ;;  %v5477_v34 = vpop.permute.xlu1 %5476 }
 0x84d   : > { %v5480_v28 = vsel %vm4890_vm6, %v5475_v61, %v5477_v34  ;;  %v5481_v44 = vsel %vm4890_vm6, %v5477_v34, %v5479_v3 }
 0x84e   : > { %v5486_v11 = vsel %vm1179_vm13, %v5480_v28, 0  ;;  %6973 = vmatmul.mubr.msk.bf16.vlgmr.msra.gmra.mxu0 %vm1175_vm14, %v6971_v19  ;;  %6975 = vmatprep.subr.msk.bf16.mxu1 %vm1179_vm13, %v5481_v44 }
 0x84f   : > { %5506 = vmatpush1.bf16.msra.mxu1 %v5486_v11  ;;  %5585 = vmatprep.mubr.bf16.mxu0 %v10575_v35  ;;  %v5769_v11 = vld [vmem:[%s10546_s12 + $0x78] sm:$0xff] }
 0x850   : > { %v5539_v2 = vpop.permute.xlu0 %5538  ;;  %v5661_v49 = vpop.permute.xlu1 %5660 }
 0x851   : > { %v5542_v40 = vsel %vm804_vm4, %v5537_v15, %v5539_v2  ;;  %v5543_v59 = vsel %vm804_vm4, %v5539_v2, %v5541_v39  ;;  %v7003_v2 = vld [vmem:[%s10546_s12 + $0x158] sm:$0xff] }
 0x852   : > { %v5548_v55 = vsel %vm1179_vm13, %v5542_v40, 0  ;;  %6976 = vmatmul.mubr.msk.bf16.vlgmr.msra.gmra.mxu1 %vm1175_vm14, %v6974_v29  ;;  %6978 = vmatprep.subr.msk.bf16.mxu0 %vm1179_vm13, %v5543_v59  ;;  %v5768_v29 = vld [vmem:[%s10546_s12 + $0x70] sm:$0xff] }
 0x853   : > { %5568 = vmatpush1.bf16.msra.mxu0 %v5548_v55  ;;  %5647 = vmatprep.mubr.bf16.mxu1 %v10575_v35  ;;  %v7002_v59 = vld [vmem:[%s10546_s12 + $0x150] sm:$0xff] }
 0x854   : > { %v5603_v42 = vpop.permute.xlu0 %5602  ;;  %v5601_v54 = vpop.permute.xlu1 %5600 }
 0x855   : > { %v5604_v43 = vsel %vm5015_vm7, %v5599_v5, %v5601_v54  ;;  %v5605_v20 = vsel %vm5015_vm7, %v5601_v54, %v5603_v42  ;;  %v5767_v54 = vld [vmem:[%s10546_s12 + $0x68] sm:$0xff] }
 0x856   : > { %v5610_v58 = vsel %vm1179_vm13, %v5604_v43, 0  ;;  %6979 = vmatmul.mubr.msk.bf16.vlgmr.msra.gmra.mxu0 %vm1175_vm14, %v6977_v17  ;;  %6981 = vmatprep.subr.msk.bf16.mxu1 %vm1179_vm13, %v5605_v20  ;;  %v7001_v43 = vld [vmem:[%s10546_s12 + $0x148] sm:$0xff] }
 0x857   : > { %5630 = vmatpush1.bf16.msra.mxu1 %v5610_v58  ;;  %5709 = vmatprep.mubr.bf16.mxu0 %v10575_v35 }
 0x858   : > { %v5663_v57 = vpop.permute.xlu0 %5662  ;;  %v5665_v22 = vpop.permute.xlu1 %5664  ;;  %5790 = vmatprep.subr.mxu1 %v9293_v18 }
 0x859   : > { %v5666_v48 = vsel %vm5078_vm8, %v5661_v49, %v5663_v57  ;;  %v5667_v36 = vsel %vm5078_vm8, %v5663_v57, %v5665_v22  ;;  %v5766_v22 = vld [vmem:[%s10546_s12 + $0x60] sm:$0xff] }
 0x85a   : > { %v5672_v38 = vsel %vm1179_vm13, %v5666_v48, 0  ;;  %6982 = vmatmul.mubr.msk.bf16.vlgmr.msra.gmra.mxu1 %vm1175_vm14, %v6980_v12  ;;  %6984 = vmatprep.subr.msk.bf16.mxu0 %vm1179_vm13, %v5667_v36  ;;  %v7000_v48 = vld [vmem:[%s10546_s12 + $0x140] sm:$0xff] }
 0x85b   : > { %5692 = vmatpush1.bf16.msra.mxu0 %v5672_v38  ;;  %5791 = vmatpush1.msra.mxu1 %v5769_v11  ;;  %v5772_v11 = vld [vmem:[%s10546_s12 + $0x90] sm:$0xff] }
 0x85c   : > { %5899 = vmatprep.subr.mxu0 %v9293_v18  ;;  %5792 = vmatprep.subr.mxu1 %v9293_v18 }
 0x85d   : > { %5793 = vmatpush1.msra.mxu1 %v5768_v29  ;;  %v7007_v29 = vld [vmem:[%s10546_s12 + $0x178] sm:$0xff] }
 0x85e   : > { %6985 = vmatmul.mubr.msk.bf16.vlgmr.msra.gmra.mxu0 %vm1175_vm14, %v6983_v63  ;;  %5794 = vmatprep.subr.mxu1 %v9293_v18 }
 0x85f   : > { %5900 = vmatpush1.msra.mxu0 %v7003_v2  ;;  %5795 = vmatpush1.msra.mxu1 %v5767_v54  ;;  %v5771_v2 = vld [vmem:[%s10546_s12 + $0x88] sm:$0xff] }
 0x860   : > { %5901 = vmatprep.subr.mxu0 %v9293_v18  ;;  %5796 = vmatprep.subr.mxu1 %v9293_v18 }
 0x861   : > { %5902 = vmatpush1.msra.mxu0 %v7002_v59  ;;  %5797 = vmatpush1.msra.mxu1 %v5766_v22  ;;  %v7005_v59 = vld [vmem:[%s10546_s12 + $0x168] sm:$0xff] }
 0x862   : > { %5903 = vmatprep.subr.mxu0 %v9293_v18  ;;  %5798 = vmatprep.subr.mxu1 %v9293_v18 }
 0x863   : > { %5904 = vmatpush1.msra.mxu0 %v7001_v43 }
 0x864   : > { %5905 = vmatprep.subr.mxu0 %v9293_v18 }
 0x865   : > { %v5724_v55 = vpop.permute.xlu0 %5723  ;;  %5906 = vmatpush1.msra.mxu0 %v7000_v48 }
 0x866   : > { %5907 = vmatprep.subr.mxu0 %v9293_v18 }
 0x88b   : > { %v5283_v35 = vpop.f32.mrf.mxu1 }
 0x88d   : > { %v5285_v53 = vpop.f32.mrf.mxu1 }
 0x88f   : > { %v5287_v56 = vpop.f32.mrf.mxu1 }
 0x891   : > { %v5288_v33 = vpop.f32.mrf.mxu1 }
 0x892   : > { %v5764_v33 = vld [vmem:[%s10546_s12 + $0x50] sm:$0xff] }
 0x8fe   : > { %v5233_v26 = vpop.f32.mrf.mxu0 }
 0x8ff   : > { %v5284_v1 = vadd.f32 %v5283_v35, %v5233_v26  ;;  %v5765_v35 = vld [vmem:[%s10546_s12 + $0x58] sm:$0xff] }
 0x900   : > { %v5235_v14 = vpop.f32.mrf.mxu0  ;;  %v6999_v26 = vld [vmem:[%s10546_s12 + $0x138] sm:$0xff]  ;;  %5799 = vmatpush1.msra.mxu1 %v5765_v35 }
 0x901   : > { %v5286_v3 = vadd.f32 %v5285_v53, %v5235_v14  ;;  %5800 = vmatprep.subr.mxu1 %v9293_v18  ;;  %v5763_v14 = vld [vmem:[%s10546_s12 + $0x48] sm:$0xff]  ;;  %5908 = vmatpush1.msra.mxu0 %v6999_v26 }
 0x902   : > { %v5237_v25 = vpop.f32.mrf.mxu0  ;;  %5801 = vmatpush1.msra.mxu1 %v5764_v33  ;;  %5909 = vmatprep.subr.mxu0 %v9293_v18  ;;  %v7031_v33 = vld [vmem:[%s10546_s12 + $0x228] sm:$0xff] }
 0x903   : > { %v6998_v25 = vld [vmem:[%s10546_s12 + $0x130] sm:$0xff]  ;;  %5802 = vmatprep.subr.mxu1 %v9293_v18 }
 0x904   : > { %v5238_v51 = vpop.f32.mrf.mxu0  ;;  %5803 = vmatpush1.msra.mxu1 %v5763_v14  ;;  %5910 = vmatpush1.msra.mxu0 %v6998_v25  ;;  %v7062_v14 = vld [vmem:[%s10546_s12 + $0x310] sm:$0xff]  ;;  %v7030_v25 = vld [vmem:[%s10546_s12 + $0x220] sm:$0xff] }
 0x905   : > { %v5762_v51 = vld [vmem:[%s10546_s12 + $0x40] sm:$0xff]  ;;  %5804 = vmatprep.subr.mxu1 %v9293_v18  ;;  %5911 = vmatprep.subr.mxu0 %v9293_v18 }
 0x906   : > { %v5340_v62 = vpop.f32.mrf.mxu0  ;;  %5805 = vmatpush1.msra.mxu1 %v5762_v51  ;;  %v7061_v51 = vld [vmem:[%s10546_s12 + $0x308] sm:$0xff] }
 0x907   : > { %v5347_v9 = vadd.f32 %v5340_v62, %v5284_v1  ;;  %v6997_v62 = vld [vmem:[%s10546_s12 + $0x128] sm:$0xff]  ;;  %5806 = vmatprep.subr.mxu1 %v9293_v18  ;;  %v6992_v1 = vld [vmem:[%s10546_s12 + $0x100] sm:$0xff] }
 0x908   : > { %v5342_v27 = vpop.f32.mrf.mxu0  ;;  %5912 = vmatpush1.msra.mxu0 %v6997_v62  ;;  %v7029_v62 = vld [vmem:[%s10546_s12 + $0x218] sm:$0xff] }
 0x909   : > { %v5348_v37 = vadd.f32 %v5342_v27, %v5286_v3  ;;  %v5761_v27 = vld [vmem:[%s10546_s12 + $0x38] sm:$0xff]  ;;  %5913 = vmatprep.subr.mxu0 %v9293_v18  ;;  %v5755_v3 = vld [vmem:[%s10546_s12 + $0x8] sm:$0xff] }
 0x90a   : > { %v5344_v46 = vpop.f32.mrf.mxu0  ;;  %v5399_v8 = vpop.f32.mrf.mxu1  ;;  %5807 = vmatpush1.msra.mxu1 %v5761_v27  ;;  %v7060_v27 = vld [vmem:[%s10546_s12 + $0x300] sm:$0xff] }
 0x90b   : > { %v5406_v4 = vadd.f32 %v5399_v8, %v5347_v9  ;;  %v6996_v46 = vld [vmem:[%s10546_s12 + $0x120] sm:$0xff]  ;;  %v5760_v8 = vld [vmem:[%s10546_s12 + $0x30] sm:$0xff]  ;;  %5808 = vmatprep.subr.mxu1 %v9293_v18 }
 0x90c   : > { %v5345_v24 = vpop.f32.mrf.mxu0  ;;  %v5401_v31 = vpop.f32.mrf.mxu1  ;;  %5914 = vmatpush1.msra.mxu0 %v6996_v46  ;;  %5809 = vmatpush1.msra.mxu1 %v5760_v8  ;;  %v6990_v9 = vld [vmem:[%s10546_s12 + $0xf0] sm:$0xff]  ;;  %v7059_v8 = vld [vmem:[%s10546_s12 + $0x2f8] sm:$0xff] }
 0x90d   : > { %v5407_v15 = vadd.f32 %v5401_v31, %v5348_v37  ;;  %v6995_v24 = vld [vmem:[%s10546_s12 + $0x118] sm:$0xff]  ;;  %5915 = vmatprep.subr.mxu0 %v9293_v18  ;;  %v5759_v31 = vld [vmem:[%s10546_s12 + $0x28] sm:$0xff]  ;;  %5810 = vmatprep.subr.mxu1 %v9293_v18  ;;  %v7028_v46 = vld [vmem:[%s10546_s12 + $0x210] sm:$0xff] }
 0x90e   : > { %v5403_v61 = vpop.f32.mrf.mxu1  ;;  %v5463_v6 = vpop.f32.mrf.mxu0  ;;  %5916 = vmatpush1.msra.mxu0 %v6995_v24  ;;  %5811 = vmatpush1.msra.mxu1 %v5759_v31  ;;  %v5781_v37 = vld [vmem:[%s10546_s12 + $0xd8] sm:$0x3f]  ;;  %v7027_v24 = vld [vmem:[%s10546_s12 + $0x208] sm:$0xff]  ;;  %v7058_v31 = vld [vmem:[%s10546_s12 + $0x2f0] sm:$0xff] }
 0x90f   : > { %v5470_v32 = vadd.f32 %v5463_v6, %v5406_v4  ;;  %v6994_v61 = vld [vmem:[%s10546_s12 + $0x110] sm:$0xff]  ;;  %5917 = vmatprep.subr.mxu0 %v9293_v18  ;;  %v5758_v6 = vld [vmem:[%s10546_s12 + $0x20] sm:$0xff]  ;;  %5812 = vmatprep.subr.mxu1 %v9293_v18 }
 0x910   : > { %v5404_v10 = vpop.f32.mrf.mxu1  ;;  %v5465_v30 = vpop.f32.mrf.mxu0  ;;  %5918 = vmatpush1.msra.mxu0 %v6994_v61  ;;  %5813 = vmatpush1.msra.mxu1 %v5758_v6  ;;  %v6988_v4 = vld [vmem:[%s10546_s12 + $0xe0] sm:$0xff]  ;;  %v7057_v6 = vld [vmem:[%s10546_s12 + $0x2e8] sm:$0xff] }
 0x911   : > { %v5471_v47 = vadd.f32 %v5465_v30, %v5407_v15  ;;  %v6993_v10 = vld [vmem:[%s10546_s12 + $0x108] sm:$0xff]  ;;  %5919 = vmatprep.subr.mxu0 %v9293_v18  ;;  %v5757_v30 = vld [vmem:[%s10546_s12 + $0x18] sm:$0xff]  ;;  %5814 = vmatprep.subr.mxu1 %v9293_v18  ;;  %v7026_v61 = vld [vmem:[%s10546_s12 + $0x200] sm:$0xff] }
 0x912   : > { %v5467_v21 = vpop.f32.mrf.mxu0  ;;  %v5525_v13 = vpop.f32.mrf.mxu1  ;;  %5920 = vmatpush1.msra.mxu0 %v6993_v10  ;;  %5815 = vmatpush1.msra.mxu1 %v5757_v30  ;;  %v5779_v15 = vld [vmem:[%s10546_s12 + $0xc8] sm:$0xff]  ;;  %v7025_v10 = vld [vmem:[%s10546_s12 + $0x1f8] sm:$0xff]  ;;  %v7056_v30 = vld [vmem:[%s10546_s12 + $0x2e0] sm:$0xff] }
 0x913   : > { %v5532_v39 = vadd.f32 %v5525_v13, %v5470_v32  ;;  %5921 = vmatprep.subr.mxu0 %v9293_v18  ;;  %v5756_v21 = vld [vmem:[%s10546_s12 + $0x10] sm:$0xff]  ;;  %v6991_v13 = vld [vmem:[%s10546_s12 + $0xf8] sm:$0xff]  ;;  %5816 = vmatprep.subr.mxu1 %v9293_v18 }
 0x914   : > { %v5468_v23 = vpop.f32.mrf.mxu0  ;;  %v5527_v7 = vpop.f32.mrf.mxu1  ;;  %5922 = vmatpush1.msra.mxu0 %v6992_v1  ;;  %5817 = vmatpush1.msra.mxu1 %v5756_v21  ;;  %v7014_v32 = vld [vmem:[%s10546_s12 + $0x1b0] sm:$0xff]  ;;  %v7055_v21 = vld [vmem:[%s10546_s12 + $0x2d8] sm:$0xff] }
 0x915   : > { %v5533_v52 = vadd.f32 %v5527_v7, %v5471_v47  ;;  %5923 = vmatprep.subr.mxu0 %v9293_v18  ;;  %5818 = vmatprep.subr.mxu1 %v9293_v18  ;;  %v5754_v23 = vld [vmem:[%s10546_s12] sm:$0xff]  ;;  %v6989_v7 = vld [vmem:[%s10546_s12 + $0xe8] sm:$0xff]  ;;  %v5777_v47 = vld [vmem:[%s10546_s12 + $0xb8] sm:$0xff] }
 0x916   : > { %v5529_v16 = vpop.f32.mrf.mxu1  ;;  %v5587_v0 = vpop.f32.mrf.mxu0  ;;  %5924 = vmatpush1.msra.mxu0 %v6991_v13  ;;  %5819 = vmatpush1.msra.mxu1 %v5755_v3  ;;  %v7024_v1 = vld [vmem:[%s10546_s12 + $0x1f0] sm:$0xff]  ;;  %v7023_v13 = vld [vmem:[%s10546_s12 + $0x1e8] sm:$0xff] }
 0x917   : > { %v5594_v19 = vadd.f32 %v5587_v0, %v5532_v39  ;;  %5925 = vmatprep.subr.mxu0 %v9293_v18  ;;  %5820 = vmatprep.subr.mxu1 %v9293_v18  ;;  %v5780_v16 = vld [vmem:[%s10546_s12 + $0xd0] sm:$0xff]  ;;  %v7015_v0 = vld [vmem:[%s10546_s12 + $0x1b8] sm:$0x3f]  ;;  %v7012_v39 = vld [vmem:[%s10546_s12 + $0x1a0] sm:$0xff] }
 0x918   : > { %v5530_v60 = vpop.f32.mrf.mxu1  ;;  %v5589_v45 = vpop.f32.mrf.mxu0  ;;  %5926 = vmatpush1.msra.mxu0 %v6990_v9  ;;  %5821 = vmatpush1.msra.mxu1 %v5754_v23  ;;  %v7054_v3 = vld [vmem:[%s10546_s12 + $0x2d0] sm:$0xff]  ;;  %v7022_v9 = vld [vmem:[%s10546_s12 + $0x1e0] sm:$0xff]  ;;  %v7053_v23 = vld [vmem:[%s10546_s12 + $0x2c8] sm:$0xff] }
 0x919   : > { %v5595_v28 = vadd.f32 %v5589_v45, %v5533_v52  ;;  %5927 = vmatprep.subr.mxu0 %v9293_v18  ;;  %5830 = vmatprep.subr.mxu1 %v9293_v18  ;;  %v5778_v60 = vld [vmem:[%s10546_s12 + $0xc0] sm:$0xff]  ;;  %v7013_v45 = vld [vmem:[%s10546_s12 + $0x1a8] sm:$0xff] }
 0x91a   : > { %v5591_v41 = vpop.f32.mrf.mxu0  ;;  %v5649_v50 = vpop.f32.mrf.mxu1  ;;  %5928 = vmatpush1.msra.mxu0 %v6989_v7  ;;  %6986 = vmatpush2.msk.msra.mxu1 %vm5786_vm1, %v5781_v37  ;;  %v5775_v52 = vld [vmem:[%s10546_s12 + $0xa8] sm:$0xff]  ;;  %v7021_v7 = vld [vmem:[%s10546_s12 + $0x1d8] sm:$0xff]  ;;  %v7052_v37 = vld [vmem:[%s10546_s12 + $0x2c0] sm:$0xff] }
 0x91b   : > { %v5656_v44 = vadd.f32 %v5649_v50, %v5594_v19  ;;  %5929 = vmatprep.subr.mxu0 %v9293_v18  ;;  %5832 = vmatprep.subr.mxu1 %v9293_v18  ;;  %v5776_v41 = vld [vmem:[%s10546_s12 + $0xb0] sm:$0xff]  ;;  %v7011_v50 = vld [vmem:[%s10546_s12 + $0x198] sm:$0xff] }
 0x91c   : > { %v5592_v5 = vpop.f32.mrf.mxu0  ;;  %v5651_v34 = vpop.f32.mrf.mxu1  ;;  %5930 = vmatpush1.msra.mxu0 %v6988_v4  ;;  %5833 = vmatpush2.msra.mxu1 %v5780_v16  ;;  %v7010_v19 = vld [vmem:[%s10546_s12 + $0x190] sm:$0xff]  ;;  %v7051_v16 = vld [vmem:[%s10546_s12 + $0x2b8] sm:$0xff] }
 0x91d   : > { %v5657_v17 = vadd.f32 %v5651_v34, %v5595_v28  ;;  %5939 = vmatprep.subr.mxu0 %v9293_v18  ;;  %5834 = vmatprep.subr.mxu1 %v9293_v18  ;;  %v5774_v5 = vld [vmem:[%s10546_s12 + $0xa0] sm:$0xff]  ;;  %v7009_v34 = vld [vmem:[%s10546_s12 + $0x188] sm:$0xff]  ;;  %v5773_v28 = vld [vmem:[%s10546_s12 + $0x98] sm:$0xff] }
 0x91e   : > { %v5711_v49 = vpop.f32.mrf.mxu0  ;;  %v5653_v40 = vpop.f32.mrf.mxu1  ;;  %7016 = vmatpush2.msk.msra.mxu0 %vm5786_vm1, %v7015_v0  ;;  %5835 = vmatpush2.msra.mxu1 %v5779_v15  ;;  %v7020_v4 = vld [vmem:[%s10546_s12 + $0x1d0] sm:$0xff]  ;;  %v7019_v0 = vld [vmem:[%s10546_s12 + $0x1c8] sm:$0xff] }
 0x91f   : > { %v5718_v42 = vadd.f32 %v5711_v49, %v5656_v44  ;;  %5941 = vmatprep.subr.mxu0 %v9293_v18  ;;  %5836 = vmatprep.subr.mxu1 %v9293_v18  ;;  %v7008_v44 = vld [vmem:[%s10546_s12 + $0x180] sm:$0xff]  ;;  %v7006_v49 = vld [vmem:[%s10546_s12 + $0x170] sm:$0xff] }
 0x920   : > { %v5713_v20 = vpop.f32.mrf.mxu0  ;;  %v5654_v58 = vpop.f32.mrf.mxu1  ;;  %5942 = vmatpush2.msra.mxu0 %v7014_v32  ;;  %5837 = vmatpush2.msra.mxu1 %v5778_v60  ;;  %v5770_v40 = vld [vmem:[%s10546_s12 + $0x80] sm:$0xff]  ;;  %v7050_v15 = vld [vmem:[%s10546_s12 + $0x2b0] sm:$0xff]  ;;  %v7049_v60 = vld [vmem:[%s10546_s12 + $0x2a8] sm:$0xff] }
 0x921   : > { %v9561_v12 = vadd.f32 %v5724_v55, %v5718_v42  ;;  %v5719_v57 = vadd.f32 %v5713_v20, %v5657_v17  ;;  %5943 = vmatprep.subr.mxu0 %v9293_v18  ;;  %5838 = vmatprep.subr.mxu1 %v9293_v18  ;;  %v7018_v32 = vld [vmem:[%s10546_s12 + $0x1c0] sm:$0xff] }
 0x922   : > { %v5715_v36 = vpop.f32.mrf.mxu0  ;;  %5944 = vmatpush2.msra.mxu0 %v7013_v45  ;;  %5839 = vmatpush2.msra.mxu1 %v5777_v47  ;;  %v7045_v45 = vld [vmem:[%s10546_s12 + $0x298] sm:$0x3f]  ;;  %v7048_v47 = vld [vmem:[%s10546_s12 + $0x2a0] sm:$0xff] }
 0x923   : > { %v5728_v38 = vmax.f32 %v9561_v12, 0.0  ;;  %v9572_v63 = vadd.f32 %v5724_v55, %v5719_v57  ;;  %5945 = vmatprep.subr.mxu0 %v9293_v18  ;;  %5840 = vmatprep.subr.mxu1 %v9293_v18  ;;  %v7004_v55 = vld [vmem:[%s10546_s12 + $0x160] sm:$0xff]  ;;  %v7033_v12 = vld [vmem:[%s10546_s12 + $0x238] sm:$0xff] }
 0x924   : > { %v5716_v53 = vpop.f32.mrf.mxu0  ;;  %5946 = vmatpush2.msra.mxu0 %v7012_v39  ;;  %5841 = vmatpush2.msra.mxu1 %v5776_v41  ;;  %v7044_v39 = vld [vmem:[%s10546_s12 + $0x290] sm:$0xff]  ;;  %v7075_v41 = vld [vmem:[%s10546_s12 + $0x378] sm:$0x3f] }
 0x925   : > { %v5729_v56 = vmax.f32 %v9572_v63, 0.0  ;;  %5732 = vrot.lane.b32.xlu1 %v5728_v38, %s7739_s15  ;;  %5947 = vmatprep.subr.mxu0 %v9293_v18  ;;  %v7032_v53 = vld [vmem:[%s10546_s12 + $0x230] sm:$0xff] }
 0x926   : > { %5948 = vmatpush2.msra.mxu0 %v7011_v50  ;;  %5842 = vmatprep.subr.mxu1 %v9293_v18  ;;  %v7043_v50 = vld [vmem:[%s10546_s12 + $0x288] sm:$0xff] }
 0x927   : > { %5734 = vrot.lane.b32.xlu0 %v5729_v56, %s7739_s15  ;;  %5949 = vmatprep.subr.mxu0 %v9293_v18  ;;  %s7682_s15 = scalar_lea.vmem %s7681_s26, 32 }
 0x928   : > { %5843 = vmatpush2.msra.mxu1 %v5775_v52  ;;  %5950 = vmatpush2.msra.mxu0 %v7010_v19  ;;  %v7074_v52 = vld [vmem:[%s10546_s12 + $0x370] sm:$0xff]  ;;  %v7042_v19 = vld [vmem:[%s10546_s12 + $0x280] sm:$0xff]  ;;  %p7684_p1 = scmp.lt.s32.totalorder %s7682_s15, %s7676_s22 }
 0x929   : > { %5844 = vmatprep.subr.mxu1 %v9293_v18  ;;  %5951 = vmatprep.subr.mxu0 %v9293_v18 }
 0x92a   : > { %5845 = vmatpush2.msra.mxu1 %v5774_v5  ;;  %5952 = vmatpush2.msra.mxu0 %v7009_v34  ;;  %v7073_v5 = vld [vmem:[%s10546_s12 + $0x368] sm:$0xff]  ;;  %v7041_v34 = vld [vmem:[%s10546_s12 + $0x278] sm:$0xff]  ;;  %p7685_p2 = por %p7684_p1, %p7683_p0 }
 0x92b   : > { %5846 = vmatprep.subr.mxu1 %v9293_v18  ;;  %5953 = vmatprep.subr.mxu0 %v9293_v18 }
 0x92c   : > { %5847 = vmatpush2.msra.mxu1 %v5773_v28  ;;  %5954 = vmatpush2.msra.mxu0 %v7008_v44  ;;  %v7072_v28 = vld [vmem:[%s10546_s12 + $0x360] sm:$0xff]  ;;  %v7040_v44 = vld [vmem:[%s10546_s12 + $0x270] sm:$0xff]  ;;  %p7686_p3 = pnand %p7685_p2, %p7679_p13 }
 0x92d   : > { %5848 = vmatprep.subr.mxu1 %v9293_v18  ;;  %5955 = vmatprep.subr.mxu0 %v9293_v18 }
 0x92e   : > { %5849 = vmatpush2.msra.mxu1 %v5772_v11  ;;  %5956 = vmatpush2.msra.mxu0 %v7007_v29  ;;  %v7071_v11 = vld [vmem:[%s10546_s12 + $0x358] sm:$0xff]  ;;  %v7039_v29 = vld [vmem:[%s10546_s12 + $0x268] sm:$0xff] }
 0x92f   : > { %5850 = vmatprep.subr.mxu1 %v9293_v18  ;;  %5957 = vmatprep.subr.mxu0 %v9293_v18 }
 0x930   : > { %5851 = vmatpush2.msra.mxu1 %v5771_v2  ;;  %5958 = vmatpush2.msra.mxu0 %v7006_v49  ;;  %v7070_v2 = vld [vmem:[%s10546_s12 + $0x350] sm:$0xff]  ;;  %v7038_v49 = vld [vmem:[%s10546_s12 + $0x260] sm:$0xff] }
 0x931   : > { %5852 = vmatprep.subr.mxu1 %v9293_v18  ;;  %5959 = vmatprep.subr.mxu0 %v9293_v18 }
 0x932   : > { %5853 = vmatpush2.msra.mxu1 %v5770_v40  ;;  %5960 = vmatpush2.msra.mxu0 %v7005_v59  ;;  %v7069_v40 = vld [vmem:[%s10546_s12 + $0x348] sm:$0xff]  ;;  %v7037_v59 = vld [vmem:[%s10546_s12 + $0x258] sm:$0xff] }
 0x933   : > { %5961 = vmatprep.subr.mxu0 %v9293_v18  ;;  %6007 = vmatprep.subr.mxu1 %v9293_v18 }
 0x934   : > { %5962 = vmatpush2.msra.mxu0 %v7004_v55  ;;  %v7068_v55 = vld [vmem:[%s10546_s12 + $0x340] sm:$0xff] }
 0x935   : > { %6115 = vmatprep.subr.mxu0 %v9293_v18 }
 0x997   : > { %v5733_v17 = vpop.permute.xlu1 %5732 }
 0x999   : > { %v5735_v42 = vpop.permute.xlu0 %5734 }
 0x99a   : > { %v5736_v54 = vsel %vm557_vm0, %v5733_v17, %v5735_v42  ;;  %v5740_v43 = vmax.f32 %v5729_v56, %v5735_v42  ;;  %v7063_v56 = vld [vmem:[%s10546_s12 + $0x318] sm:$0xff]  ;;  %v7036_v17 = vld [vmem:[%s10546_s12 + $0x250] sm:$0xff]  ;;  %vm6618_vm0 = vcmask 73728  }
 0x99b   : > { %v5739_v20 = vmax.f32 %v5728_v38, %v5736_v54  ;;  %v7067_v42 = vld [vmem:[%s10546_s12 + $0x338] sm:$0xff]  ;;  %v7035_v54 = vld [vmem:[%s10546_s12 + $0x248] sm:$0xff] }
 0x99c   : > { %5745 = vrot.lane.b32.xlu0 %v5740_v43, %s7751_s27 }
 0x99d   : > { %5743 = vrot.lane.b32.xlu1 %v5739_v20, %s7751_s27 }
 0xa0e   : > { %v5746_v58 = vpop.permute.xlu0 %5745 }
 0xa0f   : > { %v9786_v57 = vmax.f32 %v5740_v43, %v5746_v58  ;;  %v5744_v22 = vpop.permute.xlu1 %5743  ;;  %v7066_v43 = vld [vmem:[%s10546_s12 + $0x330] sm:$0xff] }
 0xa10   : > { %v5748_v48 = vsel %vm4763_vm2, %v5744_v22, %v5746_v58  ;;  %v7065_v58 = vld [vmem:[%s10546_s12 + $0x328] sm:$0xff] }
 0xa11   : > { %v9789_v36 = vmax.f32 %v5739_v20, %v5748_v48  ;;  %6987 = vmatprep.mubr.msk.f32.mxu1 %vm5078_vm8, %v9786_v57  ;;  %v5892_v63 = vrot.slane %v9786_v57, 1  ;;  %v6000_v38 = vrot.slane %v9786_v57, 2  ;;  %v6108_v26 = vrot.slane %v9786_v57, 3  ;;  %v7034_v20 = vld [vmem:[%s10546_s12 + $0x240] sm:$0xff] }
 0xa12   : > { %v7064_v48 = vld [vmem:[%s10546_s12 + $0x320] sm:$0xff] }
 0xa13   : > { %5855 = vmatmul.mubr.f32.vlgmr.msra.gmra.mxu1 %v9789_v36  ;;  %7017 = vmatprep.mubr.msk.f32.mxu0 %vm5078_vm8, %v5892_v63  ;;  %v5891_v35 = vrot.slane %v9789_v36, 1  ;;  %v5999_v22 = vrot.slane %v9789_v36, 2  ;;  %v7093_v63 = vld [vmem:[%s10546_s12 + $0x3f8] sm:$0xff] }
 0xa14   : > { %6008 = vmatpush1.msra.mxu1 %v7033_v12  ;;  %7047 = vmatprep.mubr.msk.f32.mxu1 %vm5078_vm8, %v6000_v38  ;;  %v6216_v12 = vrot.slane %v9786_v57, 4  ;;  %v6107_v38 = vrot.slane %v9789_v36, 3 }
 0xa15   : > { %6009 = vmatprep.subr.mxu1 %v9293_v18  ;;  %5964 = vmatmul.mubr.f32.vlgmr.msra.gmra.mxu0 %v5891_v35  ;;  %v7092_v35 = vld [vmem:[%s10546_s12 + $0x3f0] sm:$0xff] }
 0xa16   : > { %6010 = vmatpush1.msra.mxu1 %v7032_v53  ;;  %6116 = vmatpush1.msra.mxu0 %v7063_v56  ;;  %v7123_v53 = vld [vmem:[%s10546_s12 + $0x4d8] sm:$0xff]  ;;  %v6324_v56 = vrot.slane %v9786_v57, 5 }
 0xa17   : > { %6011 = vmatprep.subr.mxu1 %v9293_v18  ;;  %6117 = vmatprep.subr.mxu0 %v9293_v18 }
 0xa18   : > { %7077 = vmatprep.mubr.msk.f32.mxu0 %vm5078_vm8, %v6108_v26  ;;  %6012 = vmatpush1.msra.mxu1 %v7031_v33  ;;  %v7091_v33 = vld [vmem:[%s10546_s12 + $0x3e8] sm:$0xff]  ;;  %v7122_v26 = vld [vmem:[%s10546_s12 + $0x4d0] sm:$0xff] }
 0xa19   : > { %6118 = vmatpush1.msra.mxu0 %v7062_v14  ;;  %6013 = vmatprep.subr.mxu1 %v9293_v18  ;;  %v7090_v14 = vld [vmem:[%s10546_s12 + $0x3e0] sm:$0xff] }
 0xa1a   : > { %6119 = vmatprep.subr.mxu0 %v9293_v18  ;;  %6014 = vmatpush1.msra.mxu1 %v7030_v25  ;;  %v7121_v25 = vld [vmem:[%s10546_s12 + $0x4c8] sm:$0xff] }
 0xa1b   : > { %6120 = vmatpush1.msra.mxu0 %v7061_v51  ;;  %6015 = vmatprep.subr.mxu1 %v9293_v18  ;;  %v7089_v51 = vld [vmem:[%s10546_s12 + $0x3d8] sm:$0xff] }
 0xa1c   : > { %6121 = vmatprep.subr.mxu0 %v9293_v18  ;;  %6016 = vmatpush1.msra.mxu1 %v7029_v62  ;;  %v7120_v62 = vld [vmem:[%s10546_s12 + $0x4c0] sm:$0xff] }
 0xa1d   : > { %6122 = vmatpush1.msra.mxu0 %v7060_v27  ;;  %6017 = vmatprep.subr.mxu1 %v9293_v18  ;;  %v7088_v27 = vld [vmem:[%s10546_s12 + $0x3d0] sm:$0xff] }
 0xa1e   : > { %6123 = vmatprep.subr.mxu0 %v9293_v18  ;;  %6018 = vmatpush1.msra.mxu1 %v7028_v46  ;;  %v7119_v46 = vld [vmem:[%s10546_s12 + $0x4b8] sm:$0xff] }
 0xa1f   : > { %6124 = vmatpush1.msra.mxu0 %v7059_v8  ;;  %6019 = vmatprep.subr.mxu1 %v9293_v18  ;;  %v7087_v8 = vld [vmem:[%s10546_s12 + $0x3c8] sm:$0xff] }
 0xa20   : > { %6125 = vmatprep.subr.mxu0 %v9293_v18  ;;  %6020 = vmatpush1.msra.mxu1 %v7027_v24  ;;  %v7118_v24 = vld [vmem:[%s10546_s12 + $0x4b0] sm:$0xff] }
 0xa21   : > { %6126 = vmatpush1.msra.mxu0 %v7058_v31  ;;  %6021 = vmatprep.subr.mxu1 %v9293_v18  ;;  %v7086_v31 = vld [vmem:[%s10546_s12 + $0x3c0] sm:$0xff] }
 0xa22   : > { %6127 = vmatprep.subr.mxu0 %v9293_v18  ;;  %6022 = vmatpush1.msra.mxu1 %v7026_v61  ;;  %v7117_v61 = vld [vmem:[%s10546_s12 + $0x4a8] sm:$0xff] }
 0xa23   : > { %6128 = vmatpush1.msra.mxu0 %v7057_v6  ;;  %6023 = vmatprep.subr.mxu1 %v9293_v18  ;;  %v7085_v6 = vld [vmem:[%s10546_s12 + $0x3b8] sm:$0xff] }
 0xa24   : > { %6129 = vmatprep.subr.mxu0 %v9293_v18  ;;  %6024 = vmatpush1.msra.mxu1 %v7025_v10  ;;  %v7116_v10 = vld [vmem:[%s10546_s12 + $0x4a0] sm:$0xff] }
 0xa25   : > { %6130 = vmatpush1.msra.mxu0 %v7056_v30  ;;  %6025 = vmatprep.subr.mxu1 %v9293_v18  ;;  %v7084_v30 = vld [vmem:[%s10546_s12 + $0x3b0] sm:$0xff] }
 0xa26   : > { %6131 = vmatprep.subr.mxu0 %v9293_v18  ;;  %6026 = vmatpush1.msra.mxu1 %v7024_v1  ;;  %v7115_v1 = vld [vmem:[%s10546_s12 + $0x498] sm:$0xff] }
 0xa27   : > { %6132 = vmatpush1.msra.mxu0 %v7055_v21  ;;  %6027 = vmatprep.subr.mxu1 %v9293_v18  ;;  %v7083_v21 = vld [vmem:[%s10546_s12 + $0x3a8] sm:$0xff] }
 0xa28   : > { %6133 = vmatprep.subr.mxu0 %v9293_v18  ;;  %6028 = vmatpush1.msra.mxu1 %v7023_v13  ;;  %v7114_v13 = vld [vmem:[%s10546_s12 + $0x490] sm:$0xff] }
 0xa29   : > { %6134 = vmatpush1.msra.mxu0 %v7054_v3  ;;  %6029 = vmatprep.subr.mxu1 %v9293_v18  ;;  %v7082_v3 = vld [vmem:[%s10546_s12 + $0x3a0] sm:$0xff] }
 0xa2a   : > { %6135 = vmatprep.subr.mxu0 %v9293_v18  ;;  %6030 = vmatpush1.msra.mxu1 %v7022_v9  ;;  %v7113_v9 = vld [vmem:[%s10546_s12 + $0x488] sm:$0xff] }
 0xa2b   : > { %6136 = vmatpush1.msra.mxu0 %v7053_v23  ;;  %6031 = vmatprep.subr.mxu1 %v9293_v18  ;;  %v7081_v23 = vld [vmem:[%s10546_s12 + $0x398] sm:$0xff] }
 0xa2c   : > { %6137 = vmatprep.subr.mxu0 %v9293_v18  ;;  %6032 = vmatpush1.msra.mxu1 %v7021_v7  ;;  %v7112_v7 = vld [vmem:[%s10546_s12 + $0x480] sm:$0xff] }
 0xa2d   : > { %6138 = vmatpush1.msra.mxu0 %v7052_v37  ;;  %6033 = vmatprep.subr.mxu1 %v9293_v18  ;;  %v7080_v37 = vld [vmem:[%s10546_s12 + $0x390] sm:$0xff] }
 0xa2e   : > { %6139 = vmatprep.subr.mxu0 %v9293_v18  ;;  %6034 = vmatpush1.msra.mxu1 %v7020_v4  ;;  %v7111_v4 = vld [vmem:[%s10546_s12 + $0x478] sm:$0xff] }
 0xa2f   : > { %6140 = vmatpush1.msra.mxu0 %v7051_v16  ;;  %6035 = vmatprep.subr.mxu1 %v9293_v18  ;;  %v7079_v16 = vld [vmem:[%s10546_s12 + $0x388] sm:$0xff] }
 0xa30   : > { %6141 = vmatprep.subr.mxu0 %v9293_v18  ;;  %6036 = vmatpush1.msra.mxu1 %v7019_v0  ;;  %v7110_v0 = vld [vmem:[%s10546_s12 + $0x470] sm:$0xff] }
 0xa31   : > { %6142 = vmatpush1.msra.mxu0 %v7050_v15  ;;  %6037 = vmatprep.subr.mxu1 %v9293_v18  ;;  %v7078_v15 = vld [vmem:[%s10546_s12 + $0x380] sm:$0xff] }
 0xa32   : > { %6143 = vmatprep.subr.mxu0 %v9293_v18  ;;  %6038 = vmatpush1.msra.mxu1 %v7018_v32  ;;  %v7109_v32 = vld [vmem:[%s10546_s12 + $0x468] sm:$0xff] }
 0xa33   : > { %6144 = vmatpush1.msra.mxu0 %v7049_v60  ;;  %6047 = vmatprep.subr.mxu1 %v9293_v18  ;;  %v7105_v60 = vld [vmem:[%s10546_s12 + $0x458] sm:$0x3f] }
 0xa34   : > { %6145 = vmatprep.subr.mxu0 %v9293_v18  ;;  %7046 = vmatpush2.msk.msra.mxu1 %vm5786_vm1, %v7045_v45  ;;  %v7108_v45 = vld [vmem:[%s10546_s12 + $0x460] sm:$0xff] }
 0xa35   : > { %6146 = vmatpush1.msra.mxu0 %v7048_v47  ;;  %6049 = vmatprep.subr.mxu1 %v9293_v18  ;;  %v7104_v47 = vld [vmem:[%s10546_s12 + $0x450] sm:$0xff] }
 0xa36   : > { %6155 = vmatprep.subr.mxu0 %v9293_v18  ;;  %6050 = vmatpush2.msra.mxu1 %v7044_v39  ;;  %v7135_v39 = vld [vmem:[%s10546_s12 + $0x538] sm:$0x3f] }
 0xa37   : > { %7076 = vmatpush2.msk.msra.mxu0 %vm5786_vm1, %v7075_v41  ;;  %6051 = vmatprep.subr.mxu1 %v9293_v18  ;;  %v7103_v41 = vld [vmem:[%s10546_s12 + $0x448] sm:$0xff] }
 0xa38   : > { %6157 = vmatprep.subr.mxu0 %v9293_v18  ;;  %6052 = vmatpush2.msra.mxu1 %v7043_v50  ;;  %v7134_v50 = vld [vmem:[%s10546_s12 + $0x530] sm:$0xff] }
 0xa39   : > { %6158 = vmatpush2.msra.mxu0 %v7074_v52  ;;  %6053 = vmatprep.subr.mxu1 %v9293_v18  ;;  %v7102_v52 = vld [vmem:[%s10546_s12 + $0x440] sm:$0xff] }
 0xa3a   : > { %6159 = vmatprep.subr.mxu0 %v9293_v18  ;;  %6054 = vmatpush2.msra.mxu1 %v7042_v19  ;;  %v7133_v19 = vld [vmem:[%s10546_s12 + $0x528] sm:$0xff] }
 0xa3b   : > { %6160 = vmatpush2.msra.mxu0 %v7073_v5  ;;  %6055 = vmatprep.subr.mxu1 %v9293_v18  ;;  %v7101_v5 = vld [vmem:[%s10546_s12 + $0x438] sm:$0xff] }
 0xa3c   : > { %6161 = vmatprep.subr.mxu0 %v9293_v18  ;;  %6056 = vmatpush2.msra.mxu1 %v7041_v34  ;;  %v7132_v34 = vld [vmem:[%s10546_s12 + $0x520] sm:$0xff] }
 0xa3d   : > { %6162 = vmatpush2.msra.mxu0 %v7072_v28  ;;  %6057 = vmatprep.subr.mxu1 %v9293_v18  ;;  %v7100_v28 = vld [vmem:[%s10546_s12 + $0x430] sm:$0xff] }
 0xa3e   : > { %6163 = vmatprep.subr.mxu0 %v9293_v18  ;;  %6058 = vmatpush2.msra.mxu1 %v7040_v44  ;;  %v7131_v44 = vld [vmem:[%s10546_s12 + $0x518] sm:$0xff] }
 0xa3f   : > { %6164 = vmatpush2.msra.mxu0 %v7071_v11  ;;  %6059 = vmatprep.subr.mxu1 %v9293_v18  ;;  %v7099_v11 = vld [vmem:[%s10546_s12 + $0x428] sm:$0xff] }
 0xa40   : > { %6165 = vmatprep.subr.mxu0 %v9293_v18  ;;  %6060 = vmatpush2.msra.mxu1 %v7039_v29  ;;  %v7130_v29 = vld [vmem:[%s10546_s12 + $0x510] sm:$0xff] }
 0xa41   : > { %6166 = vmatpush2.msra.mxu0 %v7070_v2  ;;  %6061 = vmatprep.subr.mxu1 %v9293_v18  ;;  %v7098_v2 = vld [vmem:[%s10546_s12 + $0x420] sm:$0xff] }
 0xa42   : > { %6167 = vmatprep.subr.mxu0 %v9293_v18  ;;  %6062 = vmatpush2.msra.mxu1 %v7038_v49  ;;  %v7129_v49 = vld [vmem:[%s10546_s12 + $0x508] sm:$0xff] }
 0xa43   : > { %6168 = vmatpush2.msra.mxu0 %v7069_v40  ;;  %6063 = vmatprep.subr.mxu1 %v9293_v18  ;;  %v7097_v40 = vld [vmem:[%s10546_s12 + $0x418] sm:$0xff] }
 0xa44   : > { %6169 = vmatprep.subr.mxu0 %v9293_v18  ;;  %6064 = vmatpush2.msra.mxu1 %v7037_v59  ;;  %v7128_v59 = vld [vmem:[%s10546_s12 + $0x500] sm:$0xff] }
 0xa45   : > { %6170 = vmatpush2.msra.mxu0 %v7068_v55  ;;  %6065 = vmatprep.subr.mxu1 %v9293_v18  ;;  %v7096_v55 = vld [vmem:[%s10546_s12 + $0x410] sm:$0xff] }
 0xa46   : > { %6171 = vmatprep.subr.mxu0 %v9293_v18  ;;  %6066 = vmatpush2.msra.mxu1 %v7036_v17  ;;  %v7127_v17 = vld [vmem:[%s10546_s12 + $0x4f8] sm:$0xff] }
 0xa47   : > { %6172 = vmatpush2.msra.mxu0 %v7067_v42  ;;  %6067 = vmatprep.subr.mxu1 %v9293_v18  ;;  %v7095_v42 = vld [vmem:[%s10546_s12 + $0x408] sm:$0xff] }
 0xa48   : > { %6173 = vmatprep.subr.mxu0 %v9293_v18  ;;  %6068 = vmatpush2.msra.mxu1 %v7035_v54  ;;  %v7126_v54 = vld [vmem:[%s10546_s12 + $0x4f0] sm:$0xff] }
 0xa49   : > { %6174 = vmatpush2.msra.mxu0 %v7066_v43  ;;  %6069 = vmatprep.subr.mxu1 %v9293_v18  ;;  %v7094_v43 = vld [vmem:[%s10546_s12 + $0x400] sm:$0xff] }
 0xa4a   : > { %6175 = vmatprep.subr.mxu0 %v9293_v18  ;;  %6070 = vmatpush2.msra.mxu1 %v7034_v20  ;;  %v7125_v20 = vld [vmem:[%s10546_s12 + $0x4e8] sm:$0xff] }
 0xa4b   : > { %6176 = vmatpush2.msra.mxu0 %v7065_v58  ;;  %6072 = vmatmul.mubr.f32.vlgmr.msra.gmra.mxu1 %v5999_v22  ;;  %v6215_v58 = vrot.slane %v9789_v36, 4  ;;  %v7124_v22 = vld [vmem:[%s10546_s12 + $0x4e0] sm:$0xff] }
 0xa4c   : > { %6177 = vmatprep.subr.mxu0 %v9293_v18  ;;  %6223 = vmatprep.subr.mxu1 %v9293_v18 }
 0xa4d   : > { %6178 = vmatpush2.msra.mxu0 %v7064_v48  ;;  %6224 = vmatpush1.msra.mxu1 %v7093_v63  ;;  %v7153_v48 = vld [vmem:[%s10546_s12 + $0x5b8] sm:$0xff]  ;;  %v6432_v63 = vrot.slane %v9786_v57, 6 }
 0xa4e   : > { %7107 = vmatprep.mubr.msk.f32.mxu1 %vm5078_vm8, %v6216_v12  ;;  %6180 = vmatmul.mubr.f32.vlgmr.msra.gmra.mxu0 %v6107_v38  ;;  %v6323_v12 = vrot.slane %v9789_v36, 5  ;;  %v7152_v38 = vld [vmem:[%s10546_s12 + $0x5b0] sm:$0xff] }
 0xa4f   : > { %6225 = vmatprep.subr.mxu1 %v9293_v18  ;;  %6331 = vmatprep.subr.mxu0 %v9293_v18 }
 0xa50   : > { %6226 = vmatpush1.msra.mxu1 %v7092_v35  ;;  %6332 = vmatpush1.msra.mxu0 %v7123_v53  ;;  %v7183_v35 = vld [vmem:[%s10546_s12 + $0x698] sm:$0xff]  ;;  %v6540_v53 = vrot.slane %v9786_v57, 7  ;;  %v7181_v57 = vld [vmem:[%s10546_s12 + $0x688] sm:$0xff] }
 0xa51   : > { %7137 = vmatprep.mubr.msk.f32.mxu0 %vm5078_vm8, %v6324_v56  ;;  %6227 = vmatprep.subr.mxu1 %v9293_v18  ;;  %v7151_v56 = vld [vmem:[%s10546_s12 + $0x5a8] sm:$0xff] }
 0xa52   : > { %6333 = vmatprep.subr.mxu0 %v9293_v18  ;;  %6228 = vmatpush1.msra.mxu1 %v7091_v33  ;;  %v7182_v33 = vld [vmem:[%s10546_s12 + $0x690] sm:$0xff] }
 0xa53   : > { %6334 = vmatpush1.msra.mxu0 %v7122_v26  ;;  %6229 = vmatprep.subr.mxu1 %v9293_v18  ;;  %v7150_v26 = vld [vmem:[%s10546_s12 + $0x5a0] sm:$0xff] }
 0xa54   : > { %6335 = vmatprep.subr.mxu0 %v9293_v18  ;;  %6230 = vmatpush1.msra.mxu1 %v7090_v14  ;;  %v7149_v14 = vld [vmem:[%s10546_s12 + $0x598] sm:$0xff] }
 0xa55   : > { %6336 = vmatpush1.msra.mxu0 %v7121_v25  ;;  %6231 = vmatprep.subr.mxu1 %v9293_v18  ;;  %v7180_v25 = vld [vmem:[%s10546_s12 + $0x680] sm:$0xff] }
 0xa56   : > { %6337 = vmatprep.subr.mxu0 %v9293_v18  ;;  %6232 = vmatpush1.msra.mxu1 %v7089_v51  ;;  %v7148_v51 = vld [vmem:[%s10546_s12 + $0x590] sm:$0xff] }
 0xa57   : > { %6338 = vmatpush1.msra.mxu0 %v7120_v62  ;;  %6233 = vmatprep.subr.mxu1 %v9293_v18  ;;  %v7179_v62 = vld [vmem:[%s10546_s12 + $0x678] sm:$0xff] }
 0xa58   : > { %6339 = vmatprep.subr.mxu0 %v9293_v18  ;;  %6234 = vmatpush1.msra.mxu1 %v7088_v27  ;;  %v7147_v27 = vld [vmem:[%s10546_s12 + $0x588] sm:$0xff] }
 0xa59   : > { %6340 = vmatpush1.msra.mxu0 %v7119_v46  ;;  %6235 = vmatprep.subr.mxu1 %v9293_v18  ;;  %v7178_v46 = vld [vmem:[%s10546_s12 + $0x670] sm:$0xff] }
 0xa5a   : > { %6341 = vmatprep.subr.mxu0 %v9293_v18  ;;  %6236 = vmatpush1.msra.mxu1 %v7087_v8  ;;  %v7146_v8 = vld [vmem:[%s10546_s12 + $0x580] sm:$0xff] }
 0xa5b   : > { %6342 = vmatpush1.msra.mxu0 %v7118_v24  ;;  %6237 = vmatprep.subr.mxu1 %v9293_v18  ;;  %v7177_v24 = vld [vmem:[%s10546_s12 + $0x668] sm:$0xff] }
 0xa5c   : > { %6343 = vmatprep.subr.mxu0 %v9293_v18  ;;  %6238 = vmatpush1.msra.mxu1 %v7086_v31  ;;  %v7145_v31 = vld [vmem:[%s10546_s12 + $0x578] sm:$0xff] }
 0xa5d   : > { %6344 = vmatpush1.msra.mxu0 %v7117_v61  ;;  %6239 = vmatprep.subr.mxu1 %v9293_v18  ;;  %v7176_v61 = vld [vmem:[%s10546_s12 + $0x660] sm:$0xff] }
 0xa5e   : > { %6345 = vmatprep.subr.mxu0 %v9293_v18  ;;  %6240 = vmatpush1.msra.mxu1 %v7085_v6  ;;  %v7144_v6 = vld [vmem:[%s10546_s12 + $0x570] sm:$0xff] }
 0xa5f   : > { %6346 = vmatpush1.msra.mxu0 %v7116_v10  ;;  %6241 = vmatprep.subr.mxu1 %v9293_v18  ;;  %v7175_v10 = vld [vmem:[%s10546_s12 + $0x658] sm:$0xff] }
 0xa60   : > { %6347 = vmatprep.subr.mxu0 %v9293_v18  ;;  %6242 = vmatpush1.msra.mxu1 %v7084_v30  ;;  %v7143_v30 = vld [vmem:[%s10546_s12 + $0x568] sm:$0xff] }
 0xa61   : > { %6348 = vmatpush1.msra.mxu0 %v7115_v1  ;;  %6243 = vmatprep.subr.mxu1 %v9293_v18  ;;  %v7174_v1 = vld [vmem:[%s10546_s12 + $0x650] sm:$0xff] }
 0xa62   : > { %6349 = vmatprep.subr.mxu0 %v9293_v18  ;;  %6244 = vmatpush1.msra.mxu1 %v7083_v21  ;;  %v7142_v21 = vld [vmem:[%s10546_s12 + $0x560] sm:$0xff] }
 0xa63   : > { %6350 = vmatpush1.msra.mxu0 %v7114_v13  ;;  %6245 = vmatprep.subr.mxu1 %v9293_v18  ;;  %v7173_v13 = vld [vmem:[%s10546_s12 + $0x648] sm:$0xff] }
 0xa64   : > { %6351 = vmatprep.subr.mxu0 %v9293_v18  ;;  %6246 = vmatpush1.msra.mxu1 %v7082_v3  ;;  %v7141_v3 = vld [vmem:[%s10546_s12 + $0x558] sm:$0xff] }
 0xa65   : > { %6352 = vmatpush1.msra.mxu0 %v7113_v9  ;;  %6247 = vmatprep.subr.mxu1 %v9293_v18  ;;  %v7172_v9 = vld [vmem:[%s10546_s12 + $0x640] sm:$0xff] }
 0xa66   : > { %6353 = vmatprep.subr.mxu0 %v9293_v18  ;;  %6248 = vmatpush1.msra.mxu1 %v7081_v23  ;;  %v7140_v23 = vld [vmem:[%s10546_s12 + $0x550] sm:$0xff] }
 0xa67   : > { %6354 = vmatpush1.msra.mxu0 %v7112_v7  ;;  %6249 = vmatprep.subr.mxu1 %v9293_v18  ;;  %v7171_v7 = vld [vmem:[%s10546_s12 + $0x638] sm:$0xff] }
 0xa68   : > { %6355 = vmatprep.subr.mxu0 %v9293_v18  ;;  %6250 = vmatpush1.msra.mxu1 %v7080_v37  ;;  %v7139_v37 = vld [vmem:[%s10546_s12 + $0x548] sm:$0xff] }
 0xa69   : > { %6356 = vmatpush1.msra.mxu0 %v7111_v4  ;;  %6251 = vmatprep.subr.mxu1 %v9293_v18  ;;  %v7170_v4 = vld [vmem:[%s10546_s12 + $0x630] sm:$0xff] }
 0xa6a   : > { %6357 = vmatprep.subr.mxu0 %v9293_v18  ;;  %6252 = vmatpush1.msra.mxu1 %v7079_v16  ;;  %v7138_v16 = vld [vmem:[%s10546_s12 + $0x540] sm:$0xff] }
 0xa6b   : > { %6358 = vmatpush1.msra.mxu0 %v7110_v0  ;;  %6253 = vmatprep.subr.mxu1 %v9293_v18  ;;  %v7169_v0 = vld [vmem:[%s10546_s12 + $0x628] sm:$0xff] }
 0xa6c   : > { %6359 = vmatprep.subr.mxu0 %v9293_v18  ;;  %6254 = vmatpush1.msra.mxu1 %v7078_v15  ;;  %v7165_v15 = vld [vmem:[%s10546_s12 + $0x618] sm:$0x3f] }
 0xa6d   : > { %6360 = vmatpush1.msra.mxu0 %v7109_v32  ;;  %6263 = vmatprep.subr.mxu1 %v9293_v18  ;;  %v7168_v32 = vld [vmem:[%s10546_s12 + $0x620] sm:$0xff] }
 0xa6e   : > { %6361 = vmatprep.subr.mxu0 %v9293_v18  ;;  %7106 = vmatpush2.msk.msra.mxu1 %vm5786_vm1, %v7105_v60  ;;  %v7164_v60 = vld [vmem:[%s10546_s12 + $0x610] sm:$0xff] }
 0xa6f   : > { %6362 = vmatpush1.msra.mxu0 %v7108_v45  ;;  %6265 = vmatprep.subr.mxu1 %v9293_v18  ;;  %v7195_v45 = vld [vmem:[%s10546_s12 + $0x6f8] sm:$0x3f] }
 0xa70   : > { %6371 = vmatprep.subr.mxu0 %v9293_v18  ;;  %6266 = vmatpush2.msra.mxu1 %v7104_v47  ;;  %v7163_v47 = vld [vmem:[%s10546_s12 + $0x608] sm:$0xff] }
 0xa71   : > { %7136 = vmatpush2.msk.msra.mxu0 %vm5786_vm1, %v7135_v39  ;;  %6267 = vmatprep.subr.mxu1 %v9293_v18  ;;  %v7194_v39 = vld [vmem:[%s10546_s12 + $0x6f0] sm:$0xff] }
 0xa72   : > { %6373 = vmatprep.subr.mxu0 %v9293_v18  ;;  %6268 = vmatpush2.msra.mxu1 %v7103_v41  ;;  %v7162_v41 = vld [vmem:[%s10546_s12 + $0x600] sm:$0xff] }
 0xa73   : > { %6374 = vmatpush2.msra.mxu0 %v7134_v50  ;;  %6269 = vmatprep.subr.mxu1 %v9293_v18  ;;  %v7193_v50 = vld [vmem:[%s10546_s12 + $0x6e8] sm:$0xff] }
 0xa74   : > { %6375 = vmatprep.subr.mxu0 %v9293_v18  ;;  %6270 = vmatpush2.msra.mxu1 %v7102_v52  ;;  %v7161_v52 = vld [vmem:[%s10546_s12 + $0x5f8] sm:$0xff] }
 0xa75   : > { %6376 = vmatpush2.msra.mxu0 %v7133_v19  ;;  %6271 = vmatprep.subr.mxu1 %v9293_v18  ;;  %v7192_v19 = vld [vmem:[%s10546_s12 + $0x6e0] sm:$0xff] }
 0xa76   : > { %6377 = vmatprep.subr.mxu0 %v9293_v18  ;;  %6272 = vmatpush2.msra.mxu1 %v7101_v5  ;;  %v7160_v5 = vld [vmem:[%s10546_s12 + $0x5f0] sm:$0xff] }
 0xa77   : > { %6378 = vmatpush2.msra.mxu0 %v7132_v34  ;;  %6273 = vmatprep.subr.mxu1 %v9293_v18  ;;  %v7191_v34 = vld [vmem:[%s10546_s12 + $0x6d8] sm:$0xff] }
 0xa78   : > { %6379 = vmatprep.subr.mxu0 %v9293_v18  ;;  %6274 = vmatpush2.msra.mxu1 %v7100_v28  ;;  %v7159_v28 = vld [vmem:[%s10546_s12 + $0x5e8] sm:$0xff] }
 0xa79   : > { %6380 = vmatpush2.msra.mxu0 %v7131_v44  ;;  %6275 = vmatprep.subr.mxu1 %v9293_v18  ;;  %v7190_v44 = vld [vmem:[%s10546_s12 + $0x6d0] sm:$0xff] }
 0xa7a   : > { %6381 = vmatprep.subr.mxu0 %v9293_v18  ;;  %6276 = vmatpush2.msra.mxu1 %v7099_v11  ;;  %v7158_v11 = vld [vmem:[%s10546_s12 + $0x5e0] sm:$0xff] }
 0xa7b   : > { %6382 = vmatpush2.msra.mxu0 %v7130_v29  ;;  %6277 = vmatprep.subr.mxu1 %v9293_v18  ;;  %v7189_v29 = vld [vmem:[%s10546_s12 + $0x6c8] sm:$0xff] }
 0xa7c   : > { %6383 = vmatprep.subr.mxu0 %v9293_v18  ;;  %6278 = vmatpush2.msra.mxu1 %v7098_v2  ;;  %v7157_v2 = vld [vmem:[%s10546_s12 + $0x5d8] sm:$0xff] }
 0xa7d   : > { %6384 = vmatpush2.msra.mxu0 %v7129_v49  ;;  %6279 = vmatprep.subr.mxu1 %v9293_v18  ;;  %v7188_v49 = vld [vmem:[%s10546_s12 + $0x6c0] sm:$0xff] }
 0xa7e   : > { %6385 = vmatprep.subr.mxu0 %v9293_v18  ;;  %6280 = vmatpush2.msra.mxu1 %v7097_v40  ;;  %v7156_v40 = vld [vmem:[%s10546_s12 + $0x5d0] sm:$0xff] }
 0xa7f   : > { %6386 = vmatpush2.msra.mxu0 %v7128_v59  ;;  %6281 = vmatprep.subr.mxu1 %v9293_v18  ;;  %v7187_v59 = vld [vmem:[%s10546_s12 + $0x6b8] sm:$0xff] }
 0xa80   : > { %6387 = vmatprep.subr.mxu0 %v9293_v18  ;;  %6282 = vmatpush2.msra.mxu1 %v7096_v55  ;;  %v7155_v55 = vld [vmem:[%s10546_s12 + $0x5c8] sm:$0xff] }
 0xa81   : > { %6388 = vmatpush2.msra.mxu0 %v7127_v17  ;;  %6283 = vmatprep.subr.mxu1 %v9293_v18  ;;  %v7186_v17 = vld [vmem:[%s10546_s12 + $0x6b0] sm:$0xff] }
 0xa82   : > { %6389 = vmatprep.subr.mxu0 %v9293_v18  ;;  %6284 = vmatpush2.msra.mxu1 %v7095_v42  ;;  %v7154_v42 = vld [vmem:[%s10546_s12 + $0x5c0] sm:$0xff] }
 0xa83   : > { %6390 = vmatpush2.msra.mxu0 %v7126_v54  ;;  %6285 = vmatprep.subr.mxu1 %v9293_v18  ;;  %v7185_v54 = vld [vmem:[%s10546_s12 + $0x6a8] sm:$0xff] }
 0xa84   : > { %6391 = vmatprep.subr.mxu0 %v9293_v18  ;;  %6286 = vmatpush2.msra.mxu1 %v7094_v43  ;;  %v6431_v43 = vrot.slane %v9789_v36, 6 }
 0xa85   : > { %6392 = vmatpush2.msra.mxu0 %v7125_v20  ;;  %6288 = vmatmul.mubr.f32.vlgmr.msra.gmra.mxu1 %v6215_v58  ;;  %v7184_v20 = vld [vmem:[%s10546_s12 + $0x6a0] sm:$0xff]  ;;  %v6539_v58 = vrot.slane %v9789_v36, 7 }
 0xa86   : > { %6393 = vmatprep.subr.mxu0 %v9293_v18  ;;  %6439 = vmatprep.subr.mxu1 %v9293_v18 }
 0xa87   : > { %6394 = vmatpush2.msra.mxu0 %v7124_v22  ;;  %6440 = vmatpush1.msra.mxu1 %v7153_v48  ;;  %v5753_v22 = vld [vmem:[%s10547_s13] sm:$0x1] }
 0xa88   : > { %7167 = vmatprep.mubr.msk.f32.mxu1 %vm5078_vm8, %v6432_v63  ;;  %6396 = vmatmul.mubr.f32.vlgmr.msra.gmra.mxu0 %v6323_v12 }
 0xa89   : > { %6441 = vmatprep.subr.mxu1 %v9293_v18  ;;  %6547 = vmatprep.subr.mxu0 %v9293_v18 }
 0xa8a   : > { %6442 = vmatpush1.msra.mxu1 %v7152_v38  ;;  %6548 = vmatpush1.msra.mxu0 %v7183_v35 }
 0xa8b   : > { %7197 = vmatprep.mubr.msk.f32.mxu0 %vm5078_vm8, %v6540_v53  ;;  %6443 = vmatprep.subr.mxu1 %v9293_v18 }
 0xa8c   : > { %6549 = vmatprep.subr.mxu0 %v9293_v18  ;;  %6444 = vmatpush1.msra.mxu1 %v7151_v56 }
 0xa8d   : > { %6550 = vmatpush1.msra.mxu0 %v7182_v33  ;;  %6445 = vmatprep.subr.mxu1 %v9293_v18 }
 0xa8e   : > { %6551 = vmatprep.subr.mxu0 %v9293_v18  ;;  %6446 = vmatpush1.msra.mxu1 %v7150_v26 }
 0xa8f   : > { %6552 = vmatpush1.msra.mxu0 %v7181_v57  ;;  %6447 = vmatprep.subr.mxu1 %v9293_v18 }
 0xa90   : > { %6553 = vmatprep.subr.mxu0 %v9293_v18  ;;  %6448 = vmatpush1.msra.mxu1 %v7149_v14 }
 0xa91   : > { %6554 = vmatpush1.msra.mxu0 %v7180_v25  ;;  %6449 = vmatprep.subr.mxu1 %v9293_v18 }
 0xa92   : > { %6555 = vmatprep.subr.mxu0 %v9293_v18  ;;  %6450 = vmatpush1.msra.mxu1 %v7148_v51 }
 0xa93   : > { %6556 = vmatpush1.msra.mxu0 %v7179_v62  ;;  %6451 = vmatprep.subr.mxu1 %v9293_v18 }
 0xa94   : > { %6557 = vmatprep.subr.mxu0 %v9293_v18  ;;  %6452 = vmatpush1.msra.mxu1 %v7147_v27 }
 0xa95   : > { %6558 = vmatpush1.msra.mxu0 %v7178_v46  ;;  %6453 = vmatprep.subr.mxu1 %v9293_v18 }
 0xa96   : > { %6559 = vmatprep.subr.mxu0 %v9293_v18  ;;  %6454 = vmatpush1.msra.mxu1 %v7146_v8 }
 0xa97   : > { %6560 = vmatpush1.msra.mxu0 %v7177_v24  ;;  %6455 = vmatprep.subr.mxu1 %v9293_v18 }
 0xa98   : > { %6561 = vmatprep.subr.mxu0 %v9293_v18  ;;  %6456 = vmatpush1.msra.mxu1 %v7145_v31 }
 0xa99   : > { %6562 = vmatpush1.msra.mxu0 %v7176_v61  ;;  %6457 = vmatprep.subr.mxu1 %v9293_v18 }
 0xa9a   : > { %6563 = vmatprep.subr.mxu0 %v9293_v18  ;;  %6458 = vmatpush1.msra.mxu1 %v7144_v6 }
 0xa9b   : > { %6564 = vmatpush1.msra.mxu0 %v7175_v10  ;;  %6459 = vmatprep.subr.mxu1 %v9293_v18 }
 0xa9c   : > { %6565 = vmatprep.subr.mxu0 %v9293_v18  ;;  %6460 = vmatpush1.msra.mxu1 %v7143_v30 }
 0xa9d   : > { %6566 = vmatpush1.msra.mxu0 %v7174_v1  ;;  %6461 = vmatprep.subr.mxu1 %v9293_v18 }
 0xa9e   : > { %6567 = vmatprep.subr.mxu0 %v9293_v18  ;;  %6462 = vmatpush1.msra.mxu1 %v7142_v21 }
 0xa9f   : > { %6568 = vmatpush1.msra.mxu0 %v7173_v13  ;;  %6463 = vmatprep.subr.mxu1 %v9293_v18 }
 0xaa0   : > { %6569 = vmatprep.subr.mxu0 %v9293_v18  ;;  %6464 = vmatpush1.msra.mxu1 %v7141_v3 }
 0xaa1   : > { %6570 = vmatpush1.msra.mxu0 %v7172_v9  ;;  %6465 = vmatprep.subr.mxu1 %v9293_v18 }
 0xaa2   : > { %6571 = vmatprep.subr.mxu0 %v9293_v18  ;;  %6466 = vmatpush1.msra.mxu1 %v7140_v23 }
 0xaa3   : > { %6572 = vmatpush1.msra.mxu0 %v7171_v7  ;;  %6467 = vmatprep.subr.mxu1 %v9293_v18 }
 0xaa4   : > { %6573 = vmatprep.subr.mxu0 %v9293_v18  ;;  %6468 = vmatpush1.msra.mxu1 %v7139_v37 }
 0xaa5   : > { %6574 = vmatpush1.msra.mxu0 %v7170_v4  ;;  %6469 = vmatprep.subr.mxu1 %v9293_v18 }
 0xaa6   : > { %6575 = vmatprep.subr.mxu0 %v9293_v18  ;;  %6470 = vmatpush1.msra.mxu1 %v7138_v16 }
 0xaa7   : > { %6576 = vmatpush1.msra.mxu0 %v7169_v0  ;;  %6479 = vmatprep.subr.mxu1 %v9293_v18 }
 0xaa8   : > { %6577 = vmatprep.subr.mxu0 %v9293_v18  ;;  %7166 = vmatpush2.msk.msra.mxu1 %vm5786_vm1, %v7165_v15 }
 0xaa9   : > { %6578 = vmatpush1.msra.mxu0 %v7168_v32  ;;  %6481 = vmatprep.subr.mxu1 %v9293_v18 }
 0xaaa   : > { %6587 = vmatprep.subr.mxu0 %v9293_v18  ;;  %6482 = vmatpush2.msra.mxu1 %v7164_v60 }
 0xaab   : > { %7196 = vmatpush2.msk.msra.mxu0 %vm5786_vm1, %v7195_v45  ;;  %6483 = vmatprep.subr.mxu1 %v9293_v18 }
 0xaac   : > { %6589 = vmatprep.subr.mxu0 %v9293_v18  ;;  %6484 = vmatpush2.msra.mxu1 %v7163_v47 }
 0xaad   : > { %6590 = vmatpush2.msra.mxu0 %v7194_v39  ;;  %6485 = vmatprep.subr.mxu1 %v9293_v18 }
 0xaae   : > { %6591 = vmatprep.subr.mxu0 %v9293_v18  ;;  %6486 = vmatpush2.msra.mxu1 %v7162_v41 }
 0xaaf   : > { %6592 = vmatpush2.msra.mxu0 %v7193_v50  ;;  %6487 = vmatprep.subr.mxu1 %v9293_v18 }
 0xab0   : > { %6593 = vmatprep.subr.mxu0 %v9293_v18  ;;  %6488 = vmatpush2.msra.mxu1 %v7161_v52 }
 0xab1   : > { %6594 = vmatpush2.msra.mxu0 %v7192_v19  ;;  %6489 = vmatprep.subr.mxu1 %v9293_v18 }
 0xab2   : > { %6595 = vmatprep.subr.mxu0 %v9293_v18  ;;  %6490 = vmatpush2.msra.mxu1 %v7160_v5 }
 0xab3   : > { %6596 = vmatpush2.msra.mxu0 %v7191_v34  ;;  %6491 = vmatprep.subr.mxu1 %v9293_v18 }
 0xab4   : > { %6597 = vmatprep.subr.mxu0 %v9293_v18  ;;  %6492 = vmatpush2.msra.mxu1 %v7159_v28 }
 0xab5   : > { %6598 = vmatpush2.msra.mxu0 %v7190_v44  ;;  %6493 = vmatprep.subr.mxu1 %v9293_v18 }
 0xab6   : > { %6599 = vmatprep.subr.mxu0 %v9293_v18  ;;  %6494 = vmatpush2.msra.mxu1 %v7158_v11 }
 0xab7   : > { %6600 = vmatpush2.msra.mxu0 %v7189_v29  ;;  %6495 = vmatprep.subr.mxu1 %v9293_v18 }
 0xab8   : > { %6601 = vmatprep.subr.mxu0 %v9293_v18  ;;  %6496 = vmatpush2.msra.mxu1 %v7157_v2 }
 0xab9   : > { %6602 = vmatpush2.msra.mxu0 %v7188_v49  ;;  %6497 = vmatprep.subr.mxu1 %v9293_v18 }
 0xaba   : > { %6603 = vmatprep.subr.mxu0 %v9293_v18  ;;  %6498 = vmatpush2.msra.mxu1 %v7156_v40 }
 0xabb   : > { %6604 = vmatpush2.msra.mxu0 %v7187_v59  ;;  %6499 = vmatprep.subr.mxu1 %v9293_v18 }
 0xabc   : > { %6605 = vmatprep.subr.mxu0 %v9293_v18  ;;  %6500 = vmatpush2.msra.mxu1 %v7155_v55 }
 0xabd   : > { %6606 = vmatpush2.msra.mxu0 %v7186_v17  ;;  %6501 = vmatprep.subr.mxu1 %v9293_v18 }
 0xabe   : > { %6607 = vmatprep.subr.mxu0 %v9293_v18  ;;  %6502 = vmatpush2.msra.mxu1 %v7154_v42 }
 0xabf   : > { %6608 = vmatpush2.msra.mxu0 %v7185_v54  ;;  %6504 = vmatmul.mubr.f32.vlgmr.msra.gmra.mxu1 %v6431_v43 }
 0xac0   : > { %6609 = vmatprep.subr.mxu0 %v9293_v18 }
 0xac1   : > { %6610 = vmatpush2.msra.mxu0 %v7184_v20 }
 0xac2   : > { %6612 = vmatmul.mubr.f32.vlgmr.msra.gmra.mxu0 %v6539_v58 }
 0xad3   : > { %v5856_v48 = vpop.f32.mrf.mxu1 }
 0xad4   : > { %v5860_v63 = vadd.f32 %v5856_v48, %v5753_v22 }
 0xad5   : > { %v5858_v12 = vpop.f32.mrf.mxu1  ;;  %v5965_v38 = vpop.f32.mrf.mxu0 }
 0xad6   : > { %v5969_v35 = vadd.f32 %v5965_v38, %v5860_v63 }
 0xad7   : > { %v5967_v53 = vpop.f32.mrf.mxu0 }
 0xb0b   : > { %v6073_v56 = vpop.f32.mrf.mxu1 }
 0xb0c   : > { %v6077_v33 = vadd.f32 %v6073_v56, %v5969_v35 }
 0xb0d   : > { %v6075_v26 = vpop.f32.mrf.mxu1 }
 0xb0e   : > { %v6181_v18 = vpop.f32.mrf.mxu0 }
 0xb0f   : > { %v6185_v57 = vadd.f32 %v6181_v18, %v6077_v33 }
 0xb10   : > { %v6183_v36 = vpop.f32.mrf.mxu0 }
 0xb45   : > { %v6289_v14 = vpop.f32.mrf.mxu1 }
 0xb46   : > { %v6293_v27 = vadd.f32 %v6289_v14, %v6185_v57 }
 0xb47   : > { %v6291_v25 = vpop.f32.mrf.mxu1 }
 0xb48   : > { %v6397_v51 = vpop.f32.mrf.mxu0 }
 0xb49   : > { %v6401_v46 = vadd.f32 %v6397_v51, %v6293_v27 }
 0xb4a   : > { %v6399_v62 = vpop.f32.mrf.mxu0 }
 0xb7f   : > { %v6505_v8 = vpop.f32.mrf.mxu1 }
 0xb80   : > { %v6509_v24 = vadd.f32 %v6505_v8, %v6401_v46 }
 0xb81   : > { %v6507_v31 = vpop.f32.mrf.mxu1 }
 0xb82   : > { %v6613_v61 = vpop.f32.mrf.mxu0 }
 0xb83   : > { %v6617_v6 = vadd.f32 %v6613_v61, %v6509_v24 }
 0xb84   : > { %v6615_v10 = vpop.f32.mrf.mxu0 }
 0xb85   : > { %6619 = vst.msk [vmem:[%s457_s18] sm:$0x1] %vm6618_vm0, %v6617_v6 }
 0xb86   : > { %7689 = shalt.err (!%p7686_p3)
}
 0xb87   : > { %s7690_s21 = scalar_lea.hbm %s10499_s1, 16  ;;  %s7694_s20 = scalar_lea.hbm %s10548_s14, 32 }
 0xb88   : > { %p7691_p4 = scmp.ne.s32.totalorder %s10499_s1, %s7690_s21  ;;  %p7695_p9 = scmp.lt.s32.totalorder %s10499_s1, %s10548_s14 }
 0xb89   : > { %p7696_p10 = scmp.lt.s32.totalorder %s7694_s20, %s7690_s21 }
 0xb8a   : > { %p7692_p7 = pnand %p7691_p4, %p7870_p5 }
 0xb8b   : > { %p7697_p11 = por %p7696_p10, %p7695_p9 }
 0xb8c   : > { %p7693_p8 = pneg %p7692_p7 }
 0xb8e   : > { %p7698_p12 = pnand %p7697_p11, %p7693_p8 }
 0xb90   : > { %7701 = shalt.err (!%p7698_p12)
}
 0xb91   : > { %7359 = dma.vmem_to_hbm [thread:$0]  (%p7870_p5), %s6634_s25, 16, %s10499_s1, %s6621_s28  }
 0xb92 PF: > { %p7365_p13 = scmp.ge.s32.totalorder %s7736_s16, 2  ;;  %s6645_s22 = sand.u32 1, %s7724_s29  }
 0xb93   : > { %s6646_s26 = scalar_lea.sflag [#allocation4], %s6645_s22 }
 0xb94   : > { %p7362_p0 = pnand %p7365_p13, %p7874_p6 }
 0xb96   : > { %p7363_p1 = pneg %p7362_p0 }
 0xb98   : > { %7719 = dma.done.wait (%p7363_p1), %s6646_s26, 16  }
 0xb99   : > { %7721 = vsyncadd (%p7363_p1), %s6646_s26, 4294967280  ;;  %s10581_s15 = sld [smem:[#allocation6_spill]]  ;;  %p24_p2 = scmp.ge.s32.totalorder %s7857_s19, 4  }
 0xb9a   : > { %s10582_s21 = sld [smem:[#allocation7_spill]]  ;;  %s10583_s29 = smov %s7728_s30 }
 0xb9b   : > { %s10586_s16 = smov %s7857_s19 }
 0xb9c   :  { %26 = sbr.rel (!%p24_p2) target bundleno = 6 (0x6), region = 150 }
 0xb9f   : > { %s10584_s30 = smov %s10581_s15 }
 0xba0   : > { %s10585_s15 = smov %s10582_s21 }
 0xba1   :  { %6650 = vsyncpa [#allocation4], 1 }
 0xba2   :  { %6652 = vsyncpa [#allocation4 + $0x1], 1 }

</bundles_post_ra>
